<compile_context>
chip_gen: v6e
topology: v6e:2x2x1
jax: 0.10.0
libtpu: 0.0.40
codegen_flags: <defaults>
</compile_context>

<pallas_src>
import jax
import jax.numpy as jnp
from jax.experimental import pallas as pl
from jax.experimental.pallas import tpu as pltpu

_HI = jax.lax.Precision.HIGHEST
# Padding coordinate for train inputs -> RBF vs padded point underflows to
# exactly 0 (invariant: lengthscale << 1e6 and queries never approach 1e6).
_PAD = 1.0e6


def _round_up(v, m):
    return ((v + m - 1) // m) * m


def _sq_dist(rows, cols_t):
    """Pairwise squared distances, feature-unrolled on the VPU.

    rows   : (M, D)   row points
    cols_t : (D, K)   column points, pre-transposed (lane-dense rows)
    returns: (M, K)
    """
    d = rows.shape[1]
    acc = None
    for i in range(d):                 # D is tiny & static -> unrolled VPU passes
        diff = rows[:, i:i + 1] - cols_t[i:i + 1, :]
        sq = diff * diff
        acc = sq if acc is None else acc + sq
    return acc


# --------------------------------------------------------------------------- #
# Stage 1: per-query precompute (whitened cross-kernels C_a/C_b + posterior mean)
# --------------------------------------------------------------------------- #
def _make_stage1_kernel(na_col, nb_col):
    def kernel(params_ref,                 # SMEM (8,): ls_a, os_a, c_a, ls_b, os_b, c_b, 0, 0
               x_ref,                      # (TQ, D)   query rows of this block
               u_ref,                      # (TQ, 1)
               xa_t_ref, pka_ref,          # (D, Na_pad), (Na_pad, Na_pad) = [L_a^{-T} | w_a]
               xb_t_ref, pkb_ref,          # beta twins
               ca_ref, cb_ref, mean_ref):  # (TQ, Na_pad), (TQ, Nb_pad), (TQ, 1)
        ls_a = params_ref[0]
        os_a = params_ref[1]
        c_a = params_ref[2]
        ls_b = params_ref[3]
        os_b = params_ref[4]
        c_b = params_ref[5]

        xq = x_ref[...]
        inv2_a = -0.5 / (ls_a * ls_a)
        inv2_b = -0.5 / (ls_b * ls_b)

        # Cross kernels query-vs-train; padded train columns are exactly 0.
        k_qa = os_a * jnp.exp(inv2_a * _sq_dist(xq, xa_t_ref[...]))   # (TQ, Na_pad)
        k_qb = os_b * jnp.exp(inv2_b * _sq_dist(xq, xb_t_ref[...]))   # (TQ, Nb_pad)

        # One MXU pass per GP: columns [:na] = C = K_qx L^{-T}; column na = mean - c.
        full_a = jnp.dot(k_qa, pka_ref[...], precision=_HI,
                         preferred_element_type=jnp.float32)
        full_b = jnp.dot(k_qb, pkb_ref[...], precision=_HI,
                         preferred_element_type=jnp.float32)

        mean_a = c_a + full_a[:, na_col:na_col + 1]
        mean_b = c_b + full_b[:, nb_col:nb_col + 1]
        mean_ref[...] = mean_a + mean_b * u_ref[...]

        # Zero the packed mean column before storing C (it must not enter the
        # C_i @ C_j^T quadratic form in stage 2).
        col_a = jax.lax.broadcasted_iota(jnp.int32, full_a.shape, 1)
        ca_ref[...] = jnp.where(col_a == na_col, 0.0, full_a)
        col_b = jax.lax.broadcasted_iota(jnp.int32, full_b.shape, 1)
        cb_ref[...] = jnp.where(col_b == nb_col, 0.0, full_b)

    return kernel


# --------------------------------------------------------------------------- #
# Stage 2: (row tile, col tile) covariance blocks
# --------------------------------------------------------------------------- #
def _make_stage2_kernel(tr, tc):
    dn = (((1,), (1,)), ((), ()))          # contract last dim with last dim: A @ B^T

    def kernel(params_ref,                 # SMEM (8,)
               xi_ref,                     # (TR, D)   query rows (block i)
               xjt_ref,                    # (D, TC)   query cols transposed (block j)
               ui_ref,                     # (TR, 1)
               uj_ref,                     # (1, TC)
               cai_ref, caj_ref,           # (TR, Na_pad), (TC, Na_pad)
               cbi_ref, cbj_ref,           # (TR, Nb_pad), (TC, Nb_pad)
               cov_ref):                   # (TR, TC)
        ls_a = params_ref[0]
        os_a = params_ref[1]
        ls_b = params_ref[3]
        os_b = params_ref[4]
        inv2_a = -0.5 / (ls_a * ls_a)
        inv2_b = -0.5 / (ls_b * ls_b)

        # Query-query prior block: distances computed once, shared by alpha/beta.
        d2 = _sq_dist(xi_ref[...], xjt_ref[...])                      # (TR, TC)
        k_qq_a = os_a * jnp.exp(inv2_a * d2)
        k_qq_b = os_b * jnp.exp(inv2_b * d2)

        # Quadratic forms K_qx K^{-1} K_xq = C_i @ C_j^T (HIGHEST: feeds the
        # cancellation-prone subtraction below).
        quad_a = jax.lax.dot_general(cai_ref[...], caj_ref[...], dn,
                                     precision=_HI,
                                     preferred_element_type=jnp.float32)
        quad_b = jax.lax.dot_general(cbi_ref[...], cbj_ref[...], dn,
                                     precision=_HI,
                                     preferred_element_type=jnp.float32)
        cov_a = k_qq_a - quad_a
        cov_b = k_qq_b - quad_b

        # y_ref_from_alpha_beta combine: u u^T (.) beta.cov as two VPU broadcasts.
        cov = ui_ref[...] * cov_b * uj_ref[...] + cov_a
        cov_ref[...] = cov

        # Diagonal jitter only on blocks that actually intersect the diagonal.
        row0 = pl.program_id(0) * tr
        col0 = pl.program_id(1) * tc

        @pl.when(jnp.logical_and(row0 < col0 + tc, col0 < row0 + tr))
        def _():
            r = row0 + jax.lax.broadcasted_iota(jnp.int32, (tr, tc), 0)
            c = col0 + jax.lax.broadcasted_iota(jnp.int32, (tr, tc), 1)
            cov_ref[...] = jnp.where(r == c, cov + 1e-8, cov)

    return kernel


# --------------------------------------------------------------------------- #
# Train-side cache (one-time, not the per-query hot path)
# --------------------------------------------------------------------------- #
def _gp_train_cache(train_x, train_y, constant, lengthscale, outputscale, noise,
                    n_pad_train):
    """Cholesky-based train cache for one exact GP, packed/padded for the kernel.

    Returns (x_pad_T (D, n_pad), packed (n_pad, n_pad)) where
      packed[:n, :n] = L^{-T}            (K = L L^T, so K^{-1} = L^{-T} L^{-1})
      packed[:n, n]  = K^{-1}(y - c)     (posterior-mean vector rides as an
                                          extra column of the same matmul)
    Padded train coordinates are a far-away sentinel so k(query, pad) == 0.
    """
    # TODO(synk): the Cholesky / triangular-solve train cache has no clean Pallas
    # equivalent; it is computed once here in plain JAX (train-time cost only).
    n, d = train_x.shape
    tx = train_x.astype(jnp.float32)
    d2 = jnp.sum((tx[:, None, :] - tx[None, :, :]) ** 2, axis=-1)
    K = outputscale * jnp.exp(-0.5 * d2 / lengthscale ** 2)
    K = K + noise * jnp.eye(n, dtype=jnp.float32)
    L = jnp.linalg.cholesky(K)
    L_inv = jax.scipy.linalg.solve_triangular(L, jnp.eye(n, dtype=jnp.float32),
                                              lower=True)
    R = L_inv.T                                           # K^{-1} = R @ R^T
    w = jax.scipy.linalg.cho_solve((L, True),
                                   train_y.astype(jnp.float32) - constant)

    x_t = jnp.full((d, n_pad_train), _PAD, dtype=jnp.float32).at[:, :n].set(tx.T)
    packed = jnp.zeros((n_pad_train, n_pad_train), dtype=jnp.float32)
    packed = packed.at[:n, :n].set(R)
    packed = packed.at[:n, n].set(w)
    return x_t, packed


# --------------------------------------------------------------------------- #
# Tile / VMEM sizing (generation-aware, conservative fallbacks)
# --------------------------------------------------------------------------- #
def _device_budgets():
    """(max col tile, preferred row tile, scoped-VMEM budget bytes)."""
    try:
        kind = jax.devices()[0].device_kind.lower()
    except Exception:  # pragma: no cover
        kind = ""
    if "v5 lite" in kind or "v5e" in kind:
        return 1024, 128, 40 * 2**20      # 128-wide MXU, small default scoped VMEM
    if "v6" in kind:
        return 2048, 256, 96 * 2**20      # 128 MiB VMEM -> bigger column tiles
    return 1024, 256, 48 * 2**20          # v7x / unknown: 64 MiB VMEM, stay small


def _stage2_vmem_bytes(tr, tc, na_pad, nb_pad, d):
    f = 4
    per_in = (tr * d + d * tc + tr + tc
              + tr * na_pad + tc * na_pad + tr * nb_pad + tc * nb_pad) * f
    per_out = tr * tc * f
    temps = 8 * tr * tc * f               # d2, k_qq_a/b, quad_a/b, cov_a/b, cov
    return 2 * (per_in + per_out) + temps


# --------------------------------------------------------------------------- #
# Forward
# --------------------------------------------------------------------------- #
def linearizing_control_2_forward(x, u,
                                  xa, ya, c_a, ls_a, os_a, noise_a,
                                  xb, yb, c_b, ls_b, os_b, noise_b):
    """Returns (mean (N,), covariance (N, N)) of the MultivariateNormal output."""
    n, d = x.shape
    na, nb = xa.shape[0], xb.shape[0]

    max_tc, tr_pref, vmem_budget = _device_budgets()

    n_pad = _round_up(n, 128)
    na_pad = _round_up(na + 1, 128)       # +1 spare column for the packed mean vector
    nb_pad = _round_up(nb + 1, 128)

    # Row tile multiple of 8, column tile multiple of 128; both divide n_pad.
    tr = tr_pref if n_pad % tr_pref == 0 else 128
    tc = 128
    for cand in (2048, 1024, 512, 256, 128):
        if (cand <= max_tc and cand <= n_pad and n_pad % cand == 0
                and _stage2_vmem_bytes(tr, cand, na_pad, nb_pad, d) <= vmem_budget):
            tc = cand
            break
    tq = tc                               # stage-1 query tile

    xa_t, pka = _gp_train_cache(xa, ya, c_a, ls_a, os_a, noise_a, na_pad)
    xb_t, pkb = _gp_train_cache(xb, yb, c_b, ls_b, os_b, noise_b, nb_pad)

    x_p = jnp.zeros((n_pad, d), jnp.float32).at[:n].set(x.astype(jnp.float32))
    x_t = jnp.transpose(x_p)                                        # (D, n_pad)
    u_col = jnp.zeros((n_pad, 1), jnp.float32).at[:n, 0].set(u.astype(jnp.float32))
    u_row = u_col.reshape(1, n_pad)

    params = jnp.array([ls_a, os_a, c_a, ls_b, os_b, c_b, 0.0, 0.0],
                       dtype=jnp.float32)

    cp1 = pltpu.CompilerParams(dimension_semantics=("parallel",),
                               vmem_limit_bytes=int(vmem_budget))
    cp2 = pltpu.CompilerParams(dimension_semantics=("parallel", "parallel"),
                               vmem_limit_bytes=int(vmem_budget))

    # ---- Stage 1: whitened cross-kernels + posterior mean (one pass over x) ----
    # NOTE: xa_t/pka/xb_t/pkb have constant index maps; for very large train sets
    # they dominate stage-1 VMEM and would want single-buffering / K-tiling.
    ca, cb, mean_pad = pl.pallas_call(
        _make_stage1_kernel(na, nb),
        grid=(n_pad // tq,),
        out_shape=(jax.ShapeDtypeStruct((n_pad, na_pad), jnp.float32),
                   jax.ShapeDtypeStruct((n_pad, nb_pad), jnp.float32),
                   jax.ShapeDtypeStruct((n_pad, 1), jnp.float32)),
        in_specs=[
            pl.BlockSpec(memory_space=pltpu.MemorySpace.SMEM),        # params
            pl.BlockSpec((tq, d), lambda q: (q, 0)),                  # x rows
            pl.BlockSpec((tq, 1), lambda q: (q, 0)),                  # u rows
            pl.BlockSpec((d, na_pad), lambda q: (0, 0)),              # xa^T
            pl.BlockSpec((na_pad, na_pad), lambda q: (0, 0)),         # [L^-T | w] alpha
            pl.BlockSpec((d, nb_pad), lambda q: (0, 0)),              # xb^T
            pl.BlockSpec((nb_pad, nb_pad), lambda q: (0, 0)),         # [L^-T | w] beta
        ],
        out_specs=(pl.BlockSpec((tq, na_pad), lambda q: (q, 0)),
                   pl.BlockSpec((tq, nb_pad), lambda q: (q, 0)),
                   pl.BlockSpec((tq, 1), lambda q: (q, 0))),
        compiler_params=cp1,
    )(params, x_p, u_col, xa_t, pka, xb_t, pkb)

    # ---- Stage 2: (row tile, col tile) covariance blocks ----------------------
    cov_pad = pl.pallas_call(
        _make_stage2_kernel(tr, tc),
        grid=(n_pad // tr, n_pad // tc),
        out_shape=jax.ShapeDtypeStruct((n_pad, n_pad), jnp.float32),
        in_specs=[
            pl.BlockSpec(memory_space=pltpu.MemorySpace.SMEM),        # params
            pl.BlockSpec((tr, d), lambda i, j: (i, 0)),               # x rows (i)
            pl.BlockSpec((d, tc), lambda i, j: (0, j)),               # x^T cols (j)
            pl.BlockSpec((tr, 1), lambda i, j: (i, 0)),               # u rows (i)
            pl.BlockSpec((1, tc), lambda i, j: (0, j)),               # u cols (j)
            pl.BlockSpec((tr, na_pad), lambda i, j: (i, 0)),          # C_a rows (i)
            pl.BlockSpec((tc, na_pad), lambda i, j: (j, 0)),          # C_a rows (j)
            pl.BlockSpec((tr, nb_pad), lambda i, j: (i, 0)),          # C_b rows (i)
            pl.BlockSpec((tc, nb_pad), lambda i, j: (j, 0)),          # C_b rows (j)
        ],
        out_specs=pl.BlockSpec((tr, tc), lambda i, j: (i, j)),
        compiler_params=cp2,
    )(params, x_p, x_t, u_col, u_row, ca, ca, cb, cb)

    return mean_pad[:n, 0], cov_pad[:n, :n]


# --------------------------------------------------------------------------- #
# Pure-JAX reference (matches the PyTorch/gpytorch semantics)
# --------------------------------------------------------------------------- #
def _reference_forward(x, u, xa, ya, c_a, ls_a, os_a, noise_a,
                       xb, yb, c_b, ls_b, os_b, noise_b):
    def rbf(a, b, ls, os):
        d2 = jnp.sum((a[:, None, :] - b[None, :, :]) ** 2, axis=-1)
        return os * jnp.exp(-0.5 * d2 / ls ** 2)

    def posterior(xq, X, y, c, ls, os, noise):
        K = rbf(X, X, ls, os) + noise * jnp.eye(X.shape[0], dtype=jnp.float32)
        k_inv = jnp.linalg.inv(K)
        kx = rbf(xq, X, ls, os)
        mean = c + jnp.matmul(kx, jnp.matmul(k_inv, y - c, precision=_HI),
                              precision=_HI)
        cov = rbf(xq, xq, ls, os) - jnp.matmul(
            jnp.matmul(kx, k_inv, precision=_HI), kx.T, precision=_HI)
        return mean, cov

    ma, ca = posterior(x, xa, ya, c_a, ls_a, os_a, noise_a)
    mb, cb = posterior(x, xb, yb, c_b, ls_b, os_b, noise_b)
    mean = ma + mb * u
    cov = u[None, :] * cb * u[:, None] + ca + 1e-8 * jnp.eye(x.shape[0])
    return mean, cov


if __name__ == "__main__":
    key = jax.random.PRNGKey(0)
    k1, k2, k3, k4, k5, k6 = jax.random.split(key, 6)

    N, D = 16, 2          # query points / input features
    Na, Nb = 24, 24       # alpha / beta training-set sizes

    # Deterministic synthetic "training data" and hyperparameters.
    xa = jax.random.normal(k1, (Na, D), dtype=jnp.float32)
    ya = jnp.sin(xa[:, 0]) + 0.1 * jax.random.normal(k2, (Na,), dtype=jnp.float32)
    xb = jax.random.normal(k3, (Nb, D), dtype=jnp.float32)
    yb = jnp.cos(xb[:, 1]) + 0.1 * jax.random.normal(k4, (Nb,), dtype=jnp.float32)

    c_a, ls_a, os_a, noise_a = 0.2, 0.7, 1.1, 0.05
    c_b, ls_b, os_b, noise_b = -0.1, 0.9, 0.8, 0.05

    # Query inputs.
    x = jax.random.normal(k5, (N, D), dtype=jnp.float32)
    u = jax.random.normal(k6, (N,), dtype=jnp.float32)

    mean, cov = linearizing_control_2_forward(
        x, u, xa, ya, c_a, ls_a, os_a, noise_a,
        xb, yb, c_b, ls_b, os_b, noise_b)
    jax.block_until_ready((mean, cov))

    mean_ref, cov_ref = _reference_forward(
        x, u, xa, ya, c_a, ls_a, os_a, noise_a,
        xb, yb, c_b, ls_b, os_b, noise_b)

    assert jnp.allclose(mean, mean_ref, atol=1e-3, rtol=1e-3), "mean mismatch"
    assert jnp.allclose(cov, cov_ref, atol=1e-3, rtol=1e-3), "covariance mismatch"

    print("KERNEL_OK")
</pallas_src>

<mosaic_0001>
module attributes {stable_mosaic.version = 11 : i64} {
  func.func @kernel(%arg0: i32, %arg1: memref<8xf32, #tpu.memory_space<smem>>, %arg2: memref<128x2xf32, #tpu.memory_space<vmem>>, %arg3: memref<128x1xf32, #tpu.memory_space<vmem>>, %arg4: memref<2x128xf32, #tpu.memory_space<vmem>>, %arg5: memref<128x128xf32, #tpu.memory_space<vmem>>, %arg6: memref<2x128xf32, #tpu.memory_space<vmem>>, %arg7: memref<128x128xf32, #tpu.memory_space<vmem>>, %arg8: memref<128x128xf32, #tpu.memory_space<vmem>>, %arg9: memref<128x128xf32, #tpu.memory_space<vmem>>, %arg10: memref<128x1xf32, #tpu.memory_space<vmem>>) attributes {dimension_semantics = [#tpu.dimension_semantics<parallel>], iteration_bounds = array<i64: 1>, scalar_prefetch = 0 : i64, scratch_operands = 0 : i64, tpu.core_type = #tpu.core_type<tc>, window_params = [{transform_indices = @transform_0, window_bounds = array<i64: 8>}, {transform_indices = @transform_1, window_bounds = array<i64: 128, 2>}, {transform_indices = @transform_2, window_bounds = array<i64: 128, 1>}, {pipeline_mode = #tpu.pipeline_mode<synchronous>, transform_indices = @transform_3, window_bounds = array<i64: 2, 128>}, {pipeline_mode = #tpu.pipeline_mode<synchronous>, transform_indices = @transform_4, window_bounds = array<i64: 128, 128>}, {pipeline_mode = #tpu.pipeline_mode<synchronous>, transform_indices = @transform_5, window_bounds = array<i64: 2, 128>}, {pipeline_mode = #tpu.pipeline_mode<synchronous>, transform_indices = @transform_6, window_bounds = array<i64: 128, 128>}, {transform_indices = @transform_7, window_bounds = array<i64: 128, 128>}, {transform_indices = @transform_8, window_bounds = array<i64: 128, 128>}, {transform_indices = @transform_9, window_bounds = array<i64: 128, 1>}]} {
    %c0 = arith.constant 0 : index
    %0 = memref.load %arg1[%c0] : memref<8xf32, #tpu.memory_space<smem>>
    %c1 = arith.constant 1 : index
    %1 = memref.load %arg1[%c1] : memref<8xf32, #tpu.memory_space<smem>>
    %c2 = arith.constant 2 : index
    %2 = memref.load %arg1[%c2] : memref<8xf32, #tpu.memory_space<smem>>
    %c3 = arith.constant 3 : index
    %3 = memref.load %arg1[%c3] : memref<8xf32, #tpu.memory_space<smem>>
    %c4 = arith.constant 4 : index
    %4 = memref.load %arg1[%c4] : memref<8xf32, #tpu.memory_space<smem>>
    %c5 = arith.constant 5 : index
    %5 = memref.load %arg1[%c5] : memref<8xf32, #tpu.memory_space<smem>>
    %c0_0 = arith.constant 0 : index
    %c0_1 = arith.constant 0 : index
    %6 = vector.load %arg2[%c0_0, %c0_1] : memref<128x2xf32, #tpu.memory_space<vmem>>, vector<128x2xf32>
    %7 = arith.mulf %0, %0 : f32
    %cst = arith.constant -5.000000e-01 : f32
    %8 = arith.divf %cst, %7 : f32
    %9 = arith.mulf %3, %3 : f32
    %cst_2 = arith.constant -5.000000e-01 : f32
    %10 = arith.divf %cst_2, %9 : f32
    %c0_3 = arith.constant 0 : index
    %c0_4 = arith.constant 0 : index
    %11 = vector.load %arg4[%c0_3, %c0_4] : memref<2x128xf32, #tpu.memory_space<vmem>>, vector<2x128xf32>
    %12 = vector.extract_strided_slice %6 {offsets = [0, 0], sizes = [128, 1], strides = [1, 1]} : vector<128x2xf32> to vector<128x1xf32>
    %13 = vector.extract_strided_slice %11 {offsets = [0, 0], sizes = [1, 128], strides = [1, 1]} : vector<2x128xf32> to vector<1x128xf32>
    %14 = vector.broadcast %12 : vector<128x1xf32> to vector<128x128xf32>
    %15 = vector.broadcast %13 : vector<1x128xf32> to vector<128x128xf32>
    %16 = arith.subf %14, %15 : vector<128x128xf32>
    %17 = arith.mulf %16, %16 : vector<128x128xf32>
    %18 = vector.extract_strided_slice %6 {offsets = [0, 1], sizes = [128, 1], strides = [1, 1]} : vector<128x2xf32> to vector<128x1xf32>
    %19 = vector.extract_strided_slice %11 {offsets = [1, 0], sizes = [1, 128], strides = [1, 1]} : vector<2x128xf32> to vector<1x128xf32>
    %20 = vector.broadcast %18 : vector<128x1xf32> to vector<128x128xf32>
    %21 = vector.broadcast %19 : vector<1x128xf32> to vector<128x128xf32>
    %22 = arith.subf %20, %21 : vector<128x128xf32>
    %23 = arith.mulf %22, %22 : vector<128x128xf32>
    %24 = arith.addf %17, %23 : vector<128x128xf32>
    %25 = vector.broadcast %8 : f32 to vector<128x128xf32>
    %26 = arith.mulf %25, %24 : vector<128x128xf32>
    %27 = math.exp %26 : vector<128x128xf32>
    %28 = vector.broadcast %1 : f32 to vector<128x128xf32>
    %29 = arith.mulf %28, %27 : vector<128x128xf32>
    %c0_5 = arith.constant 0 : index
    %c0_6 = arith.constant 0 : index
    %30 = vector.load %arg6[%c0_5, %c0_6] : memref<2x128xf32, #tpu.memory_space<vmem>>, vector<2x128xf32>
    %31 = vector.extract_strided_slice %6 {offsets = [0, 0], sizes = [128, 1], strides = [1, 1]} : vector<128x2xf32> to vector<128x1xf32>
    %32 = vector.extract_strided_slice %30 {offsets = [0, 0], sizes = [1, 128], strides = [1, 1]} : vector<2x128xf32> to vector<1x128xf32>
    %33 = vector.broadcast %31 : vector<128x1xf32> to vector<128x128xf32>
    %34 = vector.broadcast %32 : vector<1x128xf32> to vector<128x128xf32>
    %35 = arith.subf %33, %34 : vector<128x128xf32>
    %36 = arith.mulf %35, %35 : vector<128x128xf32>
    %37 = vector.extract_strided_slice %6 {offsets = [0, 1], sizes = [128, 1], strides = [1, 1]} : vector<128x2xf32> to vector<128x1xf32>
    %38 = vector.extract_strided_slice %30 {offsets = [1, 0], sizes = [1, 128], strides = [1, 1]} : vector<2x128xf32> to vector<1x128xf32>
    %39 = vector.broadcast %37 : vector<128x1xf32> to vector<128x128xf32>
    %40 = vector.broadcast %38 : vector<1x128xf32> to vector<128x128xf32>
    %41 = arith.subf %39, %40 : vector<128x128xf32>
    %42 = arith.mulf %41, %41 : vector<128x128xf32>
    %43 = arith.addf %36, %42 : vector<128x128xf32>
    %44 = vector.broadcast %10 : f32 to vector<128x128xf32>
    %45 = arith.mulf %44, %43 : vector<128x128xf32>
    %46 = math.exp %45 : vector<128x128xf32>
    %47 = vector.broadcast %4 : f32 to vector<128x128xf32>
    %48 = arith.mulf %47, %46 : vector<128x128xf32>
    %c0_7 = arith.constant 0 : index
    %c0_8 = arith.constant 0 : index
    %49 = vector.load %arg5[%c0_7, %c0_8] : memref<128x128xf32, #tpu.memory_space<vmem>>, vector<128x128xf32>
    %cst_9 = arith.constant dense<0.000000e+00> : vector<128x128xf32>
    %50 = tpu.matmul %29, %49, %cst_9 {dimension_numbers = #tpu.dot_dimension_numbers<[1], [0], [0], [1], [0, 0, 1, 1], [], []>, precision = #tpu.contract_precision<fp32>} : vector<128x128xf32>, vector<128x128xf32>, vector<128x128xf32> -> vector<128x128xf32>
    %c0_10 = arith.constant 0 : index
    %c0_11 = arith.constant 0 : index
    %51 = vector.load %arg7[%c0_10, %c0_11] : memref<128x128xf32, #tpu.memory_space<vmem>>, vector<128x128xf32>
    %cst_12 = arith.constant dense<0.000000e+00> : vector<128x128xf32>
    %52 = tpu.matmul %48, %51, %cst_12 {dimension_numbers = #tpu.dot_dimension_numbers<[1], [0], [0], [1], [0, 0, 1, 1], [], []>, precision = #tpu.contract_precision<fp32>} : vector<128x128xf32>, vector<128x128xf32>, vector<128x128xf32> -> vector<128x128xf32>
    %53 = vector.extract_strided_slice %50 {offsets = [0, 24], sizes = [128, 1], strides = [1, 1]} : vector<128x128xf32> to vector<128x1xf32>
    %54 = vector.broadcast %2 : f32 to vector<128x1xf32>
    %55 = arith.addf %54, %53 : vector<128x1xf32>
    %56 = vector.extract_strided_slice %52 {offsets = [0, 24], sizes = [128, 1], strides = [1, 1]} : vector<128x128xf32> to vector<128x1xf32>
    %57 = vector.broadcast %5 : f32 to vector<128x1xf32>
    %58 = arith.addf %57, %56 : vector<128x1xf32>
    %c0_13 = arith.constant 0 : index
    %c0_14 = arith.constant 0 : index
    %59 = vector.load %arg3[%c0_13, %c0_14] : memref<128x1xf32, #tpu.memory_space<vmem>>, vector<128x1xf32>
    %60 = arith.mulf %58, %59 : vector<128x1xf32>
    %61 = arith.addf %55, %60 : vector<128x1xf32>
    %c0_15 = arith.constant 0 : index
    %c0_16 = arith.constant 0 : index
    %62 = vector.load %arg10[%c0_15, %c0_16] : memref<128x1xf32, #tpu.memory_space<vmem>>, vector<128x1xf32>
    tpu.vector_store %arg10[%c0_15, %c0_16], %61 {strides = array<i32>} : memref<128x1xf32, #tpu.memory_space<vmem>>, vector<128x1xf32>,
    %63 = tpu.iota {dimensions = array<i32: 1>} : vector<128x128xi32>
    %c24_i32 = arith.constant 24 : i32
    %64 = vector.broadcast %c24_i32 : i32 to vector<128x128xi32>
    %65 = arith.cmpi eq, %63, %64 : vector<128x128xi32>
    %cst_17 = arith.constant 0.000000e+00 : f32
    %66 = vector.broadcast %cst_17 : f32 to vector<128x128xf32>
    %67 = arith.select %65, %66, %50 : vector<128x128xi1>, vector<128x128xf32>
    %c0_18 = arith.constant 0 : index
    %c0_19 = arith.constant 0 : index
    %68 = vector.load %arg8[%c0_18, %c0_19] : memref<128x128xf32, #tpu.memory_space<vmem>>, vector<128x128xf32>
    tpu.vector_store %arg8[%c0_18, %c0_19], %67 {strides = array<i32>} : memref<128x128xf32, #tpu.memory_space<vmem>>, vector<128x128xf32>,
    %69 = tpu.iota {dimensions = array<i32: 1>} : vector<128x128xi32>
    %c24_i32_20 = arith.constant 24 : i32
    %70 = vector.broadcast %c24_i32_20 : i32 to vector<128x128xi32>
    %71 = arith.cmpi eq, %69, %70 : vector<128x128xi32>
    %cst_21 = arith.constant 0.000000e+00 : f32
    %72 = vector.broadcast %cst_21 : f32 to vector<128x128xf32>
    %73 = arith.select %71, %72, %52 : vector<128x128xi1>, vector<128x128xf32>
    %c0_22 = arith.constant 0 : index
    %c0_23 = arith.constant 0 : index
    %74 = vector.load %arg9[%c0_22, %c0_23] : memref<128x128xf32, #tpu.memory_space<vmem>>, vector<128x128xf32>
    tpu.vector_store %arg9[%c0_22, %c0_23], %73 {strides = array<i32>} : memref<128x128xf32, #tpu.memory_space<vmem>>, vector<128x128xf32>,
    return
  }
  func.func @transform_0(%arg0: i32) -> i32 {
    %c0_i32 = arith.constant 0 : i32
    %c0_i32_0 = arith.constant 0 : i32
    return %c0_i32 : i32
  }
  func.func @transform_1(%arg0: i32) -> (i32, i32) {
    %c0_i32 = arith.constant 0 : i32
    %c0_i32_0 = arith.constant 0 : i32
    return %arg0, %c0_i32 : i32, i32
  }
  func.func @transform_2(%arg0: i32) -> (i32, i32) {
    %c0_i32 = arith.constant 0 : i32
    %c0_i32_0 = arith.constant 0 : i32
    return %arg0, %c0_i32 : i32, i32
  }
  func.func @transform_3(%arg0: i32) -> (i32, i32) {
    %c0_i32 = arith.constant 0 : i32
    %c0_i32_0 = arith.constant 0 : i32
    %c0_i32_1 = arith.constant 0 : i32
    return %c0_i32, %c0_i32_0 : i32, i32
  }
  func.func @transform_4(%arg0: i32) -> (i32, i32) {
    %c0_i32 = arith.constant 0 : i32
    %c0_i32_0 = arith.constant 0 : i32
    %c0_i32_1 = arith.constant 0 : i32
    return %c0_i32, %c0_i32_0 : i32, i32
  }
  func.func @transform_5(%arg0: i32) -> (i32, i32) {
    %c0_i32 = arith.constant 0 : i32
    %c0_i32_0 = arith.constant 0 : i32
    %c0_i32_1 = arith.constant 0 : i32
    return %c0_i32, %c0_i32_0 : i32, i32
  }
  func.func @transform_6(%arg0: i32) -> (i32, i32) {
    %c0_i32 = arith.constant 0 : i32
    %c0_i32_0 = arith.constant 0 : i32
    %c0_i32_1 = arith.constant 0 : i32
    return %c0_i32, %c0_i32_0 : i32, i32
  }
  func.func @transform_7(%arg0: i32) -> (i32, i32) {
    %c0_i32 = arith.constant 0 : i32
    %c0_i32_0 = arith.constant 0 : i32
    return %arg0, %c0_i32 : i32, i32
  }
  func.func @transform_8(%arg0: i32) -> (i32, i32) {
    %c0_i32 = arith.constant 0 : i32
    %c0_i32_0 = arith.constant 0 : i32
    return %arg0, %c0_i32 : i32, i32
  }
  func.func @transform_9(%arg0: i32) -> (i32, i32) {
    %c0_i32 = arith.constant 0 : i32
    %c0_i32_0 = arith.constant 0 : i32
    return %arg0, %c0_i32 : i32, i32
  }
}

</mosaic_0001>

<bundles_post_ra>
// kernel: tpu_custom_call.1
= control target key start
LH: loop header
LB: loop body
LE: loop exit
PB: predicated region body
PF: predicated region fallthrough
CT: control target
= control target key end

     0   :  { %15 = vsyncpa [#allocation4], 0  ;;  %s6948_s0 = inlined_call_operand.vmem [shape: f32[8], index: 0, kind: input, shape index: {}]   ;;  %s6949_s1 = inlined_call_operand.vmem [shape: f32[128,2], index: 1, kind: input, shape index: {}]   ;;  %s6950_s2 = inlined_call_operand.vmem [shape: f32[128,1], index: 2, kind: input, shape index: {}]   ;;  %s6951_s3 = inlined_call_operand.vmem [shape: f32[2,128], index: 3, kind: input, shape index: {}]   ;;  %s6952_s4 = inlined_call_operand.vmem [shape: f32[128,128], index: 4, kind: input, shape index: {}]   ;;  %s6953_s5 = inlined_call_operand.vmem [shape: f32[2,128], index: 5, kind: input, shape index: {}]   ;;  %s6954_s6 = inlined_call_operand.vmem [shape: f32[128,128], index: 6, kind: input, shape index: {}]   ;;  %s6955_s7 = inlined_call_operand.hbm [shape: f32[128,128], index: 7, kind: output, shape index: {0}]   ;;  %s6956_s8 = inlined_call_operand.hbm [shape: f32[128,128], index: 8, kind: output, shape index: {1}]   ;;  %s6957_s9 = inlined_call_operand.vmem [shape: f32[128,1], index: 9, kind: output, shape index: {2}]  }
   0x1   :  { %16 = vsyncpa [#allocation3], 0 }
   0x2   :  { %17 = vsyncpa [#allocation7], 0  ;;  %s24_s11 = sshll.u32 %s6948_s0, 4  ;;  %s25_s11 = int_to_ptr.vmem [resolvable:$true] %s24_s11 }
   0x3   :  { %s4612_s12 = scalar_lea.vmem %s25_s11, 16  ;;  %p4617_p1 = scmp.lt.s32.totalorder %s25_s11, %s25_s11 }
   0x4   :  { %p4613_p0 = scmp.ne.s32.totalorder %s25_s11, %s4612_s12  ;;  %p4618_p2 = scmp.lt.s32.totalorder %s4612_s12, %s4612_s12 }
   0x6   :  { %p4619_p3 = por %p4618_p2, %p4617_p1 }
   0x8   :  { %p4620_p4 = pnand %p4619_p3, %p4613_p0 }
   0xa   :  { %4623 = shalt.err (!%p4620_p4)
}
   0xb   :  { %s4670_s13 = smov [#allocation2]  }
   0xc   :  { %27 = dma.vmem_to_smem %s25_s11, 16, %s4670_s13, [#allocation4]  }
   0xd   :  { %4664 = dma.done.wait [#allocation4], 16  }
   0xe   :  { %4665 = vsyncadd [#allocation4], 4294967280 }
   0xf   :  { %43 = sfence }
  0x10   :  { %v51_v0 = vld [vmem:[%s6949_s1 + $0x8] sm:$0xff]  ;;  %v50_v1 = vld [vmem:[%s6949_s1] sm:$0xff]  ;;  %v4671_v2 = vmov 0   ;;  %s44_s0 = sld [smem:[#allocation2]]  ;;  %v4672_v3 = vmov 1   ;;  %v545_v4 = vld [vmem:[%s6952_s4 + $0x78] sm:$0xff] }
  0x11   :  { %4541 = vset.pattern.permute.xlu1 %v4671_v2  ;;  %4539 = vset.pattern.permute.xlu0 %v4671_v2  ;;  %s3467_s18 = sld [smem:[#allocation2 + $0x3]]  ;;  %v544_v5 = vld [vmem:[%s6952_s4 + $0x70] sm:$0xff]  ;;  %v543_v6 = vld [vmem:[%s6952_s4 + $0x68] sm:$0xff]  ;;  %v4747_v7 = vand.u32 4294901760, %v545_v4  ;;  %v542_v10 = vld [vmem:[%s6952_s4 + $0x60] sm:$0xff]  ;;  %s4673_s29 = smov 24  }
  0x12   :  { %84 = vperm.xlu1 %4541, %v51_v0   ;;  %79 = vperm.xlu0 %4539, %v50_v1   ;;  %v4749_v8 = vand.u32 4294901760, %v544_v5  ;;  %v4751_v9 = vand.u32 4294901760, %v543_v6  ;;  %v541_v11 = vld [vmem:[%s6952_s4 + $0x58] sm:$0xff]  ;;  %v540_v12 = vld [vmem:[%s6952_s4 + $0x50] sm:$0xff]  ;;  %v4765_v14 = vand.u32 4294901760, %v542_v10  ;;  %v539_v21 = vld [vmem:[%s6952_s4 + $0x48] sm:$0xff] }
  0x13   :  { %v52_v13 = vld [vmem:[%s6949_s1 + $0x10] sm:$0xff]  ;;  %v4767_v15 = vand.u32 4294901760, %v541_v11  ;;  %v4769_v16 = vand.u32 4294901760, %v540_v12  ;;  %v4772_v18 = vsub.f32 %v545_v4, %v4747_v7  ;;  %3854 = vmatprep.subr.mxu0 %v4747_v7  ;;  %v538_v25 = vld [vmem:[%s6952_s4 + $0x40] sm:$0xff]  ;;  %v53_v29 = vld [vmem:[%s6949_s1 + $0x18] sm:$0xff]  ;;  %v4816_v33 = vand.u32 4294901760, %v539_v21 }
  0x14   :  { %v4775_v19 = vsub.f32 %v544_v5, %v4749_v8  ;;  %v4778_v20 = vsub.f32 %v543_v6, %v4751_v9  ;;  %v4785_v23 = vsub.f32 %v542_v10, %v4765_v14  ;;  %3855 = vmatpush3.msra.mxu0 %v4747_v7  ;;  %v4825_v37 = vand.u32 4294901760, %v538_v25  ;;  %v537_v40 = vld [vmem:[%s6952_s4 + $0x38] sm:$0xff]  ;;  %v536_v41 = vld [vmem:[%s6952_s4 + $0x30] sm:$0xff]  ;;  %v535_v42 = vld [vmem:[%s6952_s4 + $0x28] sm:$0xff]  ;;  %s5726_s23 = sld [smem:[#allocation2 + $0x4]]  ;;  %s4674_s11 = smov 104  }
  0x15   :  { %v4788_v24 = vsub.f32 %v541_v11, %v4767_v15  ;;  %v4795_v26 = vand.u32 4294901760, %v4772_v18  ;;  %3856 = vmatprep.subr.mxu0 %v4749_v8  ;;  %v4814_v32 = vsub.f32 %v540_v12, %v4769_v16  ;;  %v4831_v39 = vsub.f32 %v539_v21, %v4816_v33  ;;  %v54_v47 = vld [vmem:[%s6949_s1 + $0x20] sm:$0xff]  ;;  %v533_v57 = vld [vmem:[%s6952_s4 + $0x18] sm:$0xff]  ;;  %v55_v62 = vld [vmem:[%s6949_s1 + $0x28] sm:$0xff]  ;;  %s4676_s14 = smov [#allocation6]  }
  0x16   :  { %4542 = vset.pattern.permute.xlu1 %v4672_v3  ;;  %4540 = vset.pattern.permute.xlu0 %v4672_v3  ;;  %s66_s25 = smul.f32 %s44_s0, %s44_s0  ;;  %v4798_v27 = vand.u32 4294901760, %v4775_v19  ;;  %v4801_v28 = vand.u32 4294901760, %v4778_v20  ;;  %v4807_v30 = vand.u32 4294901760, %v4785_v23  ;;  %v4847_v46 = vsub.f32 %v538_v25, %v4825_v37  ;;  %v534_v50 = vld [vmem:[%s6952_s4 + $0x20] sm:$0xff]  ;;  %v531_v6 = vld [vmem:[%s6952_s4 + $0x8] sm:$0xff] }
  0x17   :  { %198 = vperm.xlu1 %4542, %v51_v0   ;;  %194 = vperm.xlu0 %4540, %v50_v1   ;;  %s71_s13 = smul.f32 %s3467_s18, %s3467_s18  ;;  %7057 = vst [vmem:[#allocation11_spill] sm:$0xff] %v4795_v26  ;;  %v4810_v31 = vand.u32 4294901760, %v4788_v24  ;;  %v791_v34 = vsub.f32 %v4772_v18, %v4795_v26  ;;  %v4843_v45 = vand.u32 4294901760, %v4814_v32  ;;  %v4855_v49 = vand.u32 4294901760, %v4831_v39  ;;  %v532_v0 = vld [vmem:[%s6952_s4 + $0x10] sm:$0xff] }
  0x18   :  { %v67_v17 = vstv %s66_s25  ;;  %7058 = vst [vmem:[#allocation12_spill] sm:$0xff] %v4798_v27  ;;  %7059 = vst [vmem:[#allocation13_spill] sm:$0xff] %v4801_v28  ;;  %v798_v35 = vsub.f32 %v4775_v19, %v4798_v27  ;;  %v805_v36 = vsub.f32 %v4778_v20, %v4801_v28  ;;  %3857 = vmatpush3.msra.mxu0 %v4749_v8  ;;  %v4862_v52 = vand.u32 4294901760, %v537_v40 }
  0x19   :  { %4544 = vrcp.f32 %v67_v17  ;;  %v72_v22 = vstv %s71_s13  ;;  %7060 = vst [vmem:[#allocation14_spill] sm:$0xff] %v4807_v30  ;;  %7061 = vst [vmem:[#allocation15_spill] sm:$0xff] %v4810_v31  ;;  %v812_v38 = vsub.f32 %v4785_v23, %v4807_v30  ;;  %3858 = vmatprep.subr.mxu0 %v4751_v9  ;;  %v792_v43 = vand.u32 4294901760, %v791_v34 }
  0x1a   :  { %4546 = vrcp.f32 %v72_v22  ;;  %v799_v44 = vand.u32 4294901760, %v798_v35  ;;  %7062 = vst [vmem:[#allocation16_spill] sm:$0xff] %v4843_v45  ;;  %3859 = vmatpush3.msra.mxu0 %v4751_v9  ;;  %v819_v48 = vsub.f32 %v4788_v24, %v4810_v31  ;;  %7063 = vst [vmem:[#allocation17_spill] sm:$0xff] %v4855_v49  ;;  %v806_v51 = vand.u32 4294901760, %v805_v36  ;;  %v56_v22 = vld [vmem:[%s6949_s1 + $0x30] sm:$0xff] }
  0x1b   :  { %4543 = vset.pattern.permute.xlu1 %v4671_v2  ;;  %202 = vperm.xlu0 %4540, %v52_v13   ;;  %v4864_v53 = vand.u32 4294901760, %v536_v41  ;;  %v4866_v54 = vand.u32 4294901760, %v535_v42  ;;  %v813_v55 = vand.u32 4294901760, %v812_v38  ;;  %v4869_v56 = vand.u32 4294901760, %v4847_v46 }
  0x1c   :  { %89 = vperm.xlu1 %4543, %v52_v13   ;;  %3860 = vmatprep.subr.mxu0 %v4765_v14  ;;  %v826_v58 = vsub.f32 %v4814_v32, %v4843_v45  ;;  %v4878_v59 = vsub.f32 %v537_v40, %v4862_v52  ;;  %v4883_v61 = vand.u32 4294901760, %v534_v50  ;;  %v833_v63 = vsub.f32 %v4831_v39, %v4855_v49 }
  0x1d   :  { %3910 = vmatprep.subr.mxu1 %v792_v43  ;;  %3861 = vmatpush3.msra.mxu0 %v4765_v14  ;;  %7064 = vst [vmem:[#allocation18_spill] sm:$0xff] %v4869_v56  ;;  %v4881_v60 = vsub.f32 %v536_v41, %v4864_v53  ;;  %v820_v1 = vand.u32 4294901760, %v819_v48  ;;  %v4898_v3 = vsub.f32 %v535_v42, %v4866_v54  ;;  %v4900_v4 = vand.u32 4294901760, %v533_v57 }
  0x1e   :  { %3911 = vmatpush3.msra.mxu1 %v792_v43  ;;  %3862 = vmatprep.subr.mxu0 %v4767_v15  ;;  %v4894_v2 = vand.u32 4294901760, %v4878_v59  ;;  %v840_v5 = vsub.f32 %v4847_v46, %v4869_v56  ;;  %v827_v11 = vand.u32 4294901760, %v826_v58  ;;  %v4912_v13 = vsub.f32 %v534_v50, %v4883_v61 }
  0x1f   :  { %206 = vperm.xlu0 %4540, %v53_v29   ;;  %3912 = vmatprep.subr.mxu1 %v799_v44  ;;  %v4909_v12 = vand.u32 4294901760, %v4881_v60  ;;  %v4914_v17 = vand.u32 4294901760, %v532_v0  ;;  %v834_v25 = vand.u32 4294901760, %v833_v63  ;;  %v4926_v35 = vand.u32 4294901760, %v4898_v3 }
  0x20   :  { %94 = vperm.xlu1 %4543, %v53_v29   ;;  %3913 = vmatpush3.msra.mxu1 %v799_v44  ;;  %7065 = vst [vmem:[#allocation19_spill] sm:$0xff] %v4894_v2  ;;  %v530_v29 = vld [vmem:[%s6952_s4] sm:$0xff]  ;;  %v847_v34 = vsub.f32 %v4878_v59, %v4894_v2  ;;  %v4929_v36 = vsub.f32 %v533_v57, %v4900_v4  ;;  %v4931_v38 = vand.u32 4294901760, %v531_v6  ;;  %v841_v40 = vand.u32 4294901760, %v840_v5 }
  0x21   :  { %3914 = vmatprep.subr.mxu1 %v806_v51  ;;  %3863 = vmatpush3.msra.mxu0 %v4767_v15  ;;  %7066 = vst [vmem:[#allocation20_spill] sm:$0xff] %v4909_v12  ;;  %7067 = vst [vmem:[#allocation21_spill] sm:$0xff] %v4926_v35  ;;  %v854_v41 = vsub.f32 %v4881_v60, %v4909_v12  ;;  %v4937_v42 = vand.u32 4294901760, %v4912_v13  ;;  %v4940_v43 = vsub.f32 %v532_v0, %v4914_v17  ;;  %v58_v0 = vld [vmem:[%s6949_s1 + $0x40] sm:$0xff] }
  0x22   :  { %3915 = vmatpush3.msra.mxu1 %v806_v51  ;;  %3864 = vmatprep.subr.mxu0 %v4769_v16  ;;  %v4942_v44 = vand.u32 4294901760, %v530_v29  ;;  %v848_v48 = vand.u32 4294901760, %v847_v34  ;;  %v861_v50 = vsub.f32 %v4898_v3, %v4926_v35  ;;  %v4951_v51 = vand.u32 4294901760, %v4929_v36 }
  0x23   :  { %210 = vperm.xlu0 %4540, %v54_v47   ;;  %3916 = vmatprep.subr.mxu1 %v813_v55  ;;  %7068 = vst [vmem:[#allocation22_spill] sm:$0xff] %v4937_v42  ;;  %7069 = vst [vmem:[#allocation23_spill] sm:$0xff] %v4940_v43  ;;  %v855_v57 = vand.u32 4294901760, %v854_v41  ;;  %v868_v58 = vsub.f32 %v4912_v13, %v4937_v42  ;;  %v60_v41 = vld [vmem:[%s6949_s1 + $0x50] sm:$0xff] }
  0x24   :  { %99 = vperm.xlu1 %4543, %v54_v47   ;;  %3917 = vmatpush3.msra.mxu1 %v813_v55  ;;  %v57_v47 = vld [vmem:[%s6949_s1 + $0x38] sm:$0xff]  ;;  %7070 = vst [vmem:[#allocation24_spill] sm:$0xff] %v4951_v51  ;;  %v4954_v55 = vsub.f32 %v531_v6, %v4931_v38  ;;  %v4963_v63 = vsub.f32 %v530_v29, %v4942_v44 }
  0x25   :  { %3918 = vmatprep.subr.mxu1 %v820_v1  ;;  %3865 = vmatpush3.msra.mxu0 %v4769_v16  ;;  %v875_v5 = vsub.f32 %v4929_v36, %v4951_v51 }
  0x26   :  { %v4545_v10 = vpop.eup %4544  ;;  %3919 = vmatpush3.msra.mxu1 %v820_v1  ;;  %3866 = vmatprep.subr.mxu0 %v4816_v33  ;;  %7071 = vst [vmem:[#allocation25_spill] sm:$0xff] %v4954_v55  ;;  %7073 = vst [vmem:[#allocation27_spill] sm:$0xff] %v4963_v63  ;;  %v862_v1 = vand.u32 4294901760, %v861_v50  ;;  %v4972_v6 = vand.u32 4294901760, %v4954_v55  ;;  %v61_v50 = vld [vmem:[%s6949_s1 + $0x58] sm:$0xff] }
  0x27   :  { %214 = vperm.xlu0 %4540, %v55_v62   ;;  %v4547_v21 = vpop.eup %4546  ;;  %4526 = vpush %v4545_v10  ;;  %3920 = vmatprep.subr.mxu1 %v827_v11  ;;  %v869_v10 = vand.u32 4294901760, %v868_v58  ;;  %v63_v58 = vld [vmem:[%s6949_s1 + $0x68] sm:$0xff] }
  0x28   :  { %104 = vperm.xlu1 %4543, %v55_v62   ;;  %4528 = vpush %v4547_v21  ;;  %3921 = vmatpush3.msra.mxu1 %v827_v11  ;;  %v4960_v62 = vand.u32 4294901760, %v4940_v43  ;;  %7074 = vst [vmem:[#allocation28_spill] sm:$0xff] %v4972_v6  ;;  %v4978_v21 = vand.u32 4294901760, %v4963_v63  ;;  %v889_v29 = vsub.f32 %v4954_v55, %v4972_v6 }
  0x29   :  { %3922 = vmatprep.subr.mxu1 %v834_v25  ;;  %3867 = vmatpush3.msra.mxu0 %v4816_v33 }
  0x2a   :  { %3923 = vmatpush3.msra.mxu1 %v834_v25  ;;  %3868 = vmatprep.subr.mxu0 %v4825_v37  ;;  %7072 = vst [vmem:[#allocation26_spill] sm:$0xff] %v4960_v62  ;;  %v882_v11 = vsub.f32 %v4940_v43, %v4960_v62  ;;  %7075 = vst [vmem:[#allocation29_spill] sm:$0xff] %v4978_v21  ;;  %v876_v25 = vand.u32 4294901760, %v875_v5  ;;  %v6958_v5 = vlaneseq }
  0x2b   :  { %218 = vperm.xlu0 %4540, %v56_v22   ;;  %3924 = vmatprep.subr.mxu1 %v841_v40 }
  0x2c   :  { %109 = vperm.xlu1 %4543, %v56_v22   ;;  %3925 = vmatpush3.msra.mxu1 %v841_v40  ;;  %v59_v22 = vld [vmem:[%s6949_s1 + $0x48] sm:$0xff]  ;;  %v883_v34 = vand.u32 4294901760, %v882_v11  ;;  %v896_v40 = vsub.f32 %v4963_v63, %v4978_v21 }
  0x2d   :  { %3926 = vmatprep.subr.mxu1 %v848_v48  ;;  %3869 = vmatpush3.msra.mxu0 %v4825_v37 }
  0x2e   :  { %3927 = vmatpush3.msra.mxu1 %v848_v48  ;;  %3870 = vmatprep.subr.mxu0 %v4862_v52  ;;  %v897_v48 = vand.u32 4294901760, %v896_v40 }
  0x2f   :  { %222 = vperm.xlu0 %4540, %v57_v47   ;;  %3928 = vmatprep.subr.mxu1 %v855_v57 }
  0x30   :  { %114 = vperm.xlu1 %4543, %v57_v47   ;;  %3929 = vmatpush3.msra.mxu1 %v855_v57  ;;  %v890_v47 = vand.u32 4294901760, %v889_v29  ;;  %v62_v57 = vld [vmem:[%s6949_s1 + $0x60] sm:$0xff] }
  0x31   :  { %3930 = vmatprep.subr.mxu1 %v862_v1  ;;  %3871 = vmatpush3.msra.mxu0 %v4862_v52 }
  0x32   :  { %3931 = vmatpush3.msra.mxu1 %v862_v1  ;;  %3872 = vmatprep.subr.mxu0 %v4864_v53  ;;  %v65_v1 = vld [vmem:[%s6949_s1 + $0x78] sm:$0xff] }
  0x33   :  { %226 = vperm.xlu0 %4540, %v58_v0   ;;  %3932 = vmatprep.subr.mxu1 %v869_v10 }
  0x34   :  { %119 = vperm.xlu1 %4543, %v58_v0   ;;  %3933 = vmatpush3.msra.mxu1 %v869_v10  ;;  %v64_v0 = vld [vmem:[%s6949_s1 + $0x70] sm:$0xff]  ;;  %v158_v10 = vshrl.u32 %v6958_v5, 7 }
  0x35   :  { %3934 = vmatprep.subr.mxu1 %v876_v25  ;;  %3873 = vmatpush3.msra.mxu0 %v4864_v53 }
  0x36   :  { %3935 = vmatpush3.msra.mxu1 %v876_v25  ;;  %3874 = vmatprep.subr.mxu0 %v4866_v54  ;;  %v159_v11 = vsub.s32 0, %v158_v10  ;;  %v76_v25 = vld [vmem:[%s6951_s3] sm:$0x3] }
  0x37   :  { %230 = vperm.xlu0 %4540, %v59_v22   ;;  %3936 = vmatprep.subr.mxu1 %v883_v34 }
  0x38   :  { %124 = vperm.xlu1 %4543, %v59_v22   ;;  %3937 = vmatpush3.msra.mxu1 %v883_v34  ;;  %v375_v22 = vld [vmem:[%s6953_s5] sm:$0x3]  ;;  %v259_v34 = vsub.s32 1, %v158_v10  ;;  %v5031_v40 = vrot.slane %v76_v25, %v159_v11  ;;  %s3465_s5 = sld [smem:[#allocation2 + $0x1]] }
  0x39   :  { %3938 = vmatprep.subr.mxu1 %v890_v47  ;;  %3875 = vmatpush3.msra.mxu0 %v4866_v54  ;;  %v5029_v29 = vrot.slane %v375_v22, %v159_v11 }
  0x3a   :  { %3939 = vmatpush3.msra.mxu1 %v890_v47  ;;  %3876 = vmatprep.subr.mxu0 %v4883_v61 }
  0x3b   :  { %234 = vperm.xlu0 %4540, %v60_v41   ;;  %3940 = vmatprep.subr.mxu1 %v897_v48 }
  0x3c   :  { %129 = vperm.xlu1 %4543, %v60_v41   ;;  %3877 = vmatpush3.msra.mxu0 %v4883_v61 }
  0x3d   :  { %3941 = vmatpush3.msra.mxu1 %v897_v48  ;;  %3878 = vmatprep.subr.mxu0 %v4900_v4 }
  0x3e   :  { %3879 = vmatpush3.msra.mxu0 %v4900_v4  ;;  %4022 = vmatprep.subr.mxu1 %v4747_v7 }
  0x3f   :  { %238 = vperm.xlu0 %4540, %v61_v50   ;;  %3880 = vmatprep.subr.mxu0 %v4914_v17 }
  0x40   :  { %134 = vperm.xlu1 %4543, %v61_v50   ;;  %3881 = vmatpush3.msra.mxu0 %v4914_v17 }
  0x41   :  { %3882 = vmatprep.subr.mxu0 %v4931_v38 }
  0x42   :  { %3883 = vmatpush3.msra.mxu0 %v4931_v38 }
  0x43   :  { %242 = vperm.xlu0 %4540, %v62_v57   ;;  %3884 = vmatprep.subr.mxu0 %v4942_v44 }
  0x44   :  { %139 = vperm.xlu1 %4543, %v62_v57   ;;  %3885 = vmatpush3.msra.mxu0 %v4942_v44  ;;  %v5035_v57 = vrot.slane %v76_v25, %v259_v34 }
  0x45   :  { %3966 = vmatprep.subr.mxu0 %v4772_v18 }
  0x47   :  { %246 = vperm.xlu0 %4540, %v63_v58  }
  0x48   :  { %144 = vperm.xlu1 %4543, %v63_v58   ;;  %v5037_v58 = vrot.slane %v375_v22, %v259_v34 }
  0x4b   :  { %250 = vperm.xlu0 %4540, %v64_v0  }
  0x4c   :  { %149 = vperm.xlu1 %4543, %v64_v0  }
  0x4f   :  { %254 = vperm.xlu0 %4540, %v65_v1  }
  0x50   :  { %154 = vperm.xlu1 %4543, %v65_v1  }
  0x58   :  { %s4527_s1 = spop %4526 }
  0x59   :  { %s70_s3 = smul.f32 -0.5, %s4527_s1  ;;  %s5578_s12 = spop %4528 }
  0x5a   :  { %s75_s15 = smul.f32 -0.5, %s5578_s12  ;;  %s4675_s12 = smov [#allocation5]  }
  0x5b   :  { %s3433_s13 = sshll.u32 %s4675_s12, 4  ;;  %s3434_s13 = int_to_ptr.vmem [resolvable:$true] %s3433_s13 }
  0x5c   :  { %s4624_s16 = scalar_lea.vmem %s3434_s13, 2048  ;;  %p4629_p6 = scmp.lt.s32.totalorder %s3434_s13, %s3434_s13 }
  0x5d   :  { %p4625_p5 = scmp.ne.s32.totalorder %s3434_s13, %s4624_s16  ;;  %p4630_p7 = scmp.lt.s32.totalorder %s4624_s16, %s4624_s16 }
  0x5f   :  { %p4631_p8 = por %p4630_p7, %p4629_p6 }
  0x61   :  { %p4632_p9 = pnand %p4631_p8, %p4625_p5 }
  0x8d   :  { %v85_v41 = vpop.permute.xlu1 %84  ;;  %v80_v47 = vpop.permute.xlu0 %79 }
  0x8e   :  { %v381_v48 = vsub.f32 %v85_v41, %v5029_v29  ;;  %v380_v50 = vsub.f32 %v80_v47, %v5029_v29  ;;  %v162_v0 = vsub.f32 %v85_v41, %v5031_v40  ;;  %v161_v1 = vsub.f32 %v80_v47, %v5031_v40 }
  0x8f   :  { %v5045_v47 = vstv %s70_s3 }
  0x90   :  { %v178_v25 = vmul.f32 %v162_v0, %v162_v0  ;;  %v397_v51 = vmul.f32 %v381_v48, %v381_v48  ;;  %v177_v22 = vmul.f32 %v161_v1, %v161_v1  ;;  %v396_v34 = vmul.f32 %v380_v50, %v380_v50 }
  0x92   :  { %v199_v5 = vpop.permute.xlu1 %198  ;;  %v195_v21 = vpop.permute.xlu0 %194 }
  0x93   :  { %v262_v10 = vsub.f32 %v199_v5, %v5035_v57  ;;  %v417_v11 = vsub.f32 %v199_v5, %v5037_v58  ;;  %v261_v6 = vsub.f32 %v195_v21, %v5035_v57  ;;  %v416_v62 = vsub.f32 %v195_v21, %v5037_v58 }
  0x95   :  { %v278_v42 = vmul.f32 %v262_v10, %v262_v10  ;;  %v433_v35 = vmul.f32 %v417_v11, %v417_v11  ;;  %v277_v41 = vmul.f32 %v261_v6, %v261_v6  ;;  %v432_v12 = vmul.f32 %v416_v62, %v416_v62 }
  0x96   :  { %v203_v2 = vpop.permute.xlu0 %202 }
  0x97   :  { %v294_v56 = vadd.f32 %v278_v42, %v178_v25  ;;  %v5047_v49 = vadd.f32 %v433_v35, %v397_v51  ;;  %v293_v45 = vadd.f32 %v277_v41, %v177_v22  ;;  %v5049_v5 = vadd.f32 %v432_v12, %v396_v34  ;;  %v90_v31 = vpop.permute.xlu1 %89 }
  0x98   :  { %v263_v21 = vsub.f32 %v203_v2, %v5035_v57  ;;  %v418_v48 = vsub.f32 %v203_v2, %v5037_v58  ;;  %v163_v50 = vsub.f32 %v90_v31, %v5031_v40  ;;  %v382_v0 = vsub.f32 %v90_v31, %v5029_v29 }
  0x99   :  { %7076 = vst [vmem:[#allocation30_spill] sm:$0xff] %v5047_v49  ;;  %7077 = vst [vmem:[#allocation31_spill] sm:$0xff] %v5049_v5  ;;  %v310_v62 = vmul.f32 %v5045_v47, %v293_v45  ;;  %v311_v25 = vmul.f32 %v5045_v47, %v294_v56 }
  0x9a   :  { %v279_v6 = vmul.f32 %v263_v21, %v263_v21  ;;  %v434_v1 = vmul.f32 %v418_v48, %v418_v48  ;;  %v179_v10 = vmul.f32 %v163_v50, %v163_v50  ;;  %v398_v42 = vmul.f32 %v382_v0, %v382_v0  ;;  %v207_v35 = vpop.permute.xlu0 %206 }
  0x9b   :  { %v264_v51 = vsub.f32 %v207_v35, %v5035_v57  ;;  %v419_v12 = vsub.f32 %v207_v35, %v5037_v58  ;;  %v95_v11 = vpop.permute.xlu1 %94  ;;  %v326_v0 = vmul.f32 1.442695, %v310_v62 }
  0x9c   :  { %v295_v22 = vadd.f32 %v279_v6, %v179_v10  ;;  %v5059_v2 = vadd.f32 %v434_v1, %v398_v42  ;;  %v164_v34 = vsub.f32 %v95_v11, %v5031_v40  ;;  %v383_v31 = vsub.f32 %v95_v11, %v5029_v29 }
  0x9d   :  { %v280_v45 = vmul.f32 %v264_v51, %v264_v51  ;;  %v435_v41 = vmul.f32 %v419_v12, %v419_v12  ;;  %v328_v1 = vmul.f32 1.442695, %v311_v25  ;;  %4548 = vpow2.f32 %v326_v0 }
  0x9e   :  { %7078 = vst [vmem:[#allocation32_spill] sm:$0xff] %v5059_v2  ;;  %v180_v21 = vmul.f32 %v164_v34, %v164_v34  ;;  %v399_v48 = vmul.f32 %v383_v31, %v383_v31  ;;  %v211_v50 = vpop.permute.xlu0 %210  ;;  %v312_v56 = vmul.f32 %v5045_v47, %v295_v22 }
  0x9f   :  { %v265_v49 = vsub.f32 %v211_v50, %v5035_v57  ;;  %v420_v35 = vsub.f32 %v211_v50, %v5037_v58  ;;  %v100_v5 = vpop.permute.xlu1 %99  ;;  %4550 = vpow2.f32 %v328_v1 }
  0xa0   :  { %v5066_v6 = vadd.f32 %v435_v41, %v399_v48  ;;  %v296_v10 = vadd.f32 %v280_v45, %v180_v21  ;;  %v165_v11 = vsub.f32 %v100_v5, %v5031_v40  ;;  %v384_v51 = vsub.f32 %v100_v5, %v5029_v29 }
  0xa1   :  { %v436_v42 = vmul.f32 %v420_v35, %v420_v35  ;;  %v281_v34 = vmul.f32 %v265_v49, %v265_v49  ;;  %v330_v30 = vmul.f32 1.442695, %v312_v56 }
  0xa2   :  { %7079 = vst [vmem:[#allocation33_spill] sm:$0xff] %v5066_v6  ;;  %v215_v12 = vpop.permute.xlu0 %214  ;;  %v181_v62 = vmul.f32 %v165_v11, %v165_v11  ;;  %v400_v31 = vmul.f32 %v384_v51, %v384_v51  ;;  %v313_v25 = vmul.f32 %v5045_v47, %v296_v10 }
  0xa3   :  { %v266_v2 = vsub.f32 %v215_v12, %v5035_v57  ;;  %v105_v50 = vpop.permute.xlu1 %104  ;;  %v421_v22 = vsub.f32 %v215_v12, %v5037_v58  ;;  %4552 = vpow2.f32 %v330_v30 }
  0xa4   :  { %v166_v41 = vsub.f32 %v105_v50, %v5031_v40  ;;  %v5074_v45 = vadd.f32 %v436_v42, %v400_v31  ;;  %v385_v5 = vsub.f32 %v105_v50, %v5029_v29  ;;  %v297_v48 = vadd.f32 %v281_v34, %v181_v62 }
  0xa5   :  { %v437_v21 = vmul.f32 %v421_v22, %v421_v22  ;;  %v282_v0 = vmul.f32 %v266_v2, %v266_v2  ;;  %v332_v12 = vmul.f32 1.442695, %v313_v25 }
  0xa6   :  { %7080 = vst [vmem:[#allocation34_spill] sm:$0xff] %v5074_v45  ;;  %v219_v49 = vpop.permute.xlu0 %218  ;;  %v182_v35 = vmul.f32 %v166_v41, %v166_v41  ;;  %v401_v11 = vmul.f32 %v385_v5, %v385_v5  ;;  %v314_v34 = vmul.f32 %v5045_v47, %v297_v48 }
  0xa7   :  { %v110_v51 = vpop.permute.xlu1 %109  ;;  %v422_v56 = vsub.f32 %v219_v49, %v5037_v58  ;;  %v267_v10 = vsub.f32 %v219_v49, %v5035_v57  ;;  %4554 = vpow2.f32 %v332_v12 }
  0xa8   :  { %v5078_v6 = vadd.f32 %v437_v21, %v401_v11  ;;  %v386_v1 = vsub.f32 %v110_v51, %v5029_v29  ;;  %v167_v31 = vsub.f32 %v110_v51, %v5031_v40  ;;  %v298_v2 = vadd.f32 %v282_v0, %v182_v35 }
  0xa9   :  { %v438_v42 = vmul.f32 %v422_v56, %v422_v56  ;;  %v5089_v21 = vstv %s3465_s5  ;;  %v283_v49 = vmul.f32 %v267_v10, %v267_v10  ;;  %v334_v35 = vmul.f32 1.442695, %v314_v34 }
  0xaa   :  { %7081 = vst [vmem:[#allocation35_spill] sm:$0xff] %v5078_v6  ;;  %v223_v50 = vpop.permute.xlu0 %222  ;;  %v402_v62 = vmul.f32 %v386_v1, %v386_v1  ;;  %v183_v11 = vmul.f32 %v167_v31, %v167_v31  ;;  %v4549_v0 = vpop.eup %4548  ;;  %v315_v1 = vmul.f32 %v5045_v47, %v298_v2 }
  0xab   :  { %v268_v22 = vsub.f32 %v223_v50, %v5035_v57  ;;  %v115_v30 = vpop.permute.xlu1 %114  ;;  %v423_v41 = vsub.f32 %v223_v50, %v5037_v58  ;;  %v359_v26 = vmul.f32 %v4549_v0, %v5089_v21  ;;  %4556 = vpow2.f32 %v334_v35 }
  0xac   :  { %v5086_v25 = vadd.f32 %v438_v42, %v402_v62  ;;  %v168_v5 = vsub.f32 %v115_v30, %v5031_v40  ;;  %v387_v56 = vsub.f32 %v115_v30, %v5029_v29  ;;  %v4551_v10 = vpop.eup %4550 }
  0xad   :  { %v439_v51 = vmul.f32 %v423_v41, %v423_v41  ;;  %v284_v6 = vmul.f32 %v268_v22, %v268_v22  ;;  %v299_v41 = vadd.f32 %v283_v49, %v183_v11 }
  0xae   :  { %7082 = vst [vmem:[#allocation36_spill] sm:$0xff] %v5086_v25  ;;  %v227_v48 = vpop.permute.xlu0 %226  ;;  %v184_v42 = vmul.f32 %v168_v5, %v168_v5  ;;  %v403_v62 = vmul.f32 %v387_v56, %v387_v56  ;;  %v336_v5 = vmul.f32 1.442695, %v315_v1 }
  0xaf   :  { %v269_v50 = vsub.f32 %v227_v48, %v5035_v57  ;;  %v120_v12 = vpop.permute.xlu1 %119  ;;  %v424_v25 = vsub.f32 %v227_v48, %v5037_v58  ;;  %v360_v48 = vmul.f32 %v4551_v10, %v5089_v21 }
  0xb0   :  { %v169_v45 = vsub.f32 %v120_v12, %v5031_v40  ;;  %v388_v31 = vsub.f32 %v120_v12, %v5029_v29  ;;  %v5097_v30 = vadd.f32 %v439_v51, %v403_v62  ;;  %v300_v56 = vadd.f32 %v284_v6, %v184_v42  ;;  %v4553_v55 = vpop.eup %4552 }
  0xb1   :  { %v440_v28 = vmul.f32 %v424_v25, %v424_v25  ;;  %v285_v27 = vmul.f32 %v269_v50, %v269_v50  ;;  %v5103_v12 = vand.u32 4294901760, %v359_v26  ;;  %v5107_v11 = vand.u32 4294901760, %v360_v48 }
  0xb2   :  { %7083 = vst [vmem:[#allocation37_spill] sm:$0xff] %v5097_v30  ;;  %v231_v34 = vpop.permute.xlu0 %230  ;;  %v185_v2 = vmul.f32 %v169_v45, %v169_v45  ;;  %v404_v22 = vmul.f32 %v388_v31, %v388_v31  ;;  %v316_v51 = vmul.f32 %v5045_v47, %v299_v41  ;;  %4558 = vpow2.f32 %v336_v5 }
  0xb3   :  { %v125_v63 = vpop.permute.xlu1 %124  ;;  %v270_v49 = vsub.f32 %v231_v34, %v5035_v57  ;;  %v425_v25 = vsub.f32 %v231_v34, %v5037_v58  ;;  %3942 = vmatprep.mubr.f32.mxu1 %v5103_v12  ;;  %v5115_v50 = vmul.f32 %v4553_v55, %v5089_v21  ;;  %v317_v42 = vmul.f32 %v5045_v47, %v300_v56 }
  0xb4   :  { %v5101_v43 = vadd.f32 %v440_v28, %v404_v22  ;;  %v301_v0 = vadd.f32 %v285_v27, %v185_v2  ;;  %v170_v6 = vsub.f32 %v125_v63, %v5031_v40  ;;  %3943 = vmatmul.mubr.f32.vlgmr.msra.gmra.mxu1 %v5107_v11  ;;  %v389_v1 = vsub.f32 %v125_v63, %v5029_v29  ;;  %v4555_v31 = vpop.eup %4554 }
  0xb5   :  { %v441_v28 = vmul.f32 %v425_v25, %v425_v25  ;;  %v286_v62 = vmul.f32 %v270_v49, %v270_v49  ;;  %4023 = vmatpush3.msra.mxu1 %v4747_v7  ;;  %v5122_v2 = vand.u32 4294901760, %v5115_v50  ;;  %v338_v55 = vmul.f32 1.442695, %v316_v51 }
  0xb6   :  { %7084 = vst [vmem:[#allocation38_spill] sm:$0xff] %v5101_v43  ;;  %v235_v45 = vpop.permute.xlu0 %234  ;;  %v186_v41 = vmul.f32 %v170_v6, %v170_v6  ;;  %v405_v34 = vmul.f32 %v389_v1, %v389_v1  ;;  %4024 = vmatprep.subr.mxu1 %v4749_v8  ;;  %v318_v5 = vmul.f32 %v5045_v47, %v301_v0 }
  0xb7   :  { %v130_v35 = vpop.permute.xlu1 %129  ;;  %v271_v10 = vsub.f32 %v235_v45, %v5035_v57  ;;  %v426_v27 = vsub.f32 %v235_v45, %v5037_v58  ;;  %4025 = vmatpush3.msra.mxu1 %v4749_v8  ;;  %3945 = vmatprep.mubr.f32.mxu1 %v5122_v2  ;;  %v5133_v1 = vsub.f32 %v359_v26, %v5103_v12  ;;  %4560 = vpow2.f32 %v338_v55 }
  0xb8   :  { %v171_v63 = vsub.f32 %v130_v35, %v5031_v40  ;;  %v5128_v25 = vadd.f32 %v441_v28, %v405_v34  ;;  %v390_v6 = vsub.f32 %v130_v35, %v5029_v29  ;;  %v5136_v30 = vsub.f32 %v360_v48, %v5107_v11  ;;  %4026 = vmatprep.subr.mxu1 %v4751_v9 }
  0xb9   :  { %v287_v56 = vmul.f32 %v271_v10, %v271_v10  ;;  %v442_v49 = vmul.f32 %v426_v27, %v426_v27  ;;  %v5139_v51 = vmul.f32 %v4555_v31, %v5089_v21  ;;  %v340_v28 = vmul.f32 1.442695, %v317_v42  ;;  %4027 = vmatpush3.msra.mxu1 %v4751_v9 }
  0xba   :  { %v239_v22 = vpop.permute.xlu0 %238  ;;  %7085 = vst [vmem:[#allocation39_spill] sm:$0xff] %v5128_v25  ;;  %v187_v45 = vmul.f32 %v171_v63, %v171_v63  ;;  %v302_v10 = vadd.f32 %v286_v62, %v186_v41  ;;  %v406_v27 = vmul.f32 %v390_v6, %v390_v6  ;;  %v6997_v34 = vand.u32 4294901760, %v5133_v1  ;;  %4028 = vmatprep.subr.mxu1 %v4765_v14  ;;  %v4557_v41 = vpop.eup %4556 }
  0xbb   :  { %v135_v43 = vpop.permute.xlu1 %134  ;;  %v272_v0 = vsub.f32 %v239_v22, %v5035_v57  ;;  %v342_v26 = vmul.f32 1.442695, %v318_v5  ;;  %v6998_v35 = vand.u32 4294901760, %v5136_v30  ;;  %v5147_v48 = vand.u32 4294901760, %v5139_v51  ;;  %4029 = vmatpush3.msra.mxu1 %v4765_v14 }
  0xbc   :  { %v303_v63 = vadd.f32 %v287_v56, %v187_v45  ;;  %v5150_v25 = vadd.f32 %v442_v49, %v406_v27  ;;  %v630_v42 = vsub.f32 %v5133_v1, %v6997_v34  ;;  %v427_v5 = vsub.f32 %v239_v22, %v5037_v58  ;;  %4030 = vmatprep.subr.mxu1 %v4767_v15 }
  0xbd   :  { %v288_v62 = vmul.f32 %v272_v0, %v272_v0  ;;  %v640_v55 = vsub.f32 %v5136_v30, %v6998_v35  ;;  %3946 = vmatmul.mubr.f32.gmra.mxu1 %v5147_v48  ;;  %v172_v56 = vsub.f32 %v135_v43, %v5031_v40  ;;  %4562 = vpow2.f32 %v340_v28 }
  0xbe   :  { %v243_v31 = vpop.permute.xlu0 %242  ;;  %7086 = vst [vmem:[#allocation40_spill] sm:$0xff] %v5150_v25  ;;  %v319_v49 = vmul.f32 %v5045_v47, %v302_v10  ;;  %v631_v45 = vand.u32 4294901760, %v630_v42  ;;  %4031 = vmatpush3.msra.mxu1 %v4767_v15  ;;  %v443_v27 = vmul.f32 %v427_v5, %v427_v5  ;;  %v391_v35 = vsub.f32 %v135_v43, %v5029_v29 }
  0xbf   :  { %v140_v6 = vpop.permute.xlu1 %139  ;;  %v641_v0 = vand.u32 4294901760, %v640_v55  ;;  %v188_v34 = vmul.f32 %v172_v56, %v172_v56  ;;  %4032 = vmatprep.subr.mxu1 %v4769_v16  ;;  %4564 = vpow2.f32 %v342_v26  ;;  %v320_v22 = vmul.f32 %v5045_v47, %v303_v63  ;;  %v4559_v42 = vpop.eup %4558 }
  0xc0   :  { %3886 = vmatprep.mubr.f32.mxu0 %v631_v45  ;;  %v5170_v28 = vsub.f32 %v5115_v50, %v5122_v2  ;;  %v363_v10 = vmul.f32 %v4557_v41, %v5089_v21  ;;  %4033 = vmatpush3.msra.mxu1 %v4769_v16  ;;  %v407_v5 = vmul.f32 %v391_v35, %v391_v35  ;;  %v344_v25 = vmul.f32 1.442695, %v319_v49 }
  0xc1   :  { %3887 = vmatmul.mubr.f32.vlgmr.msra.gmra.mxu0 %v641_v0  ;;  %v304_v55 = vadd.f32 %v288_v62, %v188_v34  ;;  %v273_v43 = vsub.f32 %v243_v31, %v5035_v57  ;;  %v428_v56 = vsub.f32 %v243_v31, %v5037_v58  ;;  %v173_v50 = vsub.f32 %v140_v6, %v5031_v40 }
  0xc2   :  { %v247_v26 = vpop.permute.xlu0 %246  ;;  %v6999_v63 = vand.u32 4294901760, %v5170_v28  ;;  %v5177_v45 = vand.u32 4294901760, %v363_v10  ;;  %3967 = vmatpush3.msra.mxu0 %v4772_v18  ;;  %4034 = vmatprep.subr.mxu1 %v4816_v33  ;;  %v5183_v34 = vadd.f32 %v443_v27, %v407_v5  ;;  %v392_v0 = vsub.f32 %v140_v6, %v5029_v29 }
  0xc3   :  { %v321_v41 = vmul.f32 %v5045_v47, %v304_v55  ;;  %v289_v35 = vmul.f32 %v273_v43, %v273_v43  ;;  %v444_v62 = vmul.f32 %v428_v56, %v428_v56  ;;  %3968 = vmatprep.subr.mxu0 %v4775_v19  ;;  %v189_v49 = vmul.f32 %v173_v50, %v173_v50  ;;  %v145_v55 = vpop.permute.xlu1 %144 }
  0xc4   :  { %7087 = vst [vmem:[#allocation41_spill] sm:$0xff] %v5183_v34  ;;  %v650_v31 = vsub.f32 %v5170_v28, %v6999_v63  ;;  %3948 = vmatprep.mubr.f32.mxu1 %v5177_v45  ;;  %v5193_v18 = vsub.f32 %v5139_v51, %v5147_v48  ;;  %v346_v27 = vmul.f32 1.442695, %v320_v22  ;;  %v5196_v43 = vmul.f32 %v4559_v42, %v5089_v21 }
  0xc5   :  { %v348_v5 = vmul.f32 1.442695, %v321_v41  ;;  %v274_v56 = vsub.f32 %v247_v26, %v5035_v57  ;;  %3969 = vmatpush3.msra.mxu0 %v4775_v19  ;;  %4035 = vmatpush3.msra.mxu1 %v4816_v33  ;;  %v305_v50 = vadd.f32 %v289_v35, %v189_v49  ;;  %v408_v34 = vmul.f32 %v392_v0, %v392_v0  ;;  %v4561_v19 = vpop.eup %4560 }
  0xc6   :  { %v651_v63 = vand.u32 4294901760, %v650_v31  ;;  %v7000_v6 = vand.u32 4294901760, %v5193_v18  ;;  %3970 = vmatprep.subr.mxu0 %v4778_v20  ;;  %4036 = vmatprep.subr.mxu1 %v4825_v37  ;;  %4566 = vpow2.f32 %v344_v25  ;;  %v5205_v51 = vand.u32 4294901760, %v5196_v43  ;;  %v251_v42 = vpop.permute.xlu0 %250 }
  0xc7   :  { %v290_v22 = vmul.f32 %v274_v56, %v274_v56  ;;  %3971 = vmatpush3.msra.mxu0 %v4778_v20  ;;  %4037 = vmatpush3.msra.mxu1 %v4825_v37  ;;  %v322_v41 = vmul.f32 %v5045_v47, %v305_v50  ;;  %v5210_v35 = vadd.f32 %v444_v62, %v408_v34  ;;  %4568 = vpow2.f32 %v346_v27  ;;  %v150_v56 = vpop.permute.xlu1 %149 }
  0xc8   :  { %3889 = vmatprep.mubr.f32.mxu0 %v651_v63  ;;  %v660_v31 = vsub.f32 %v5193_v18, %v7000_v6  ;;  %v429_v25 = vsub.f32 %v247_v26, %v5037_v58  ;;  %3949 = vmatmul.mubr.f32.gmra.mxu1 %v5205_v51  ;;  %v174_v49 = vsub.f32 %v145_v55, %v5031_v40  ;;  %4570 = vpow2.f32 %v348_v5 }
  0xc9   :  { %v393_v20 = vsub.f32 %v145_v55, %v5029_v29  ;;  %v5220_v0 = vsub.f32 %v363_v10, %v5177_v45  ;;  %3972 = vmatprep.subr.mxu0 %v4785_v23  ;;  %v350_v63 = vmul.f32 1.442695, %v322_v41  ;;  %4038 = vmatprep.subr.mxu1 %v4862_v52  ;;  %v365_v55 = vmul.f32 %v4561_v19, %v5089_v21 }
  0xca   :  { %v661_v34 = vand.u32 4294901760, %v660_v31  ;;  %v445_v62 = vmul.f32 %v429_v25, %v429_v25  ;;  %3973 = vmatpush3.msra.mxu0 %v4785_v23  ;;  %v4563_v26 = vpop.eup %4562  ;;  %v190_v27 = vmul.f32 %v174_v49, %v174_v49  ;;  %4039 = vmatpush3.msra.mxu1 %v4862_v52  ;;  %v275_v10 = vsub.f32 %v251_v42, %v5035_v57  ;;  %v255_v49 = vpop.permute.xlu0 %254 }
  0xcb   :  { %v409_v50 = vmul.f32 %v393_v20, %v393_v20  ;;  %v7001_v6 = vand.u32 4294901760, %v5220_v0  ;;  %3974 = vmatprep.subr.mxu0 %v4788_v24  ;;  %4572 = vpow2.f32 %v350_v63  ;;  %v430_v5 = vsub.f32 %v251_v42, %v5037_v58  ;;  %4040 = vmatprep.subr.mxu1 %v4864_v53 }
  0xcc   :  { %3890 = vmatmul.mubr.f32.gmra.mxu0 %v661_v34  ;;  %v4565_v23 = vpop.eup %4564  ;;  %v306_v41 = vadd.f32 %v290_v22, %v190_v27  ;;  %v5237_v25 = vand.u32 4294901760, %v365_v55  ;;  %4041 = vmatpush3.msra.mxu1 %v4864_v53  ;;  %v291_v20 = vmul.f32 %v275_v10, %v275_v10  ;;  %v175_v42 = vsub.f32 %v150_v56, %v5031_v40 }
  0xcd   :  { %v5232_v31 = vadd.f32 %v445_v62, %v409_v50  ;;  %v670_v19 = vsub.f32 %v5220_v0, %v7001_v6  ;;  %3975 = vmatpush3.msra.mxu0 %v4788_v24  ;;  %4042 = vmatprep.subr.mxu1 %v4866_v54  ;;  %v446_v34 = vmul.f32 %v430_v5, %v430_v5  ;;  %v155_v6 = vpop.permute.xlu1 %154 }
  0xce   :  { %3976 = vmatprep.subr.mxu0 %v4814_v32  ;;  %v323_v22 = vmul.f32 %v5045_v47, %v306_v41  ;;  %3951 = vmatprep.mubr.f32.mxu1 %v5237_v25  ;;  %v394_v62 = vsub.f32 %v150_v56, %v5029_v29  ;;  %v191_v24 = vmul.f32 %v175_v42, %v175_v42 }
  0xcf   :  { %v671_v63 = vand.u32 4294901760, %v670_v19  ;;  %3977 = vmatpush3.msra.mxu0 %v4814_v32  ;;  %v5250_v27 = vsub.f32 %v5196_v43, %v5205_v51  ;;  %v366_v50 = vmul.f32 %v4563_v26, %v5089_v21  ;;  %v276_v10 = vsub.f32 %v255_v49, %v5035_v57  ;;  %4043 = vmatpush3.msra.mxu1 %v4866_v54 }
  0xd0   :  { %3978 = vmatprep.subr.mxu0 %v4831_v39  ;;  %v352_v41 = vmul.f32 1.442695, %v323_v22  ;;  %v410_v19 = vmul.f32 %v394_v62, %v394_v62  ;;  %v431_v5 = vsub.f32 %v255_v49, %v5037_v58  ;;  %v307_v32 = vadd.f32 %v291_v20, %v191_v24  ;;  %4044 = vmatprep.subr.mxu1 %v4883_v61 }
  0xd1   :  { %3892 = vmatprep.mubr.f32.mxu0 %v671_v63  ;;  %3979 = vmatpush3.msra.mxu0 %v4831_v39  ;;  %v679_v56 = vand.u32 4294901760, %v5250_v27  ;;  %v5258_v42 = vand.u32 4294901760, %v366_v50  ;;  %v292_v43 = vmul.f32 %v276_v10, %v276_v10  ;;  %v176_v22 = vsub.f32 %v155_v6, %v5031_v40 }
  0xd2   :  { %3980 = vmatprep.subr.mxu0 %v4847_v46  ;;  %4574 = vpow2.f32 %v352_v41  ;;  %v5262_v57 = vadd.f32 %v446_v34, %v410_v19  ;;  %v447_v26 = vmul.f32 %v431_v5, %v431_v5  ;;  %v324_v58 = vmul.f32 %v5045_v47, %v307_v32  ;;  %4045 = vmatpush3.msra.mxu1 %v4883_v61 }
  0xd3   :  { %3981 = vmatpush3.msra.mxu0 %v4847_v46  ;;  %v4567_v39 = vpop.eup %4566  ;;  %v680_v49 = vsub.f32 %v5250_v27, %v679_v56  ;;  %3952 = vmatmul.mubr.f32.gmra.mxu1 %v5258_v42  ;;  %v395_v20 = vsub.f32 %v155_v6, %v5029_v29  ;;  %v192_v63 = vmul.f32 %v176_v22, %v176_v22 }
  0xd4   :  { %3982 = vmatprep.subr.mxu0 %v4878_v59  ;;  %v5275_v40 = vsub.f32 %v365_v55, %v5237_v25  ;;  %v367_v46 = vmul.f32 %v4565_v23, %v5089_v21  ;;  %v4569_v34 = vpop.eup %4568  ;;  %v354_v62 = vmul.f32 1.442695, %v324_v58  ;;  %v5280_v41 = vsub.f32 %v366_v50, %v5258_v42  ;;  %4046 = vmatprep.subr.mxu1 %v4900_v4 }
  0xd5   :  { %v681_v24 = vand.u32 4294901760, %v680_v49  ;;  %v411_v10 = vmul.f32 %v395_v20, %v395_v20  ;;  %3983 = vmatpush3.msra.mxu0 %v4878_v59  ;;  %v4571_v29 = vpop.eup %4570  ;;  %v308_v6 = vadd.f32 %v292_v43, %v192_v63  ;;  %4047 = vmatpush3.msra.mxu1 %v4900_v4  ;;  %v368_v59 = vmul.f32 %v4567_v39, %v5089_v21 }
  0xd6   :  { %v689_v55 = vand.u32 4294901760, %v5275_v40  ;;  %v5285_v19 = vand.u32 4294901760, %v367_v46  ;;  %3984 = vmatprep.subr.mxu0 %v4881_v60  ;;  %4576 = vpow2.f32 %v354_v62  ;;  %v7006_v50 = vand.u32 4294901760, %v5280_v41  ;;  %4048 = vmatprep.subr.mxu1 %v4914_v17 }
  0xd7   :  { %3893 = vmatmul.mubr.f32.gmra.mxu0 %v681_v24  ;;  %v5289_v23 = vadd.f32 %v447_v26, %v411_v10  ;;  %v325_v32 = vmul.f32 %v5045_v47, %v308_v6  ;;  %v5306_v39 = vand.u32 4294901760, %v368_v59  ;;  %v369_v58 = vmul.f32 %v4569_v34, %v5089_v21  ;;  %4049 = vmatpush3.msra.mxu1 %v4914_v17 }
  0xd8   :  { %v4573_v5 = vpop.eup %4572  ;;  %v690_v43 = vsub.f32 %v5275_v40, %v689_v55  ;;  %3954 = vmatprep.mubr.f32.mxu1 %v5285_v19  ;;  %v5300_v22 = vsub.f32 %v367_v46, %v5285_v19  ;;  %3985 = vmatpush3.msra.mxu0 %v4881_v60  ;;  %v700_v26 = vsub.f32 %v5280_v41, %v7006_v50  ;;  %v7090_v50 = vld [vmem:[#allocation27_spill] sm:$0xff] }
  0xd9   :  { %3986 = vmatprep.subr.mxu0 %v4898_v3  ;;  %v356_v47 = vmul.f32 1.442695, %v325_v32  ;;  %v370_v63 = vmul.f32 %v4571_v29, %v5089_v21  ;;  %4050 = vmatprep.subr.mxu1 %v4931_v38  ;;  %v5316_v46 = vand.u32 4294901760, %v369_v58  ;;  %v5319_v34 = vsub.f32 %v368_v59, %v5306_v39 }
  0xda   :  { %v691_v49 = vand.u32 4294901760, %v690_v43  ;;  %v7005_v20 = vand.u32 4294901760, %v5300_v22  ;;  %3987 = vmatpush3.msra.mxu0 %v4898_v3  ;;  %v701_v60 = vand.u32 4294901760, %v700_v26  ;;  %3955 = vmatmul.mubr.f32.gmra.mxu1 %v5306_v39  ;;  %v371_v3 = vmul.f32 %v4573_v5, %v5089_v21 }
  0xdb   :  { %3988 = vmatprep.subr.mxu0 %v4912_v13  ;;  %4578 = vpow2.f32 %v356_v47  ;;  %v5325_v24 = vand.u32 4294901760, %v370_v63  ;;  %4051 = vmatpush3.msra.mxu1 %v4931_v38  ;;  %v7004_v10 = vand.u32 4294901760, %v5319_v34  ;;  %v5332_v29 = vsub.f32 %v369_v58, %v5316_v46 }
  0xdc   :  { %3895 = vmatprep.mubr.f32.mxu0 %v691_v49  ;;  %v710_v62 = vsub.f32 %v5300_v22, %v7005_v20  ;;  %3957 = vmatprep.mubr.f32.mxu1 %v5316_v46  ;;  %v5334_v59 = vand.u32 4294901760, %v371_v3  ;;  %v7089_v20 = vld [vmem:[#allocation25_spill] sm:$0xff] }
  0xdd   :  { %3896 = vmatmul.mubr.f32.gmra.mxu0 %v701_v60  ;;  %v5337_v32 = vsub.f32 %v370_v63, %v5325_v24  ;;  %4052 = vmatprep.subr.mxu1 %v4942_v44  ;;  %v720_v43 = vsub.f32 %v5319_v34, %v7004_v10  ;;  %v7002_v26 = vand.u32 4294901760, %v5332_v29 }
  0xde   :  { %v711_v6 = vand.u32 4294901760, %v710_v62  ;;  %3989 = vmatpush3.msra.mxu0 %v4912_v13  ;;  %3958 = vmatmul.mubr.f32.gmra.mxu1 %v5325_v24  ;;  %v5351_v47 = vsub.f32 %v371_v3, %v5334_v59  ;;  %v7088_v3 = vld [vmem:[#allocation23_spill] sm:$0xff] }
  0xdf   :  { %v4575_v5 = vpop.eup %4574  ;;  %3990 = vmatprep.subr.mxu0 %v4929_v36  ;;  %3960 = vmatprep.mubr.f32.mxu1 %v5334_v59  ;;  %v7003_v58 = vand.u32 4294901760, %v5337_v32  ;;  %v721_v49 = vand.u32 4294901760, %v720_v43  ;;  %v730_v63 = vsub.f32 %v5332_v29, %v7002_v26 }
  0xe0   :  { %3898 = vmatprep.mubr.f32.mxu0 %v711_v6  ;;  %v372_v13 = vmul.f32 %v4575_v5, %v5089_v21  ;;  %4053 = vmatpush3.msra.mxu1 %v4942_v44  ;;  %v749_v6 = vand.u32 4294901760, %v5351_v47 }
  0xe1   :  { %3991 = vmatpush3.msra.mxu0 %v4929_v36  ;;  %v740_v60 = vsub.f32 %v5337_v32, %v7003_v58  ;;  %4134 = vmatprep.subr.mxu1 %v4747_v7  ;;  %v731_v5 = vand.u32 4294901760, %v730_v63 }
  0xe2   :  { %v5361_v62 = vand.u32 4294901760, %v372_v13  ;;  %3992 = vmatprep.subr.mxu0 %v7088_v3  ;;  %3899 = vmatmul.mubr.f32.gmra.mxu0 %v721_v49  ;;  %v750_v36 = vsub.f32 %v5351_v47, %v749_v6 }
  0xe3   :  { %v4577_v43 = vpop.eup %4576  ;;  %v741_v26 = vand.u32 4294901760, %v740_v60  ;;  %3993 = vmatpush3.msra.mxu0 %v7088_v3  ;;  %3901 = vmatprep.mubr.f32.mxu0 %v731_v5 }
  0xe4   :  { %3961 = vmatmul.mubr.f32.gmra.mxu1 %v5361_v62  ;;  %v5371_v58 = vsub.f32 %v372_v13, %v5361_v62  ;;  %v373_v10 = vmul.f32 %v4577_v43, %v5089_v21  ;;  %3994 = vmatprep.subr.mxu0 %v7089_v20  ;;  %v751_v49 = vand.u32 4294901760, %v750_v36  ;;  %v7091_v43 = vld [vmem:[#allocation11_spill] sm:$0xff] }
  0xe5   :  { %3995 = vmatpush3.msra.mxu0 %v7089_v20 }
  0xe6   :  { %v7007_v63 = vand.u32 4294901760, %v5371_v58  ;;  %3902 = vmatmul.mubr.f32.gmra.mxu0 %v741_v26  ;;  %v5378_v60 = vand.u32 4294901760, %v373_v10  ;;  %3996 = vmatprep.subr.mxu0 %v7090_v50 }
  0xe7   :  { %3904 = vmatprep.mubr.f32.mxu0 %v751_v49  ;;  %3997 = vmatpush3.msra.mxu0 %v7090_v50 }
  0xe8   :  { %v760_v13 = vsub.f32 %v5371_v58, %v7007_v63  ;;  %v4579_v3 = vpop.eup %4578  ;;  %3963 = vmatprep.mubr.f32.mxu1 %v5378_v60  ;;  %v5387_v5 = vsub.f32 %v373_v10, %v5378_v60  ;;  %4078 = vmatprep.subr.mxu0 %v7091_v43  ;;  %v7092_v10 = vand.u32 4294901760, %v5133_v1 }
  0xe9   :  { %v374_v26 = vmul.f32 %v4579_v3, %v5089_v21  ;;  %v7093_v3 = vand.u32 4294901760, %v5136_v30 }
  0xea   :  { %v761_v20 = vand.u32 4294901760, %v760_v13  ;;  %v7008_v36 = vand.u32 4294901760, %v5387_v5 }
  0xeb   :  { %v5392_v49 = vand.u32 4294901760, %v374_v26 }
  0xec   :  { %3905 = vmatmul.mubr.f32.gmra.mxu0 %v761_v20  ;;  %v770_v50 = vsub.f32 %v5387_v5, %v7008_v36  ;;  %v7094_v36 = vand.u32 4294901760, %v5170_v28 }
  0xed   :  { %3964 = vmatmul.mubr.f32.gmra.mxu1 %v5392_v49  ;;  %v5399_v63 = vsub.f32 %v374_v26, %v5392_v49 }
  0xee   :  { %4054 = vmatprep.mubr.f32.mxu1 %v7092_v10  ;;  %v771_v13 = vand.u32 4294901760, %v770_v50  ;;  %v7095_v50 = vand.u32 4294901760, %v5193_v18  ;;  %v7096_v10 = vand.u32 4294901760, %v5220_v0 }
  0xef   :  { %v779_v21 = vand.u32 4294901760, %v5399_v63 }
  0xf0   :  { %3907 = vmatprep.mubr.f32.mxu0 %v771_v13  ;;  %v1843_v13 = vld [vmem:[%s6954_s6 + $0x58] sm:$0xff] }
  0xf1   :  { %4055 = vmatmul.mubr.f32.vlgmr.msra.gmra.mxu1 %v7093_v3  ;;  %v780_v20 = vsub.f32 %v5399_v63, %v779_v21  ;;  %v7113_v3 = vld [vmem:[#allocation21_spill] sm:$0xff] }
  0xf2   :  { %4057 = vmatprep.mubr.f32.mxu1 %v7094_v36  ;;  %4135 = vmatpush3.msra.mxu1 %v4747_v7  ;;  %v7097_v7 = vld [vmem:[#allocation12_spill] sm:$0xff] }
  0xf3   :  { %4136 = vmatprep.subr.mxu1 %v4749_v8  ;;  %v781_v26 = vand.u32 4294901760, %v780_v20 }
  0xf4   :  { %4137 = vmatpush3.msra.mxu1 %v4749_v8  ;;  %v7098_v8 = vld [vmem:[#allocation13_spill] sm:$0xff] }
  0xf5   :  { %3908 = vmatmul.mubr.f32.gmra.mxu0 %v781_v26  ;;  %4058 = vmatmul.mubr.f32.gmra.mxu1 %v7095_v50  ;;  %v1842_v50 = vld [vmem:[%s6954_s6 + $0x50] sm:$0xff] }
  0xf6   :  { %4138 = vmatprep.subr.mxu1 %v4751_v9  ;;  %3998 = vmatprep.mubr.f32.mxu0 %v5133_v1  ;;  %v7105_v1 = vld [vmem:[#allocation16_spill] sm:$0xff] }
  0xf7   :  { %4060 = vmatprep.mubr.f32.mxu1 %v7096_v10  ;;  %4139 = vmatpush3.msra.mxu1 %v4751_v9  ;;  %v7099_v9 = vand.u32 4294901760, %v5280_v41 }
  0xf8   :  { %4140 = vmatprep.subr.mxu1 %v4765_v14 }
  0xf9   :  { %4141 = vmatpush3.msra.mxu1 %v4765_v14  ;;  %3999 = vmatmul.mubr.f32.vlgmr.msra.gmra.mxu0 %v5136_v30  ;;  %v7100_v14 = vand.u32 4294901760, %v5300_v22  ;;  %v7103_v30 = vand.u32 4294901760, %v5319_v34 }
  0xfa   :  { %4061 = vmatmul.mubr.f32.gmra.mxu1 %v679_v56  ;;  %4079 = vmatpush3.msra.mxu0 %v7091_v43  ;;  %v1845_v56 = vld [vmem:[%s6954_s6 + $0x68] sm:$0xff] }
  0xfb   :  { %4142 = vmatprep.subr.mxu1 %v4767_v15  ;;  %4001 = vmatprep.mubr.f32.mxu0 %v5170_v28  ;;  %v7106_v28 = vld [vmem:[#allocation17_spill] sm:$0xff]  ;;  %v7112_v43 = vld [vmem:[#allocation20_spill] sm:$0xff] }
  0xfc   :  { %4063 = vmatprep.mubr.f32.mxu1 %v689_v55  ;;  %4080 = vmatprep.subr.mxu0 %v7097_v7  ;;  %v5496_v55 = vand.u32 4294901760, %v1845_v56 }
  0xfd   :  { %4143 = vmatpush3.msra.mxu1 %v4767_v15  ;;  %4081 = vmatpush3.msra.mxu0 %v7097_v7  ;;  %v7101_v15 = vld [vmem:[#allocation14_spill] sm:$0xff] }
  0xfe   :  { %4144 = vmatprep.subr.mxu1 %v4769_v16  ;;  %4082 = vmatprep.subr.mxu0 %v7098_v8 }
  0xff   :  { %4145 = vmatpush3.msra.mxu1 %v4769_v16  ;;  %4002 = vmatmul.mubr.f32.gmra.mxu0 %v5193_v18  ;;  %v7102_v16 = vld [vmem:[#allocation15_spill] sm:$0xff] }
 0x100   :  { %4064 = vmatmul.mubr.f32.gmra.mxu1 %v7099_v9  ;;  %4083 = vmatpush3.msra.mxu0 %v7098_v8  ;;  %v1841_v8 = vld [vmem:[%s6954_s6 + $0x48] sm:$0xff] }
 0x101   :  { %4146 = vmatprep.subr.mxu1 %v4816_v33  ;;  %4004 = vmatprep.mubr.f32.mxu0 %v5220_v0  ;;  %v1846_v0 = vld [vmem:[%s6954_s6 + $0x70] sm:$0xff] }
 0x102   :  { %4066 = vmatprep.mubr.f32.mxu1 %v7100_v14  ;;  %4084 = vmatprep.subr.mxu0 %v7101_v15 }
 0x103   :  { %4147 = vmatpush3.msra.mxu1 %v4816_v33  ;;  %4085 = vmatpush3.msra.mxu0 %v7101_v15  ;;  %v7104_v33 = vand.u32 4294901760, %v5332_v29 }
 0x104   :  { %4148 = vmatprep.subr.mxu1 %v4825_v37  ;;  %4086 = vmatprep.subr.mxu0 %v7102_v16 }
 0x105   :  { %4149 = vmatpush3.msra.mxu1 %v4825_v37  ;;  %4005 = vmatmul.mubr.f32.gmra.mxu0 %v5250_v27  ;;  %v1847_v37 = vld [vmem:[%s6954_s6 + $0x78] sm:$0xff]  ;;  %v7107_v27 = vand.u32 4294901760, %v5337_v32 }
 0x106   :  { %4067 = vmatmul.mubr.f32.gmra.mxu1 %v7103_v30  ;;  %4087 = vmatpush3.msra.mxu0 %v7102_v16  ;;  %v5469_v18 = vand.u32 4294901760, %v1847_v37  ;;  %v5573_v16 = vand.u32 4294901760, %v1841_v8  ;;  %v1840_v30 = vld [vmem:[%s6954_s6 + $0x40] sm:$0xff] }
 0x107   :  { %4150 = vmatprep.subr.mxu1 %v4862_v52  ;;  %4007 = vmatprep.mubr.f32.mxu0 %v5275_v40 }
 0x108   :  { %4069 = vmatprep.mubr.f32.mxu1 %v7104_v33  ;;  %4088 = vmatprep.subr.mxu0 %v7105_v1  ;;  %v5490_v40 = vsub.f32 %v1847_v37, %v5469_v18 }
 0x109   :  { %4151 = vmatpush3.msra.mxu1 %v4862_v52  ;;  %4089 = vmatpush3.msra.mxu0 %v7105_v1  ;;  %v7108_v52 = vld [vmem:[#allocation18_spill] sm:$0xff] }
 0x10a   :  { %4152 = vmatprep.subr.mxu1 %v4864_v53  ;;  %4090 = vmatprep.subr.mxu0 %v7106_v28  ;;  %v7119_v1 = vld [vmem:[#allocation26_spill] sm:$0xff] }
 0x10b   :  { %4153 = vmatpush3.msra.mxu1 %v4864_v53  ;;  %4008 = vmatmul.mubr.f32.gmra.mxu0 %v5280_v41  ;;  %v5482_v53 = vand.u32 4294901760, %v1846_v0  ;;  %v7109_v41 = vld [vmem:[#allocation19_spill] sm:$0xff] }
 0x10c   :  { %4070 = vmatmul.mubr.f32.gmra.mxu1 %v7107_v27  ;;  %4091 = vmatpush3.msra.mxu0 %v7106_v28  ;;  %v5593_v28 = vand.u32 4294901760, %v1840_v30  ;;  %v5601_v27 = vsub.f32 %v1841_v8, %v5573_v16 }
 0x10d   :  { %4154 = vmatprep.subr.mxu1 %v4866_v54  ;;  %4010 = vmatprep.mubr.f32.mxu0 %v5300_v22  ;;  %v1844_v22 = vld [vmem:[%s6954_s6 + $0x60] sm:$0xff] }
 0x10e   :  { %4072 = vmatprep.mubr.f32.mxu1 %v749_v6  ;;  %4092 = vmatprep.subr.mxu0 %v7108_v52  ;;  %v5505_v6 = vsub.f32 %v1846_v0, %v5482_v53  ;;  %v5515_v36 = vand.u32 4294901760, %v1844_v22  ;;  %v1839_v0 = vld [vmem:[%s6954_s6 + $0x38] sm:$0xff] }
 0x10f   :  { %4155 = vmatpush3.msra.mxu1 %v4866_v54  ;;  %4093 = vmatpush3.msra.mxu0 %v7108_v52  ;;  %v7110_v54 = vand.u32 4294901760, %v5371_v58  ;;  %v7120_v52 = vld [vmem:[#allocation28_spill] sm:$0xff] }
 0x110   :  { %4156 = vmatprep.subr.mxu1 %v4883_v61  ;;  %4094 = vmatprep.subr.mxu0 %v7109_v41  ;;  %v5528_v20 = vand.u32 4294901760, %v5505_v6  ;;  %v5543_v10 = vsub.f32 %v1844_v22, %v5515_v36  ;;  %v5610_v22 = vand.u32 4294901760, %v1839_v0 }
 0x111   :  { %4157 = vmatpush3.msra.mxu1 %v4883_v61  ;;  %4011 = vmatmul.mubr.f32.gmra.mxu0 %v5319_v34  ;;  %v5510_v61 = vand.u32 4294901760, %v5490_v40  ;;  %v7111_v34 = vand.u32 4294901760, %v5387_v5 }
 0x112   :  { %4073 = vmatmul.mubr.f32.gmra.mxu1 %v7110_v54  ;;  %4095 = vmatpush3.msra.mxu0 %v7109_v41  ;;  %v2100_v7 = vsub.f32 %v5505_v6, %v5528_v20  ;;  %v5567_v14 = vand.u32 4294901760, %v5543_v10  ;;  %v1838_v54 = vld [vmem:[%s6954_s6 + $0x30] sm:$0xff]  ;;  %v5637_v8 = vsub.f32 %v1839_v0, %v5610_v22  ;;  %v7127_v0 = vld [vmem:[#allocation30_spill] sm:$0xff] }
 0x113   :  { %4158 = vmatprep.subr.mxu1 %v4900_v4  ;;  %4013 = vmatprep.mubr.f32.mxu0 %v5332_v29  ;;  %v5523_v29 = vsub.f32 %v1845_v56, %v5496_v55  ;;  %v2093_v26 = vsub.f32 %v5490_v40, %v5510_v61 }
 0x114   :  { %4075 = vmatprep.mubr.f32.mxu1 %v7111_v34  ;;  %4096 = vmatprep.subr.mxu0 %v7112_v43  ;;  %7117 = vst [vmem:[#allocation25_spill] sm:$0xff] %v5567_v14  ;;  %v2101_v33 = vand.u32 4294901760, %v2100_v7  ;;  %v2114_v37 = vsub.f32 %v5543_v10, %v5567_v14  ;;  %v7138_v14 = vld [vmem:[#allocation37_spill] sm:$0xff] }
 0x115   :  { %4159 = vmatpush3.msra.mxu1 %v4900_v4  ;;  %4097 = vmatpush3.msra.mxu0 %v7112_v43  ;;  %v5534_v4 = vand.u32 4294901760, %v1843_v13  ;;  %v5618_v43 = vsub.f32 %v1840_v30, %v5593_v28 }
 0x116   :  { %4160 = vmatprep.subr.mxu1 %v4914_v17  ;;  %4098 = vmatprep.subr.mxu0 %v7113_v3  ;;  %v2115_v34 = vand.u32 4294901760, %v2114_v37 }
 0x117   :  { %4161 = vmatpush3.msra.mxu1 %v4914_v17  ;;  %4014 = vmatmul.mubr.f32.gmra.mxu0 %v5337_v32  ;;  %v5548_v17 = vand.u32 4294901760, %v5523_v29  ;;  %v7115_v32 = vld [vmem:[#allocation22_spill] sm:$0xff]  ;;  %v5562_v9 = vsub.f32 %v1843_v13, %v5534_v4  ;;  %v5620_v13 = vstv %s75_s15  ;;  %s3445_s15 = sshll.u32 %s4676_s14, 4  ;;  %s3446_s15 = int_to_ptr.vmem [resolvable:$true] %s3445_s15 }
 0x118   :  { %4076 = vmatmul.mubr.f32.gmra.mxu1 %v779_v21  ;;  %4099 = vmatpush3.msra.mxu0 %v7113_v3  ;;  %v5554_v21 = vand.u32 4294901760, %v1842_v50  ;;  %v5624_v3 = vand.u32 4294901760, %v5601_v27 }
 0x119   :  { %4162 = vmatprep.subr.mxu1 %v4931_v38  ;;  %4016 = vmatprep.mubr.f32.mxu0 %v5351_v47  ;;  %7114 = vst [vmem:[#allocation23_spill] sm:$0xff] %v5548_v17  ;;  %v2094_v47 = vand.u32 4294901760, %v2093_v26  ;;  %v2107_v15 = vsub.f32 %v5523_v29, %v5548_v17 }
 0x11a   :  { %4100 = vmatprep.subr.mxu0 %v7115_v32  ;;  %4163 = vmatpush3.msra.mxu1 %v4931_v38  ;;  %v7116_v38 = vld [vmem:[#allocation24_spill] sm:$0xff]  ;;  %7123 = vst [vmem:[#allocation12_spill] sm:$0xff] %v5624_v3 }
 0x11b   :  { %4166 = vmatprep.mubr.f32.mxu1 %v5103_v12  ;;  %4101 = vmatpush3.msra.mxu0 %v7115_v32  ;;  %v1837_v32 = vld [vmem:[%s6954_s6 + $0x28] sm:$0xff] }
 0x11c   :  { %4164 = vmatprep.subr.mxu1 %v4942_v44  ;;  %4102 = vmatprep.subr.mxu0 %v7116_v38  ;;  %v5648_v30 = vand.u32 4294901760, %v1837_v32 }
 0x11d   :  { %4165 = vmatpush3.msra.mxu1 %v4942_v44  ;;  %4017 = vmatmul.mubr.f32.gmra.mxu0 %v5371_v58  ;;  %v5583_v44 = vsub.f32 %v1842_v50, %v5554_v21  ;;  %v5587_v58 = vand.u32 4294901760, %v5562_v9  ;;  %v5630_v50 = vand.u32 4294901760, %v1838_v54 }
 0x11e   :  { %4103 = vmatpush3.msra.mxu0 %v7116_v38  ;;  %4167 = vmatmul.mubr.f32.vlgmr.msra.gmra.mxu1 %v5107_v11 }
 0x11f   :  { %4246 = vmatprep.subr.mxu1 %v2094_v47  ;;  %4019 = vmatprep.mubr.f32.mxu0 %v5387_v5  ;;  %7118 = vst [vmem:[#allocation27_spill] sm:$0xff] %v5587_v58  ;;  %v2108_v5 = vand.u32 4294901760, %v2107_v15  ;;  %v5605_v56 = vand.u32 4294901760, %v5583_v44  ;;  %v2121_v41 = vsub.f32 %v5562_v9, %v5587_v58  ;;  %v2135_v15 = vsub.f32 %v5601_v27, %v5624_v3 }
 0x120   :  { %4104 = vmatprep.subr.mxu0 %v7119_v1  ;;  %4169 = vmatprep.mubr.f32.mxu1 %v5122_v2  ;;  %v5656_v37 = vsub.f32 %v1838_v54, %v5630_v50  ;;  %v1835_v54 = vld [vmem:[%s6954_s6 + $0x18] sm:$0xff] }
 0x121   :  { %4247 = vmatpush3.msra.mxu1 %v2094_v47  ;;  %4105 = vmatpush3.msra.mxu0 %v7119_v1  ;;  %7121 = vst [vmem:[#allocation11_spill] sm:$0xff] %v5605_v56  ;;  %v2128_v26 = vsub.f32 %v5583_v44, %v5605_v56  ;;  %v2122_v7 = vand.u32 4294901760, %v2121_v41  ;;  %v7125_v47 = vld [vmem:[#allocation31_spill] sm:$0xff] }
 0x122   :  { %4248 = vmatprep.subr.mxu1 %v2101_v33  ;;  %4106 = vmatprep.subr.mxu0 %v7120_v52  ;;  %v465_v38 = vmul.f32 %v5620_v13, %v7125_v47  ;;  %v5677_v47 = vsub.f32 %v1837_v32, %v5648_v30 }
 0x123   :  { %4249 = vmatpush3.msra.mxu1 %v2101_v33  ;;  %4020 = vmatmul.mubr.f32.gmra.mxu0 %v5399_v63  ;;  %v7122_v63 = vld [vmem:[#allocation29_spill] sm:$0xff]  ;;  %v1836_v33 = vld [vmem:[%s6954_s6 + $0x20] sm:$0xff]  ;;  %v2129_v1 = vand.u32 4294901760, %v2128_v26  ;;  %v2136_v26 = vand.u32 4294901760, %v2135_v15 }
 0x124   :  { %4107 = vmatpush3.msra.mxu0 %v7120_v52  ;;  %4170 = vmatmul.mubr.f32.gmra.mxu1 %v5147_v48  ;;  %v5668_v41 = vand.u32 4294901760, %v1836_v33  ;;  %v5700_v3 = vand.u32 4294901760, %v5677_v47 }
 0x125   :  { %4250 = vmatprep.subr.mxu1 %v2108_v5  ;;  %4108 = vmatprep.subr.mxu0 %v7122_v63 }
 0x126   :  { %4110 = vmatprep.mubr.f32.mxu0 %v5103_v12  ;;  %4172 = vmatprep.mubr.f32.mxu1 %v5177_v45  ;;  %v5641_v12 = vand.u32 4294901760, %v5618_v43  ;;  %7131 = vst [vmem:[#allocation16_spill] sm:$0xff] %v5700_v3 }
 0x127   :  { %4251 = vmatpush3.msra.mxu1 %v2108_v5  ;;  %4109 = vmatpush3.msra.mxu0 %v7122_v63  ;;  %v466_v5 = vmul.f32 %v5620_v13, %v7127_v0  ;;  %v5681_v0 = vand.u32 4294901760, %v5656_v37 }
 0x128   :  { %4252 = vmatprep.subr.mxu1 %v2115_v34  ;;  %4190 = vmatprep.subr.mxu0 %v5469_v18  ;;  %7124 = vst [vmem:[#allocation13_spill] sm:$0xff] %v5641_v12  ;;  %v2142_v52 = vsub.f32 %v5618_v43, %v5641_v12  ;;  %v5694_v12 = vsub.f32 %v1836_v33, %v5668_v41 }
 0x129   :  { %4253 = vmatpush3.msra.mxu1 %v2115_v34  ;;  %4111 = vmatmul.mubr.f32.vlgmr.msra.gmra.mxu0 %v5107_v11  ;;  %v5660_v11 = vand.u32 4294901760, %v5637_v8  ;;  %v7128_v34 = vld [vmem:[#allocation32_spill] sm:$0xff]  ;;  %7129 = vst [vmem:[#allocation15_spill] sm:$0xff] %v5681_v0  ;;  %v483_v32 = vmul.f32 1.442695, %v466_v5  ;;  %v2156_v5 = vsub.f32 %v5656_v37, %v5681_v0 }
 0x12a   :  { %4173 = vmatmul.mubr.f32.gmra.mxu1 %v5205_v51  ;;  %4191 = vmatpush3.msra.mxu0 %v5469_v18  ;;  %v467_v63 = vmul.f32 %v5620_v13, %v7128_v34  ;;  %v5686_v34 = vand.u32 4294901760, %v1835_v54  ;;  %v2143_v15 = vand.u32 4294901760, %v2142_v52  ;;  %v1833_v52 = vld [vmem:[%s6954_s6 + $0x8] sm:$0xff]  ;;  %v5719_v0 = vand.u32 4294901760, %v5694_v12 }
 0x12b   :  { %4254 = vmatprep.subr.mxu1 %v2122_v7  ;;  %4113 = vmatprep.mubr.f32.mxu0 %v5122_v2  ;;  %7126 = vst [vmem:[#allocation14_spill] sm:$0xff] %v5660_v11  ;;  %v481_v2 = vmul.f32 1.442695, %v465_v38  ;;  %v2149_v38 = vsub.f32 %v5637_v8, %v5660_v11 }
 0x12c   :  { %4175 = vmatprep.mubr.f32.mxu1 %v5237_v25  ;;  %4192 = vmatprep.subr.mxu0 %v5482_v53  ;;  %7133 = vst [vmem:[#allocation17_spill] sm:$0xff] %v5719_v0 }
 0x12d   :  { %4255 = vmatpush3.msra.mxu1 %v2122_v7  ;;  %4193 = vmatpush3.msra.mxu0 %v5482_v53  ;;  %v1834_v7 = vld [vmem:[%s6954_s6 + $0x10] sm:$0xff]  ;;  %4580 = vpow2.f32 %v481_v2  ;;  %v7132_v2 = vld [vmem:[#allocation34_spill] sm:$0xff] }
 0x12e   :  { %4256 = vmatprep.subr.mxu1 %v2129_v1  ;;  %4194 = vmatprep.subr.mxu0 %v5496_v55  ;;  %v5706_v33 = vand.u32 4294901760, %v1834_v7  ;;  %4582 = vpow2.f32 %v483_v32  ;;  %v7134_v32 = vld [vmem:[#allocation35_spill] sm:$0xff] }
 0x12f   :  { %4257 = vmatpush3.msra.mxu1 %v2129_v1  ;;  %4114 = vmatmul.mubr.f32.gmra.mxu0 %v5147_v48  ;;  %v485_v48 = vmul.f32 1.442695, %v467_v63  ;;  %v7130_v1 = vld [vmem:[#allocation33_spill] sm:$0xff]  ;;  %v469_v63 = vmul.f32 %v5620_v13, %v7132_v2  ;;  %v5724_v2 = vand.u32 4294901760, %v1833_v52 }
 0x130   :  { %4176 = vmatmul.mubr.f32.gmra.mxu1 %v5258_v42  ;;  %4195 = vmatpush3.msra.mxu0 %v5496_v55  ;;  %v468_v11 = vmul.f32 %v5620_v13, %v7130_v1  ;;  %v5715_v1 = vsub.f32 %v1835_v54, %v5686_v34  ;;  %v1832_v54 = vld [vmem:[%s6954_s6] sm:$0xff] }
 0x131   :  { %4258 = vmatprep.subr.mxu1 %v2136_v26  ;;  %4116 = vmatprep.mubr.f32.mxu0 %v5177_v45  ;;  %v2150_v45 = vand.u32 4294901760, %v2149_v38  ;;  %4584 = vpow2.f32 %v485_v48  ;;  %v2157_v38 = vand.u32 4294901760, %v2156_v5  ;;  %v2170_v5 = vsub.f32 %v5694_v12, %v5719_v0 }
 0x132   :  { %4178 = vmatprep.mubr.f32.mxu1 %v5285_v19  ;;  %4196 = vmatprep.subr.mxu0 %v5515_v36  ;;  %v487_v56 = vmul.f32 1.442695, %v468_v11  ;;  %v5734_v11 = vsub.f32 %v1834_v7, %v5706_v33  ;;  %v5740_v48 = vand.u32 4294901760, %v5715_v1  ;;  %v7136_v7 = vld [vmem:[#allocation36_spill] sm:$0xff] }
 0x133   :  { %4259 = vmatpush3.msra.mxu1 %v2136_v26  ;;  %4197 = vmatpush3.msra.mxu0 %v5515_v36  ;;  %v2163_v26 = vsub.f32 %v5677_v47, %v5700_v3  ;;  %v5746_v3 = vand.u32 4294901760, %v1832_v54 }
 0x134   :  { %4260 = vmatprep.subr.mxu1 %v2143_v15  ;;  %4198 = vmatprep.subr.mxu0 %v5534_v4  ;;  %7135 = vst [vmem:[#allocation18_spill] sm:$0xff] %v5740_v48  ;;  %4586 = vpow2.f32 %v487_v56  ;;  %v5756_v58 = vand.u32 4294901760, %v5734_v11  ;;  %v2177_v56 = vsub.f32 %v5715_v1, %v5740_v48 }
 0x135   :  { %4261 = vmatpush3.msra.mxu1 %v2143_v15  ;;  %4117 = vmatmul.mubr.f32.gmra.mxu0 %v5205_v51  ;;  %v489_v51 = vmul.f32 1.442695, %v469_v63  ;;  %v470_v15 = vmul.f32 %v5620_v13, %v7134_v32  ;;  %v471_v63 = vmul.f32 %v5620_v13, %v7136_v7  ;;  %v5752_v32 = vsub.f32 %v1833_v52, %v5724_v2 }
 0x136   :  { %4179 = vmatmul.mubr.f32.gmra.mxu1 %v5306_v39  ;;  %4199 = vmatpush3.msra.mxu0 %v5534_v4  ;;  %7137 = vst [vmem:[#allocation19_spill] sm:$0xff] %v5756_v58  ;;  %v2171_v52 = vand.u32 4294901760, %v2170_v5 }
 0x137   :  { %4262 = vmatprep.subr.mxu1 %v2150_v45  ;;  %4119 = vmatprep.mubr.f32.mxu0 %v5237_v25  ;;  %v2164_v25 = vand.u32 4294901760, %v2163_v26  ;;  %4588 = vpow2.f32 %v489_v51  ;;  %v491_v0 = vmul.f32 1.442695, %v470_v15  ;;  %v493_v7 = vmul.f32 1.442695, %v471_v63  ;;  %v7140_v15 = vld [vmem:[#allocation38_spill] sm:$0xff] }
 0x138   :  { %4181 = vmatprep.mubr.f32.mxu1 %v5316_v46  ;;  %4200 = vmatprep.subr.mxu0 %v5554_v21  ;;  %v472_v51 = vmul.f32 %v5620_v13, %v7138_v14  ;;  %v473_v5 = vmul.f32 %v5620_v13, %v7140_v15 }
 0x139   :  { %4263 = vmatpush3.msra.mxu1 %v2150_v45  ;;  %4201 = vmatpush3.msra.mxu0 %v5554_v21  ;;  %v5764_v45 = vsub.f32 %v1832_v54, %v5746_v3  ;;  %v2184_v54 = vsub.f32 %v5734_v11, %v5756_v58  ;;  %4590 = vpow2.f32 %v491_v0  ;;  %v7142_v58 = vld [vmem:[#allocation39_spill] sm:$0xff] }
 0x13a   :  { %4264 = vmatprep.subr.mxu1 %v2157_v38  ;;  %4202 = vmatprep.subr.mxu0 %v5573_v16  ;;  %v4581_v26 = vpop.eup %4580  ;;  %4592 = vpow2.f32 %v493_v7  ;;  %v495_v17 = vmul.f32 1.442695, %v472_v51  ;;  %v497_v15 = vmul.f32 1.442695, %v473_v5  ;;  %v7143_v51 = vld [vmem:[#allocation40_spill] sm:$0xff] }
 0x13b   :  { %4265 = vmatpush3.msra.mxu1 %v2157_v38  ;;  %4120 = vmatmul.mubr.f32.gmra.mxu0 %v5258_v42  ;;  %v5770_v42 = vand.u32 4294901760, %v5752_v32  ;;  %v5773_v38 = vstv %s5726_s23  ;;  %v4583_v14 = vpop.eup %4582  ;;  %v5785_v48 = vand.u32 4294901760, %v5764_v45 }
 0x13c   :  { %4182 = vmatmul.mubr.f32.gmra.mxu1 %v5325_v24  ;;  %4203 = vmatpush3.msra.mxu0 %v5573_v16  ;;  %v514_v63 = vmul.f32 %v4581_v26, %v5773_v38  ;;  %v474_v26 = vmul.f32 %v5620_v13, %v7142_v58  ;;  %4594 = vpow2.f32 %v495_v17 }
 0x13d   :  { %4266 = vmatprep.subr.mxu1 %v2164_v25  ;;  %4122 = vmatprep.mubr.f32.mxu0 %v5285_v19  ;;  %7139 = vst [vmem:[#allocation20_spill] sm:$0xff] %v5770_v42  ;;  %v2178_v19 = vand.u32 4294901760, %v2177_v56  ;;  %7141 = vst [vmem:[#allocation21_spill] sm:$0xff] %v5785_v48  ;;  %v2191_v0 = vsub.f32 %v5752_v32, %v5770_v42  ;;  %v2185_v56 = vand.u32 4294901760, %v2184_v54  ;;  %4596 = vpow2.f32 %v497_v15 }
 0x13e   :  { %4184 = vmatprep.mubr.f32.mxu1 %v5334_v59  ;;  %4204 = vmatprep.subr.mxu0 %v5593_v28  ;;  %v2198_v7 = vsub.f32 %v5764_v45, %v5785_v48  ;;  %v475_v54 = vmul.f32 %v5620_v13, %v7143_v51  ;;  %v7144_v51 = vld [vmem:[#allocation41_spill] sm:$0xff]  ;;  %v477_v15 = vmul.f32 %v5620_v13, %v5210_v35 }
 0x13f   :  { %4267 = vmatpush3.msra.mxu1 %v2164_v25  ;;  %4205 = vmatpush3.msra.mxu0 %v5593_v28  ;;  %v4585_v25 = vpop.eup %4584  ;;  %v2192_v58 = vand.u32 4294901760, %v2191_v0  ;;  %v476_v42 = vmul.f32 %v5620_v13, %v7144_v51 }
 0x140   :  { %4268 = vmatprep.subr.mxu1 %v2171_v52  ;;  %4206 = vmatprep.subr.mxu0 %v5610_v22 }
 0x141   :  { %4269 = vmatpush3.msra.mxu1 %v2171_v52  ;;  %4123 = vmatmul.mubr.f32.gmra.mxu0 %v5306_v39  ;;  %v515_v52 = vmul.f32 %v4583_v14, %v5773_v38  ;;  %v5798_v39 = vand.u32 4294901760, %v514_v63  ;;  %v4587_v5 = vpop.eup %4586  ;;  %v499_v14 = vmul.f32 1.442695, %v474_v26 }
 0x142   :  { %4185 = vmatmul.mubr.f32.gmra.mxu1 %v5361_v62  ;;  %4207 = vmatpush3.msra.mxu0 %v5610_v22 }
 0x143   :  { %4270 = vmatprep.subr.mxu1 %v2178_v19  ;;  %4125 = vmatprep.mubr.f32.mxu0 %v5316_v46  ;;  %v516_v46 = vmul.f32 %v4585_v25, %v5773_v38  ;;  %v5808_v48 = vand.u32 4294901760, %v515_v52  ;;  %v5813_v0 = vsub.f32 %v514_v63, %v5798_v39  ;;  %v501_v25 = vmul.f32 1.442695, %v475_v54 }
 0x144   :  { %4187 = vmatprep.mubr.f32.mxu1 %v5378_v60  ;;  %4208 = vmatprep.subr.mxu0 %v5630_v50  ;;  %v4589_v17 = vpop.eup %4588  ;;  %4598 = vpow2.f32 %v499_v14  ;;  %v503_v54 = vmul.f32 1.442695, %v476_v42  ;;  %v505_v14 = vmul.f32 1.442695, %v477_v15 }
 0x145   :  { %4271 = vmatpush3.msra.mxu1 %v2178_v19  ;;  %4209 = vmatpush3.msra.mxu0 %v5630_v50  ;;  %v2199_v19 = vand.u32 4294901760, %v2198_v7  ;;  %v5827_v63 = vsub.f32 %v515_v52, %v5808_v48  ;;  %v7039_v7 = vand.u32 4294901760, %v5813_v0  ;;  %4600 = vpow2.f32 %v501_v25 }
 0x146   :  { %4272 = vmatprep.subr.mxu1 %v2185_v56  ;;  %4210 = vmatprep.subr.mxu0 %v5648_v30  ;;  %v4591_v26 = vpop.eup %4590  ;;  %4602 = vpow2.f32 %v503_v54 }
 0x147   :  { %4273 = vmatpush3.msra.mxu1 %v2185_v56  ;;  %4126 = vmatmul.mubr.f32.gmra.mxu0 %v5325_v24  ;;  %v5818_v56 = vand.u32 4294901760, %v516_v46  ;;  %v517_v24 = vmul.f32 %v4587_v5, %v5773_v38  ;;  %v4593_v52 = vpop.eup %4592  ;;  %v478_v5 = vmul.f32 %v5620_v13, %v5232_v31  ;;  %v1932_v31 = vsub.f32 %v5813_v0, %v7039_v7 }
 0x148   :  { %4188 = vmatmul.mubr.f32.gmra.mxu1 %v5392_v49  ;;  %4211 = vmatpush3.msra.mxu0 %v5648_v30  ;;  %4604 = vpow2.f32 %v505_v14 }
 0x149   :  { %4274 = vmatprep.subr.mxu1 %v2192_v58  ;;  %4128 = vmatprep.mubr.f32.mxu0 %v5334_v59  ;;  %v518_v59 = vmul.f32 %v4589_v17, %v5773_v38  ;;  %v5833_v35 = vand.u32 4294901760, %v517_v24  ;;  %v479_v17 = vmul.f32 %v5620_v13, %v5262_v57  ;;  %v4595_v57 = vpop.eup %4594  ;;  %v507_v51 = vmul.f32 1.442695, %v478_v5 }
 0x14a   :  { %4212 = vmatprep.subr.mxu0 %v5668_v41  ;;  %4275 = vmatpush3.msra.mxu1 %v2192_v58  ;;  %v5836_v58 = vsub.f32 %v516_v46, %v5818_v56  ;;  %v519_v46 = vmul.f32 %v4591_v26, %v5773_v38  ;;  %v4597_v54 = vpop.eup %4596  ;;  %v480_v5 = vmul.f32 %v5620_v13, %v5289_v23  ;;  %v1933_v14 = vand.u32 4294901760, %v1932_v31 }
 0x14b   :  { %4278 = vmatprep.mubr.f32.mxu1 %v5798_v39  ;;  %4213 = vmatpush3.msra.mxu0 %v5668_v41  ;;  %v5844_v42 = vand.u32 4294901760, %v518_v59  ;;  %v5860_v25 = vsub.f32 %v517_v24, %v5833_v35  ;;  %4606 = vpow2.f32 %v507_v51  ;;  %v522_v31 = vmul.f32 %v4597_v54, %v5773_v38 }
 0x14c   :  { %4276 = vmatprep.subr.mxu1 %v2199_v19  ;;  %4214 = vmatprep.subr.mxu0 %v5686_v34  ;;  %v5869_v26 = vand.u32 4294901760, %v519_v46 }
 0x14d   :  { %4277 = vmatpush3.msra.mxu1 %v2199_v19  ;;  %4129 = vmatmul.mubr.f32.gmra.mxu0 %v5361_v62  ;;  %v7037_v62 = vand.u32 4294901760, %v5827_v63  ;;  %v520_v19 = vmul.f32 %v4593_v52, %v5773_v38  ;;  %v5872_v24 = vsub.f32 %v518_v59, %v5844_v42  ;;  %v509_v52 = vmul.f32 1.442695, %v479_v17 }
 0x14e   :  { %4215 = vmatpush3.msra.mxu0 %v5686_v34  ;;  %4279 = vmatmul.mubr.f32.vlgmr.msra.gmra.mxu1 %v5808_v48  ;;  %v511_v17 = vmul.f32 1.442695, %v480_v5  ;;  %v7145_v51 = vand.u32 4294901760, %v5860_v25  ;;  %v5912_v5 = vand.u32 4294901760, %v522_v31 }
 0x14f   :  { %4358 = vmatprep.subr.mxu1 %v5469_v18  ;;  %4131 = vmatprep.mubr.f32.mxu0 %v5378_v60  ;;  %v7038_v60 = vand.u32 4294901760, %v5836_v58  ;;  %v1942_v15 = vsub.f32 %v5827_v63, %v7037_v62  ;;  %v5883_v59 = vand.u32 4294901760, %v520_v19  ;;  %v521_v62 = vmul.f32 %v4595_v57, %v5773_v38 }
 0x150   :  { %4216 = vmatprep.subr.mxu0 %v5706_v33  ;;  %4281 = vmatprep.mubr.f32.mxu1 %v5818_v56  ;;  %v7040_v13 = vand.u32 4294901760, %v5872_v24  ;;  %4608 = vpow2.f32 %v509_v52  ;;  %7147 = vst [vmem:[#allocation24_spill] sm:$0xff] %v5912_v5 }
 0x151   :  { %4359 = vmatpush3.msra.mxu1 %v5469_v18  ;;  %4217 = vmatpush3.msra.mxu0 %v5706_v33  ;;  %v1943_v23 = vand.u32 4294901760, %v1942_v15  ;;  %v4599_v7 = vpop.eup %4598  ;;  %v1962_v15 = vsub.f32 %v5860_v25, %v7145_v51  ;;  %4610 = vpow2.f32 %v511_v17 }
 0x152   :  { %4360 = vmatprep.subr.mxu1 %v5482_v53  ;;  %4218 = vmatprep.subr.mxu0 %v5724_v2  ;;  %v4601_v54 = vpop.eup %4600  ;;  %v1972_v52 = vsub.f32 %v5872_v24, %v7040_v13 }
 0x153   :  { %4361 = vmatpush3.msra.mxu1 %v5482_v53  ;;  %4132 = vmatmul.mubr.f32.gmra.mxu0 %v5392_v49  ;;  %v1952_v49 = vsub.f32 %v5836_v58, %v7038_v60  ;;  %v5893_v60 = vsub.f32 %v519_v46, %v5869_v26  ;;  %v5904_v46 = vsub.f32 %v520_v19, %v5883_v59  ;;  %v4603_v13 = vpop.eup %4602 }
 0x154   :  { %4219 = vmatpush3.msra.mxu0 %v5724_v2  ;;  %4282 = vmatmul.mubr.f32.gmra.mxu1 %v5833_v35 }
 0x155   :  { %4362 = vmatprep.subr.mxu1 %v5496_v55  ;;  %4220 = vmatprep.subr.mxu0 %v5746_v3  ;;  %v1953_v57 = vand.u32 4294901760, %v1952_v49  ;;  %v7041_v49 = vand.u32 4294901760, %v5893_v60  ;;  %v7042_v19 = vand.u32 4294901760, %v5904_v46 }
 0x156   :  { %4222 = vmatprep.mubr.f32.mxu0 %v1933_v14  ;;  %4284 = vmatprep.mubr.f32.mxu1 %v5844_v42  ;;  %v5901_v14 = vand.u32 4294901760, %v521_v62 }
 0x157   :  { %4363 = vmatpush3.msra.mxu1 %v5496_v55  ;;  %4221 = vmatpush3.msra.mxu0 %v5746_v3 }
 0x158   :  { %4364 = vmatprep.subr.mxu1 %v5515_v36  ;;  %4302 = vmatprep.subr.mxu0 %v5490_v40  ;;  %7146 = vst [vmem:[#allocation22_spill] sm:$0xff] %v5901_v14  ;;  %v5923_v51 = vsub.f32 %v521_v62, %v5901_v14  ;;  %v4605_v62 = vpop.eup %4604 }
 0x159   :  { %4365 = vmatpush3.msra.mxu1 %v5515_v36  ;;  %4223 = vmatmul.mubr.f32.vlgmr.msra.gmra.mxu0 %v1943_v23  ;;  %v523_v23 = vmul.f32 %v4599_v7, %v5773_v38  ;;  %v1973_v7 = vand.u32 4294901760, %v1972_v52 }
 0x15a   :  { %4285 = vmatmul.mubr.f32.gmra.mxu1 %v5869_v26  ;;  %4303 = vmatpush3.msra.mxu0 %v5490_v40  ;;  %v1963_v40 = vand.u32 4294901760, %v1962_v15  ;;  %v5934_v15 = vsub.f32 %v522_v31, %v5912_v5  ;;  %v4607_v31 = vpop.eup %4606 }
 0x15b   :  { %4366 = vmatprep.subr.mxu1 %v5534_v4  ;;  %4225 = vmatprep.mubr.f32.mxu0 %v1953_v57  ;;  %v524_v57 = vmul.f32 %v4601_v54, %v5773_v38  ;;  %v5931_v17 = vand.u32 4294901760, %v523_v23  ;;  %v1992_v54 = vsub.f32 %v5904_v46, %v7042_v19  ;;  %v526_v19 = vmul.f32 %v4605_v62, %v5773_v38 }
 0x15c   :  { %4287 = vmatprep.mubr.f32.mxu1 %v5883_v59  ;;  %4304 = vmatprep.subr.mxu0 %v5505_v6 }
 0x15d   :  { %4367 = vmatpush3.msra.mxu1 %v5534_v4  ;;  %4305 = vmatpush3.msra.mxu0 %v5505_v6  ;;  %v1982_v6 = vsub.f32 %v5893_v60, %v7041_v49  ;;  %7148 = vst [vmem:[#allocation26_spill] sm:$0xff] %v5931_v17  ;;  %v5942_v52 = vand.u32 4294901760, %v524_v57  ;;  %v525_v49 = vmul.f32 %v4603_v13, %v5773_v38  ;;  %v4609_v13 = vpop.eup %4608 }
 0x15e   :  { %4368 = vmatprep.subr.mxu1 %v5554_v21  ;;  %4306 = vmatprep.subr.mxu0 %v5523_v29 }
 0x15f   :  { %4369 = vmatpush3.msra.mxu1 %v5554_v21  ;;  %4226 = vmatmul.mubr.f32.gmra.mxu0 %v1963_v40  ;;  %v1993_v40 = vand.u32 4294901760, %v1992_v54  ;;  %v5964_v62 = vsub.f32 %v524_v57, %v5942_v52  ;;  %v5972_v54 = vand.u32 4294901760, %v526_v19  ;;  %v4611_v57 = vpop.eup %4610 }
 0x160   :  { %4288 = vmatmul.mubr.f32.gmra.mxu1 %v5901_v14  ;;  %4307 = vmatpush3.msra.mxu0 %v5523_v29  ;;  %v1983_v29 = vand.u32 4294901760, %v1982_v6  ;;  %v5953_v14 = vsub.f32 %v523_v23, %v5931_v17  ;;  %v5961_v6 = vand.u32 4294901760, %v525_v49 }
 0x161   :  { %4370 = vmatprep.subr.mxu1 %v5573_v16  ;;  %4228 = vmatprep.mubr.f32.mxu0 %v1973_v7  ;;  %v7047_v7 = vand.u32 4294901760, %v5934_v15 }
 0x162   :  { %4290 = vmatprep.mubr.f32.mxu1 %v5912_v5  ;;  %4308 = vmatprep.subr.mxu0 %v5543_v10  ;;  %v7149_v5 = vand.u32 4294901760, %v5923_v51 }
 0x163   :  { %4371 = vmatpush3.msra.mxu1 %v5573_v16  ;;  %4309 = vmatpush3.msra.mxu0 %v5543_v10  ;;  %v2012_v23 = vsub.f32 %v5934_v15, %v7047_v7  ;;  %v528_v7 = vmul.f32 %v4609_v13, %v5773_v38 }
 0x164   :  { %4372 = vmatprep.subr.mxu1 %v5593_v28  ;;  %4310 = vmatprep.subr.mxu0 %v5562_v9  ;;  %v2002_v10 = vsub.f32 %v5923_v51, %v7149_v5  ;;  %v7050_v5 = vand.u32 4294901760, %v5953_v14 }
 0x165   :  { %4373 = vmatpush3.msra.mxu1 %v5593_v28  ;;  %4229 = vmatmul.mubr.f32.gmra.mxu0 %v1983_v29  ;;  %v527_v29 = vmul.f32 %v4607_v31, %v5773_v38  ;;  %v2013_v31 = vand.u32 4294901760, %v2012_v23  ;;  %v6002_v23 = vand.u32 4294901760, %v528_v7 }
 0x166   :  { %4291 = vmatmul.mubr.f32.gmra.mxu1 %v5931_v17  ;;  %4311 = vmatpush3.msra.mxu0 %v5562_v9  ;;  %v2003_v9 = vand.u32 4294901760, %v2002_v10  ;;  %v5983_v17 = vsub.f32 %v525_v49, %v5961_v6  ;;  %v7150_v49 = vand.u32 4294901760, %v5964_v62 }
 0x167   :  { %4374 = vmatprep.subr.mxu1 %v5610_v22  ;;  %4231 = vmatprep.mubr.f32.mxu0 %v1993_v40  ;;  %v5991_v10 = vand.u32 4294901760, %v527_v29  ;;  %v5994_v40 = vsub.f32 %v526_v19, %v5972_v54 }
 0x168   :  { %4293 = vmatprep.mubr.f32.mxu1 %v5942_v52  ;;  %4312 = vmatprep.subr.mxu0 %v5583_v44  ;;  %v2032_v13 = vsub.f32 %v5964_v62, %v7150_v49 }
 0x169   :  { %4375 = vmatpush3.msra.mxu1 %v5610_v22  ;;  %4313 = vmatpush3.msra.mxu0 %v5583_v44  ;;  %v2022_v44 = vsub.f32 %v5953_v14, %v7050_v5  ;;  %v529_v5 = vmul.f32 %v4611_v57, %v5773_v38  ;;  %v2051_v19 = vand.u32 4294901760, %v5994_v40 }
 0x16a   :  { %4376 = vmatprep.subr.mxu1 %v5630_v50  ;;  %4314 = vmatprep.subr.mxu0 %v5601_v27  ;;  %v2033_v38 = vand.u32 4294901760, %v2032_v13 }
 0x16b   :  { %4377 = vmatpush3.msra.mxu1 %v5630_v50  ;;  %4232 = vmatmul.mubr.f32.gmra.mxu0 %v2003_v9  ;;  %v2041_v9 = vand.u32 4294901760, %v5983_v17  ;;  %v6020_v49 = vand.u32 4294901760, %v529_v5 }
 0x16c   :  { %4294 = vmatmul.mubr.f32.gmra.mxu1 %v5961_v6  ;;  %4315 = vmatpush3.msra.mxu0 %v5601_v27  ;;  %v2023_v27 = vand.u32 4294901760, %v2022_v44 }
 0x16d   :  { %4378 = vmatprep.subr.mxu1 %v5648_v30  ;;  %4234 = vmatprep.mubr.f32.mxu0 %v2013_v31  ;;  %v6012_v31 = vsub.f32 %v527_v29, %v5991_v10  ;;  %v2042_v57 = vsub.f32 %v5983_v17, %v2041_v9  ;;  %v2052_v29 = vsub.f32 %v5994_v40, %v2051_v19 }
 0x16e   :  { %4296 = vmatprep.mubr.f32.mxu1 %v5972_v54  ;;  %4316 = vmatprep.subr.mxu0 %v5618_v43  ;;  %v6038_v13 = vsub.f32 %v529_v5, %v6020_v49 }
 0x16f   :  { %4379 = vmatpush3.msra.mxu1 %v5648_v30  ;;  %4317 = vmatpush3.msra.mxu0 %v5618_v43  ;;  %v6023_v43 = vsub.f32 %v528_v7, %v6002_v23  ;;  %v2061_v44 = vand.u32 4294901760, %v6012_v31  ;;  %v2043_v7 = vand.u32 4294901760, %v2042_v57  ;;  %v7151_v57 = vand.u32 4294901760, %v5813_v0 }
 0x170   :  { %4380 = vmatprep.subr.mxu1 %v5668_v41  ;;  %4318 = vmatprep.subr.mxu0 %v5637_v8  ;;  %v2081_v5 = vand.u32 4294901760, %v6038_v13 }
 0x171   :  { %4381 = vmatpush3.msra.mxu1 %v5668_v41  ;;  %4235 = vmatmul.mubr.f32.gmra.mxu0 %v2023_v27  ;;  %v2053_v27 = vand.u32 4294901760, %v2052_v29 }
 0x172   :  { %4297 = vmatmul.mubr.f32.gmra.mxu1 %v5991_v10  ;;  %4319 = vmatpush3.msra.mxu0 %v5637_v8  ;;  %v2071_v8 = vand.u32 4294901760, %v6023_v43 }
 0x173   :  { %4382 = vmatprep.subr.mxu1 %v5686_v34  ;;  %4237 = vmatprep.mubr.f32.mxu0 %v2033_v38  ;;  %v2062_v38 = vsub.f32 %v6012_v31, %v2061_v44 }
 0x174   :  { %4299 = vmatprep.mubr.f32.mxu1 %v6002_v23  ;;  %4320 = vmatprep.subr.mxu0 %v5656_v37 }
 0x175   :  { %4383 = vmatpush3.msra.mxu1 %v5686_v34  ;;  %4321 = vmatpush3.msra.mxu0 %v5656_v37  ;;  %v2072_v37 = vsub.f32 %v6023_v43, %v2071_v8  ;;  %v2063_v29 = vand.u32 4294901760, %v2062_v38 }
 0x176   :  { %4384 = vmatprep.subr.mxu1 %v5706_v33  ;;  %4322 = vmatprep.subr.mxu0 %v5677_v47 }
 0x177   :  { %4385 = vmatpush3.msra.mxu1 %v5706_v33  ;;  %4238 = vmatmul.mubr.f32.gmra.mxu0 %v2043_v7  ;;  %v2082_v7 = vsub.f32 %v6038_v13, %v2081_v5 }
 0x178   :  { %4300 = vmatmul.mubr.f32.gmra.mxu1 %v6020_v49  ;;  %4323 = vmatpush3.msra.mxu0 %v5677_v47  ;;  %v2073_v47 = vand.u32 4294901760, %v2072_v37  ;;  %v7154_v37 = vand.u32 4294901760, %v5860_v25 }
 0x179   :  { %4386 = vmatprep.subr.mxu1 %v5724_v2  ;;  %4240 = vmatprep.mubr.f32.mxu0 %v2053_v27  ;;  %v7152_v27 = vand.u32 4294901760, %v5827_v63  ;;  %v2083_v38 = vand.u32 4294901760, %v2082_v7  ;;  %v7164_v7 = vand.u32 4294901760, %v5964_v62 }
 0x17a   :  { %4324 = vmatprep.subr.mxu0 %v5694_v12  ;;  %4387 = vmatpush3.msra.mxu1 %v5724_v2 }
 0x17b   :  { %4390 = vmatprep.mubr.f32.mxu1 %v7151_v57  ;;  %4325 = vmatpush3.msra.mxu0 %v5694_v12  ;;  %v7153_v12 = vand.u32 4294901760, %v5836_v58  ;;  %v7161_v57 = vld [vmem:[#allocation25_spill] sm:$0xff] }
 0x17c   :  { %4388 = vmatprep.subr.mxu1 %v5746_v3  ;;  %4326 = vmatprep.subr.mxu0 %v5715_v1 }
 0x17d   :  { %4389 = vmatpush3.msra.mxu1 %v5746_v3  ;;  %4241 = vmatmul.mubr.f32.gmra.mxu0 %v2063_v29 }
 0x17e   :  { %4327 = vmatpush3.msra.mxu0 %v5715_v1  ;;  %4391 = vmatmul.mubr.f32.vlgmr.msra.gmra.mxu1 %v7152_v27  ;;  %v6076_v1 = vpop.f32.mrf.mxu1  ;;  %v7165_v27 = vld [vmem:[#allocation11_spill] sm:$0xff] }
 0x17f   :  { %4470 = vmatprep.subr.mxu1 %v5469_v18  ;;  %4243 = vmatprep.mubr.f32.mxu0 %v2073_v47  ;;  %v7163_v47 = vand.u32 4294901760, %v5953_v14 }
 0x180   :  { %4328 = vmatprep.subr.mxu0 %v5734_v11  ;;  %4393 = vmatprep.mubr.f32.mxu1 %v7153_v12 }
 0x181   :  { %4471 = vmatpush3.msra.mxu1 %v5469_v18  ;;  %4329 = vmatpush3.msra.mxu0 %v5734_v11  ;;  %v7155_v18 = vand.u32 4294901760, %v5872_v24 }
 0x182   :  { %4472 = vmatprep.subr.mxu1 %v5482_v53  ;;  %4330 = vmatprep.subr.mxu0 %v5752_v32 }
 0x183   :  { %4473 = vmatpush3.msra.mxu1 %v5482_v53  ;;  %4244 = vmatmul.mubr.f32.gmra.mxu0 %v2083_v38  ;;  %v6088_v53 = vpop.f32.mrf.mxu1  ;;  %v7167_v38 = vld [vmem:[#allocation13_spill] sm:$0xff] }
 0x184   :  { %4331 = vmatpush3.msra.mxu0 %v5752_v32  ;;  %4394 = vmatmul.mubr.f32.gmra.mxu1 %v7154_v37  ;;  %v7156_v32 = vand.u32 4294901760, %v5893_v60  ;;  %v7169_v37 = vld [vmem:[#allocation15_spill] sm:$0xff] }
 0x185   :  { %4474 = vmatprep.subr.mxu1 %v5496_v55  ;;  %4332 = vmatprep.subr.mxu0 %v5764_v45  ;;  %v6094_v11 = vpop.f32.mrf.mxu1 }
 0x186   :  { %4334 = vmatprep.mubr.f32.mxu0 %v5813_v0  ;;  %4396 = vmatprep.mubr.f32.mxu1 %v7155_v18  ;;  %v7170_v18 = vld [vmem:[#allocation16_spill] sm:$0xff] }
 0x187   :  { %4475 = vmatpush3.msra.mxu1 %v5496_v55  ;;  %4333 = vmatpush3.msra.mxu0 %v5764_v45  ;;  %v6099_v55 = vpop.f32.mrf.mxu0  ;;  %v7157_v45 = vand.u32 4294901760, %v5904_v46 }
 0x188   :  { %4476 = vmatprep.subr.mxu1 %v5515_v36  ;;  %4414 = vmatprep.subr.mxu0 %v5510_v61 }
 0x189   :  { %4477 = vmatpush3.msra.mxu1 %v5515_v36  ;;  %4335 = vmatmul.mubr.f32.vlgmr.msra.gmra.mxu0 %v5827_v63  ;;  %v6108_v36 = vpop.f32.mrf.mxu1  ;;  %v6112_v0 = vpop.f32.mrf.mxu0 }
 0x18a   :  { %4397 = vmatmul.mubr.f32.gmra.mxu1 %v7156_v32  ;;  %4415 = vmatpush3.msra.mxu0 %v5510_v61  ;;  %v7158_v61 = vld [vmem:[#allocation23_spill] sm:$0xff] }
 0x18b   :  { %4478 = vmatprep.subr.mxu1 %v5534_v4  ;;  %4337 = vmatprep.mubr.f32.mxu0 %v5836_v58  ;;  %v6116_v63 = vpop.f32.mrf.mxu1  ;;  %v7159_v58 = vand.u32 4294901760, %v5923_v51 }
 0x18c   :  { %4399 = vmatprep.mubr.f32.mxu1 %v7157_v45  ;;  %4416 = vmatprep.subr.mxu0 %v5528_v20 }
 0x18d   :  { %4479 = vmatpush3.msra.mxu1 %v5534_v4  ;;  %4417 = vmatpush3.msra.mxu0 %v5528_v20  ;;  %v6121_v20 = vpop.f32.mrf.mxu0  ;;  %v7160_v4 = vand.u32 4294901760, %v5934_v15 }
 0x18e   :  { %4480 = vmatprep.subr.mxu1 %v5554_v21  ;;  %4418 = vmatprep.subr.mxu0 %v7158_v61 }
 0x18f   :  { %4481 = vmatpush3.msra.mxu1 %v5554_v21  ;;  %4338 = vmatmul.mubr.f32.gmra.mxu0 %v5860_v25  ;;  %v6130_v21 = vpop.f32.mrf.mxu1  ;;  %v7162_v25 = vld [vmem:[#allocation27_spill] sm:$0xff]  ;;  %v6134_v29 = vpop.f32.mrf.mxu0 }
 0x190   :  { %4400 = vmatmul.mubr.f32.gmra.mxu1 %v7159_v58  ;;  %4419 = vmatpush3.msra.mxu0 %v7158_v61  ;;  %v7171_v61 = vld [vmem:[#allocation17_spill] sm:$0xff] }
 0x191   :  { %4482 = vmatprep.subr.mxu1 %v5573_v16  ;;  %4340 = vmatprep.mubr.f32.mxu0 %v5872_v24 }
 0x192   :  { %4402 = vmatprep.mubr.f32.mxu1 %v7160_v4  ;;  %4420 = vmatprep.subr.mxu0 %v7161_v57 }
 0x193   :  { %4483 = vmatpush3.msra.mxu1 %v5573_v16  ;;  %4421 = vmatpush3.msra.mxu0 %v7161_v57  ;;  %v6138_v24 = vpop.f32.mrf.mxu1  ;;  %v7173_v57 = vld [vmem:[#allocation19_spill] sm:$0xff] }
 0x194   :  { %4484 = vmatprep.subr.mxu1 %v5593_v28  ;;  %4422 = vmatprep.subr.mxu0 %v7162_v25 }
 0x195   :  { %4485 = vmatpush3.msra.mxu1 %v5593_v28  ;;  %4341 = vmatmul.mubr.f32.gmra.mxu0 %v5893_v60  ;;  %v6152_v28 = vpop.f32.mrf.mxu1  ;;  %v7166_v60 = vld [vmem:[#allocation12_spill] sm:$0xff] }
 0x196   :  { %4403 = vmatmul.mubr.f32.gmra.mxu1 %v7163_v47  ;;  %4423 = vmatpush3.msra.mxu0 %v7162_v25  ;;  %v7175_v47 = vld [vmem:[#allocation21_spill] sm:$0xff] }
 0x197   :  { %v6143_v16 = vpop.f32.mrf.mxu0  ;;  %4486 = vmatprep.subr.mxu1 %v5610_v22  ;;  %4343 = vmatprep.mubr.f32.mxu0 %v5904_v46 }
 0x198   :  { %4405 = vmatprep.mubr.f32.mxu1 %v7164_v7  ;;  %4424 = vmatprep.subr.mxu0 %v7165_v27 }
 0x199   :  { %4487 = vmatpush3.msra.mxu1 %v5610_v22  ;;  %4425 = vmatpush3.msra.mxu0 %v7165_v27  ;;  %v6156_v12 = vpop.f32.mrf.mxu0 }
 0x19a   :  { %4488 = vmatprep.subr.mxu1 %v5630_v50  ;;  %4426 = vmatprep.subr.mxu0 %v7166_v60  ;;  %v3956_v46 = vpop.f32.mrf.mxu1 }
 0x19b   :  { %4489 = vmatpush3.msra.mxu1 %v5630_v50  ;;  %4344 = vmatmul.mubr.f32.gmra.mxu0 %v5923_v51  ;;  %v7168_v51 = vld [vmem:[#allocation14_spill] sm:$0xff] }
 0x19c   :  { %4406 = vmatmul.mubr.f32.gmra.mxu1 %v2041_v9  ;;  %4427 = vmatpush3.msra.mxu0 %v7166_v60  ;;  %v982_v50 = vpop.f32.mrf.mxu1 }
 0x19d   :  { %v6163_v22 = vpop.f32.mrf.mxu0  ;;  %4490 = vmatprep.subr.mxu1 %v5648_v30  ;;  %4346 = vmatprep.mubr.f32.mxu0 %v5934_v15 }
 0x19e   :  { %4408 = vmatprep.mubr.f32.mxu1 %v2051_v19  ;;  %4428 = vmatprep.subr.mxu0 %v7167_v38  ;;  %v3959_v15 = vpop.f32.mrf.mxu1 }
 0x19f   :  { %4491 = vmatpush3.msra.mxu1 %v5648_v30  ;;  %4429 = vmatpush3.msra.mxu0 %v7167_v38  ;;  %v6174_v9 = vpop.f32.mrf.mxu0 }
 0x1a0   :  { %4492 = vmatprep.subr.mxu1 %v5668_v41  ;;  %4430 = vmatprep.subr.mxu0 %v7168_v51 }
 0x1a1   :  { %4493 = vmatpush3.msra.mxu1 %v5668_v41  ;;  %4347 = vmatmul.mubr.f32.gmra.mxu0 %v5953_v14 }
 0x1a2   :  { %4409 = vmatmul.mubr.f32.gmra.mxu1 %v2061_v44  ;;  %4431 = vmatpush3.msra.mxu0 %v7168_v51  ;;  %v3900_v30 = vpop.f32.mrf.mxu0  ;;  %v994_v44 = vpop.f32.mrf.mxu1  ;;  %v3170_v51 = vld [vmem:[%s6950_s2 + $0x10] sm:$0xff] }
 0x1a3   :  { %4494 = vmatprep.subr.mxu1 %v5686_v34  ;;  %4349 = vmatprep.mubr.f32.mxu0 %v5964_v62  ;;  %v6183_v19 = vadd.f32 %v3956_v46, %v3900_v30  ;;  %v3171_v46 = vld [vmem:[%s6950_s2 + $0x18] sm:$0xff] }
 0x1a4   :  { %4411 = vmatprep.mubr.f32.mxu1 %v2071_v8  ;;  %4432 = vmatprep.subr.mxu0 %v7169_v37  ;;  %v713_v41 = vpop.f32.mrf.mxu0  ;;  %v3962_v32 = vpop.f32.mrf.mxu1 }
 0x1a5   :  { %4495 = vmatpush3.msra.mxu1 %v5686_v34  ;;  %4433 = vmatpush3.msra.mxu0 %v7169_v37  ;;  %v6190_v14 = vadd.f32 %v982_v50, %v713_v41  ;;  %v3173_v37 = vld [vmem:[%s6950_s2 + $0x28] sm:$0xff] }
 0x1a6   :  { %4496 = vmatprep.subr.mxu1 %v5706_v33  ;;  %4434 = vmatprep.subr.mxu0 %v7170_v18  ;;  %v3903_v62 = vpop.f32.mrf.mxu0  ;;  %v7178_v41 = vld [vmem:[#allocation24_spill] sm:$0xff] }
 0x1a7   :  { %4497 = vmatpush3.msra.mxu1 %v5706_v33  ;;  %4350 = vmatmul.mubr.f32.gmra.mxu0 %v5983_v17  ;;  %v6196_v8 = vadd.f32 %v3959_v15, %v3903_v62  ;;  %v1006_v33 = vpop.f32.mrf.mxu1  ;;  %v7177_v15 = vld [vmem:[#allocation22_spill] sm:$0xff] }
 0x1a8   :  { %4412 = vmatmul.mubr.f32.gmra.mxu1 %v2081_v5  ;;  %4435 = vmatpush3.msra.mxu0 %v7170_v18  ;;  %v733_v34 = vpop.f32.mrf.mxu0  ;;  %v7172_v5 = vld [vmem:[#allocation18_spill] sm:$0xff]  ;;  %v3172_v18 = vld [vmem:[%s6950_s2 + $0x20] sm:$0xff] }
 0x1a9   :  { %4498 = vmatprep.subr.mxu1 %v5724_v2  ;;  %4352 = vmatprep.mubr.f32.mxu0 %v5994_v40  ;;  %v6203_v45 = vadd.f32 %v994_v44, %v733_v34  ;;  %v3175_v62 = vld [vmem:[%s6950_s2 + $0x38] sm:$0xff] }
 0x1aa   :  { %4436 = vmatprep.subr.mxu0 %v7171_v61  ;;  %4499 = vmatpush3.msra.mxu1 %v5724_v2 }
 0x1ab   :  { %4502 = vmatprep.mubr.f32.mxu1 %v5798_v39  ;;  %4437 = vmatpush3.msra.mxu0 %v7171_v61 }
 0x1ac   :  { %v3906_v17 = vpop.f32.mrf.mxu0  ;;  %4500 = vmatprep.subr.mxu1 %v5746_v3  ;;  %4438 = vmatprep.subr.mxu0 %v7172_v5 }
 0x1ad   :  { %v6211_v58 = vadd.f32 %v3962_v32, %v3906_v17  ;;  %4501 = vmatpush3.msra.mxu1 %v5746_v3  ;;  %4353 = vmatmul.mubr.f32.gmra.mxu0 %v6012_v31  ;;  %v3965_v40 = vpop.f32.mrf.mxu1  ;;  %v7174_v3 = vld [vmem:[#allocation20_spill] sm:$0xff]  ;;  %v3176_v17 = vld [vmem:[%s6950_s2 + $0x40] sm:$0xff] }
 0x1ae   :  { %v753_v4 = vpop.f32.mrf.mxu0  ;;  %4439 = vmatpush3.msra.mxu0 %v7172_v5  ;;  %4503 = vmatmul.mubr.f32.vlgmr.msra.gmra.mxu1 %v5808_v48 }
 0x1af   :  { %v6217_v2 = vadd.f32 %v1006_v33, %v753_v4  ;;  %4355 = vmatprep.mubr.f32.mxu0 %v6023_v43  ;;  %4440 = vmatprep.subr.mxu0 %v7173_v57  ;;  %v1018_v25 = vpop.f32.mrf.mxu1  ;;  %v3169_v43 = vld [vmem:[%s6950_s2 + $0x8] sm:$0xff]  ;;  %v3179_v4 = vld [vmem:[%s6950_s2 + $0x58] sm:$0xff] }
 0x1b0   :  { %4505 = vmatprep.mubr.f32.mxu1 %v5818_v56  ;;  %4441 = vmatpush3.msra.mxu0 %v7173_v57  ;;  %v3177_v33 = vld [vmem:[%s6950_s2 + $0x48] sm:$0xff] }
 0x1b1   :  { %4442 = vmatprep.subr.mxu0 %v7174_v3  ;;  %4356 = vmatmul.mubr.f32.gmra.mxu0 %v6038_v13  ;;  %v6225_v31 = vpop.f32.mrf.mxu1  ;;  %v3168_v13 = vld [vmem:[%s6950_s2] sm:$0xff] }
 0x1b2   :  { %4443 = vmatpush3.msra.mxu0 %v7174_v3  ;;  %4506 = vmatmul.mubr.f32.gmra.mxu1 %v5833_v35  ;;  %v3178_v3 = vld [vmem:[%s6950_s2 + $0x50] sm:$0xff] }
 0x1b3   :  { %4444 = vmatprep.subr.mxu0 %v7175_v47  ;;  %4446 = vmatprep.mubr.f32.mxu0 %v5798_v39  ;;  %v6234_v7 = vpop.f32.mrf.mxu1 }
 0x1b4   :  { %4508 = vmatprep.mubr.f32.mxu1 %v5844_v42  ;;  %4445 = vmatpush3.msra.mxu0 %v7175_v47 }
 0x1b5   :  { %4447 = vmatmul.mubr.f32.vlgmr.msra.gmra.mxu0 %v5808_v48  ;;  %v3909_v27 = vpop.f32.mrf.mxu0  ;;  %v6242_v60 = vpop.f32.mrf.mxu1  ;;  %3202 = vrot.lane.b32.xlu0 %v3169_v43, %s4673_s29 }
 0x1b6   :  { %4509 = vmatmul.mubr.f32.gmra.mxu1 %v5869_v26  ;;  %4449 = vmatprep.mubr.f32.mxu0 %v5818_v56  ;;  %v6247_v39 = vadd.f32 %v3965_v40, %v3909_v27  ;;  %v3183_v27 = vld [vmem:[%s6950_s2 + $0x78] sm:$0xff] }
 0x1b7   :  { %4511 = vmatprep.mubr.f32.mxu1 %v5883_v59  ;;  %v773_v38 = vpop.f32.mrf.mxu0  ;;  %v6253_v48 = vpop.f32.mrf.mxu1  ;;  %3200 = vrot.lane.b32.xlu1 %v3168_v13, %s4673_s29 }
 0x1b8   :  { %v6256_v50 = vadd.f32 %v1018_v25, %v773_v38 }
 0x1b9   :  { %4450 = vmatmul.mubr.f32.gmra.mxu0 %v5833_v35  ;;  %v6262_v56 = vpop.f32.mrf.mxu0  ;;  %3206 = vrot.lane.b32.xlu0 %v3171_v46, %s4673_s29  ;;  %v3182_v46 = vld [vmem:[%s6950_s2 + $0x70] sm:$0xff] }
 0x1ba   :  { %7176 = vst [vmem:[#allocation28_spill] sm:$0xff] %v6256_v50  ;;  %4512 = vmatmul.mubr.f32.gmra.mxu1 %v7177_v15  ;;  %4452 = vmatprep.mubr.f32.mxu0 %v5844_v42  ;;  %v6267_v30 = vpop.f32.mrf.mxu1  ;;  %v7179_v42 = vld [vmem:[#allocation26_spill] sm:$0xff]  ;;  %v953_v50 = vadd.f32 %v6094_v11, %v6121_v20 }
 0x1bb   :  { %4514 = vmatprep.mubr.f32.mxu1 %v7178_v41  ;;  %v6273_v44 = vpop.f32.mrf.mxu0  ;;  %3204 = vrot.lane.b32.xlu1 %v3170_v51, %s4673_s29 }
 0x1bc   :  { %v6276_v35 = vpop.f32.mrf.mxu1 }
 0x1bd   :  { %4453 = vmatmul.mubr.f32.gmra.mxu0 %v5869_v26  ;;  %3210 = vrot.lane.b32.xlu0 %v3173_v37, %s4673_s29  ;;  %v3174_v26 = vld [vmem:[%s6950_s2 + $0x30] sm:$0xff] }
 0x1be   :  { %4515 = vmatmul.mubr.f32.gmra.mxu1 %v7179_v42  ;;  %4455 = vmatprep.mubr.f32.mxu0 %v5883_v59 }
 0x1bf   :  { %4517 = vmatprep.mubr.f32.mxu1 %v5942_v52  ;;  %v6289_v32 = vpop.f32.mrf.mxu0  ;;  %3208 = vrot.lane.b32.xlu1 %v3172_v18, %s4673_s29 }
 0x1c0   :  { %v6292_v34 = vpop.f32.mrf.mxu1 }
 0x1c1   :  { %4456 = vmatmul.mubr.f32.gmra.mxu0 %v7177_v15  ;;  %v6298_v61 = vpop.f32.mrf.mxu0  ;;  %3214 = vrot.lane.b32.xlu0 %v3175_v62, %s4673_s29 }
 0x1c2   :  { %4518 = vmatmul.mubr.f32.gmra.mxu1 %v5961_v6  ;;  %4458 = vmatprep.mubr.f32.mxu0 %v7178_v41  ;;  %v6303_v59 = vpop.f32.mrf.mxu1 }
 0x1c3   :  { %4520 = vmatprep.mubr.f32.mxu1 %v5972_v54  ;;  %3212 = vrot.lane.b32.xlu1 %v3174_v26, %s4673_s29 }
 0x1c5   :  { %4459 = vmatmul.mubr.f32.gmra.mxu0 %v7179_v42  ;;  %v6314_v5 = vpop.f32.mrf.mxu0  ;;  %3218 = vrot.lane.b32.xlu0 %v3177_v33, %s4673_s29  ;;  %v941_v33 = vadd.f32 %v6076_v1, %v6099_v55 }
 0x1c6   :  { %4521 = vmatmul.mubr.f32.gmra.mxu1 %v5991_v10  ;;  %4461 = vmatprep.mubr.f32.mxu0 %v5942_v52  ;;  %v6319_v40 = vpop.f32.mrf.mxu1  ;;  %v3181_v52 = vld [vmem:[%s6950_s2 + $0x68] sm:$0xff] }
 0x1c7   :  { %4523 = vmatprep.mubr.f32.mxu1 %v6002_v23  ;;  %v6325_v57 = vpop.f32.mrf.mxu0  ;;  %3216 = vrot.lane.b32.xlu1 %v3176_v17, %s4673_s29 }
 0x1c8   :  { %v6328_v25 = vpop.f32.mrf.mxu1 }
 0x1c9   :  { %4462 = vmatmul.mubr.f32.gmra.mxu0 %v5961_v6  ;;  %3222 = vrot.lane.b32.xlu0 %v3179_v4, %s4673_s29  ;;  %v3180_v6 = vld [vmem:[%s6950_s2 + $0x60] sm:$0xff]  ;;  %v935_v4 = vadd.f32 %v6088_v53, %v6112_v0  ;;  %v947_v53 = vadd.f32 %v6108_v36, %v6134_v29  ;;  %v1150_v0 = vadd.f32 %v6289_v32, %v953_v50  ;;  %s3466_s2 = sld [smem:[#allocation2 + $0x2]] }
 0x1ca   :  { %4524 = vmatmul.mubr.f32.gmra.mxu1 %v6020_v49  ;;  %4464 = vmatprep.mubr.f32.mxu0 %v5972_v54  ;;  %v959_v50 = vadd.f32 %v6130_v21, %v6156_v12  ;;  %v977_v12 = vadd.f32 %v6138_v24, %v6163_v22 }
 0x1cb   :  { %v6340_v43 = vpop.f32.mrf.mxu0  ;;  %3220 = vrot.lane.b32.xlu1 %v3178_v3, %s4673_s29  ;;  %v1136_v3 = vadd.f32 %v6262_v56, %v941_v33 }
 0x1cc   :  { %v6343_v47 = vpop.f32.mrf.mxu1 }
 0x1cd   :  { %4465 = vmatmul.mubr.f32.gmra.mxu0 %v5991_v10  ;;  %v6349_v13 = vpop.f32.mrf.mxu0  ;;  %3226 = vrot.lane.b32.xlu0 %v3181_v52, %s4673_s29  ;;  %v1331_v1 = vadd.f32 %v6225_v31, %v1136_v3  ;;  %v965_v31 = vadd.f32 %v6116_v63, %v6143_v16 }
 0x1ce   :  { %4467 = vmatprep.mubr.f32.mxu0 %v6002_v23  ;;  %v6353_v54 = vpop.f32.mrf.mxu1 }
 0x1cf   :  { %3224 = vrot.lane.b32.xlu1 %v3180_v6, %s4673_s29 }
 0x1d1   :  { %4468 = vmatmul.mubr.f32.gmra.mxu0 %v6020_v49  ;;  %v6363_v10 = vpop.f32.mrf.mxu0  ;;  %3230 = vrot.lane.b32.xlu0 %v3183_v27, %s4673_s29  ;;  %v1129_v27 = vadd.f32 %v6273_v44, %v935_v4 }
 0x1d2   :  { %v6366_v38 = vpop.f32.mrf.mxu1 }
 0x1d3   :  { %v6368_v23 = vpop.f32.mrf.mxu0  ;;  %3228 = vrot.lane.b32.xlu1 %v3182_v46, %s4673_s29  ;;  %s3469_s29 = sld [smem:[#allocation2 + $0x5]] }
 0x1d4   :  { %v6371_v51 = vpop.f32.mrf.mxu1 }
 0x1d7   :  { %v6373_v15 = vpop.f32.mrf.mxu0 }
 0x1d8   :  { %v6375_v37 = vpop.f32.mrf.mxu1 }
 0x1d9   :  { %7180 = vst [vmem:[#allocation29_spill] sm:$0xff] %v6375_v37  ;;  %v6377_v41 = vpop.f32.mrf.mxu0 }
 0x1da   :  { %v6379_v18 = vpop.f32.mrf.mxu1 }
 0x1db   :  { %7181 = vst [vmem:[#allocation31_spill] sm:$0xff] %v6379_v18  ;;  %v7183_v18 = vlaneseq }
 0x1dd   :  { %v6381_v49 = vpop.f32.mrf.mxu0  ;;  %v6396_v37 = vand.u32 127, %v7183_v18  ;;  %v1143_v18 = vadd.f32 %v6298_v61, %v947_v53  ;;  %v1164_v61 = vadd.f32 %v6314_v5, %v965_v31 }
 0x1de   :  { %v4168_v42 = vpop.f32.mrf.mxu1 }
 0x1df   :  { %v6383_v62 = vpop.f32.mrf.mxu0  ;;  %vm3363_vm0 = vcmp.eq.s32.totalorder %v6396_v37, 24  ;;  %v1339_v3 = vadd.f32 %v6253_v48, %v1143_v18  ;;  %v971_v48 = vadd.f32 %v6152_v28, %v6174_v9 }
 0x1e0   :  { %v1738_v26 = vpop.f32.mrf.mxu1 }
 0x1e3   :  { %v6387_v17 = vpop.f32.mrf.mxu0 }
 0x1e4   :  { %v4171_v52 = vpop.f32.mrf.mxu1 }
 0x1e5   :  { %v6392_v6 = vpop.f32.mrf.mxu0 }
 0x1e6   :  { %7182 = vst [vmem:[#allocation30_spill] sm:$0xff] %v6392_v6  ;;  %v1750_v46 = vpop.f32.mrf.mxu1  ;;  %v1323_v6 = vadd.f32 %v6234_v7, %v1129_v27  ;;  %v1347_v7 = vadd.f32 %v6242_v60, %v1150_v0 }
 0x1e9   :  { %v4112_v55 = vpop.f32.mrf.mxu0 }
 0x1ea   :  { %v1568_v56 = vadd.f32 %v4112_v55, %v1331_v1  ;;  %v4174_v33 = vpop.f32.mrf.mxu1  ;;  %v1363_v55 = vadd.f32 %v6267_v30, %v1164_v61 }
 0x1eb   :  { %v1561_v44 = vpop.f32.mrf.mxu0 }
 0x1ec   :  { %v6407_v4 = vadd.f32 %v4168_v42, %v1568_v56  ;;  %v1562_v11 = vadd.f32 %v1561_v44, %v1323_v6  ;;  %v1762_v20 = vpop.f32.mrf.mxu1  ;;  %v1157_v6 = vadd.f32 %v6325_v57, %v959_v50  ;;  %v1171_v56 = vadd.f32 %v6349_v13, %v971_v48 }
 0x1ee   :  { %v3365_v36 = vsel %vm3363_vm0, 0.0, %v6407_v4  ;;  %v6414_v29 = vadd.f32 %v1738_v26, %v1562_v11  ;;  %v1355_v0 = vadd.f32 %v6276_v35, %v1157_v6  ;;  %v1192_v35 = vadd.f32 %v6363_v10, %v6183_v19 }
 0x1ef   :  { %3381 = vst [vmem:[#allocation5 + $0x8] sm:$0xff] %v3365_v36  ;;  %v4115_v32 = vpop.f32.mrf.mxu0  ;;  %v1371_v36 = vadd.f32 %v6303_v59, %v1171_v56  ;;  %v1206_v59 = vadd.f32 %v6373_v15, %v6196_v8 }
 0x1f0   :  { %v3364_v42 = vsel %vm3363_vm0, 0.0, %v6414_v29  ;;  %v1580_v63 = vadd.f32 %v4115_v32, %v1347_v7  ;;  %v4177_v16 = vpop.f32.mrf.mxu1  ;;  %v1395_v61 = vadd.f32 %v6319_v40, %v1192_v35  ;;  %v7190_v35 = vld [vmem:[#allocation29_spill] sm:$0xff] }
 0x1f1   :  { %3380 = vst [vmem:[#allocation5] sm:$0xff] %v3364_v42  ;;  %v1573_v26 = vpop.f32.mrf.mxu0 }
 0x1f2   :  { %v6425_v60 = vadd.f32 %v4171_v52, %v1580_v63  ;;  %v1574_v27 = vadd.f32 %v1573_v26, %v1339_v3  ;;  %v1774_v21 = vpop.f32.mrf.mxu1  ;;  %v1178_v52 = vadd.f32 %v6340_v43, %v977_v12  ;;  %v1199_v26 = vadd.f32 %v6377_v41, %v6203_v45 }
 0x1f4   :  { %v3367_v5 = vsel %vm3363_vm0, 0.0, %v6425_v60  ;;  %v6432_v1 = vadd.f32 %v1750_v46, %v1574_v27  ;;  %v1379_v18 = vadd.f32 %v6292_v34, %v1178_v52 }
 0x1f5   :  { %3383 = vst [vmem:[#allocation5 + $0x18] sm:$0xff] %v3367_v5  ;;  %v4118_v57 = vpop.f32.mrf.mxu0 }
 0x1f6   :  { %v3366_v53 = vsel %vm3363_vm0, 0.0, %v6432_v1  ;;  %v1592_v24 = vadd.f32 %v4118_v57, %v1363_v55  ;;  %v4180_v22 = vpop.f32.mrf.mxu1  ;;  %v1403_v55 = vadd.f32 %v6353_v54, %v1199_v26  ;;  %v1213_v57 = vadd.f32 %v6383_v62, %v6217_v2 }
 0x1f7   :  { %3382 = vst [vmem:[#allocation5 + $0x10] sm:$0xff] %v3366_v53  ;;  %v1585_v46 = vpop.f32.mrf.mxu0  ;;  %v1234_v54 = vadd.f32 %v6387_v17, %v6247_v39 }
 0x1f8   :  { %v6443_v30 = vadd.f32 %v4174_v33, %v1592_v24  ;;  %v1586_v44 = vadd.f32 %v1585_v46, %v1355_v0  ;;  %v1786_v28 = vpop.f32.mrf.mxu1  ;;  %v1419_v46 = vadd.f32 %v6371_v51, %v1213_v57 }
 0x1fa   :  { %v3369_v9 = vsel %vm3363_vm0, 0.0, %v6443_v30  ;;  %v6448_v43 = vadd.f32 %v1762_v20, %v1586_v44  ;;  %v1185_v20 = vadd.f32 %v6368_v23, %v6190_v14  ;;  %v7186_v44 = vld [vmem:[#allocation28_spill] sm:$0xff] }
 0x1fb   :  { %3385 = vst [vmem:[#allocation5 + $0x28] sm:$0xff] %v3369_v9  ;;  %v4121_v11 = vpop.f32.mrf.mxu0 }
 0x1fc   :  { %v3368_v13 = vsel %vm3363_vm0, 0.0, %v6448_v43  ;;  %v1604_v33 = vadd.f32 %v4121_v11, %v1379_v18  ;;  %v4183_v31 = vpop.f32.mrf.mxu1 }
 0x1fd   :  { %3384 = vst [vmem:[#allocation5 + $0x20] sm:$0xff] %v3368_v13  ;;  %v1597_v7 = vpop.f32.mrf.mxu0  ;;  %v1443_v13 = vadd.f32 %v7190_v35, %v1234_v54 }
 0x1fe   :  { %v6459_v50 = vadd.f32 %v4177_v16, %v1604_v33  ;;  %v1598_v34 = vadd.f32 %v1597_v7, %v1371_v36  ;;  %v1798_v32 = vpop.f32.mrf.mxu1  ;;  %v1387_v16 = vadd.f32 %v6328_v25, %v1185_v20  ;;  %v1220_v25 = vadd.f32 %v6381_v49, %v6211_v58  ;;  %v7191_v7 = vld [vmem:[#allocation31_spill] sm:$0xff] }
 0x200   :  { %v3371_v19 = vsel %vm3363_vm0, 0.0, %v6459_v50  ;;  %v6464_v10 = vadd.f32 %v1774_v21, %v1598_v34  ;;  %v1411_v21 = vadd.f32 %v6343_v47, %v1206_v59  ;;  %v1427_v24 = vadd.f32 %v6366_v38, %v1220_v25 }
 0x201   :  { %3387 = vst [vmem:[#allocation5 + $0x38] sm:$0xff] %v3371_v19  ;;  %v4124_v42 = vpop.f32.mrf.mxu0 }
 0x202   :  { %v3370_v14 = vsel %vm3363_vm0, 0.0, %v6464_v10  ;;  %v1616_v23 = vadd.f32 %v4124_v42, %v1395_v61  ;;  %v4186_v63 = vpop.f32.mrf.mxu1 }
 0x203   :  { %3386 = vst [vmem:[#allocation5 + $0x30] sm:$0xff] %v3370_v14  ;;  %v1609_v3 = vpop.f32.mrf.mxu0 }
 0x204   :  { %v6475_v6 = vadd.f32 %v4180_v22, %v1616_v23  ;;  %v1610_v40 = vadd.f32 %v1609_v3, %v1387_v16  ;;  %v1810_v27 = vpop.f32.mrf.mxu1 }
 0x206   :  { %v3373_v8 = vsel %vm3363_vm0, 0.0, %v6475_v6  ;;  %v6480_v15 = vadd.f32 %v1786_v28, %v1610_v40  ;;  %v7187_v28 = vld [vmem:[#allocation30_spill] sm:$0xff] }
 0x207   :  { %3389 = vst [vmem:[#allocation5 + $0x48] sm:$0xff] %v3373_v8  ;;  %v4127_v12 = vpop.f32.mrf.mxu0  ;;  %v1227_v9 = vadd.f32 %v7187_v28, %v7186_v44 }
 0x208   :  { %v3372_v45 = vsel %vm3363_vm0, 0.0, %v6480_v15  ;;  %v1628_v41 = vadd.f32 %v4127_v12, %v1411_v21  ;;  %v4189_v5 = vpop.f32.mrf.mxu1 }
 0x209   :  { %3388 = vst [vmem:[#allocation5 + $0x40] sm:$0xff] %v3372_v45  ;;  %v1621_v48 = vpop.f32.mrf.mxu0  ;;  %v1435_v20 = vadd.f32 %v7191_v7, %v1227_v9 }
 0x20a   :  { %v6491_v52 = vadd.f32 %v4183_v31, %v1628_v41  ;;  %v1622_v47 = vadd.f32 %v1621_v48, %v1403_v55  ;;  %v1822_v53 = vpop.f32.mrf.mxu1 }
 0x20c   :  { %7184 = vst [vmem:[#allocation32_spill] sm:$0xff] %v6491_v52  ;;  %v3375_v58 = vsel %vm3363_vm0, 0.0, %v6491_v52  ;;  %v6496_v49 = vadd.f32 %v1798_v32, %v1622_v47 }
 0x20d   :  { %3391 = vst [vmem:[#allocation5 + $0x58] sm:$0xff] %v3375_v58  ;;  %v4130_v22 = vpop.f32.mrf.mxu0 }
 0x20e   :  { %7185 = vst [vmem:[#allocation33_spill] sm:$0xff] %v6496_v49  ;;  %v3374_v2 = vsel %vm3363_vm0, 0.0, %v6496_v49  ;;  %v1640_v62 = vadd.f32 %v4130_v22, %v1427_v24  ;;  %v6504_v0 = vpop.f32.mrf.mxu1 }
 0x20f   :  { %3390 = vst [vmem:[#allocation5 + $0x50] sm:$0xff] %v3374_v2  ;;  %v1633_v56 = vpop.f32.mrf.mxu0 }
 0x210   :  { %v6509_v38 = vadd.f32 %v4186_v63, %v1640_v62  ;;  %v1634_v18 = vadd.f32 %v1633_v56, %v1419_v46  ;;  %v6511_v11 = vpop.f32.mrf.mxu1 }
 0x212   :  { %7188 = vst [vmem:[#allocation34_spill] sm:$0xff] %v6509_v38  ;;  %v3377_v39 = vsel %vm3363_vm0, 0.0, %v6509_v38  ;;  %v6516_v17 = vadd.f32 %v1810_v27, %v1634_v18 }
 0x213   :  { %3393 = vst [vmem:[#allocation5 + $0x68] sm:$0xff] %v3377_v39  ;;  %v4133_v51 = vpop.f32.mrf.mxu0 }
 0x214   :  { %7189 = vst [vmem:[#allocation35_spill] sm:$0xff] %v6516_v17  ;;  %v3376_v33 = vsel %vm3363_vm0, 0.0, %v6516_v17  ;;  %v1652_v31 = vadd.f32 %v4133_v51, %v1443_v13  ;;  %v6522_v36 = vpop.f32.mrf.mxu1 }
 0x215   :  { %3392 = vst [vmem:[#allocation5 + $0x60] sm:$0xff] %v3376_v33  ;;  %v1645_v34 = vpop.f32.mrf.mxu0 }
 0x216   :  { %v6525_v32 = vadd.f32 %v4189_v5, %v1652_v31  ;;  %v1646_v19 = vadd.f32 %v1645_v34, %v1435_v20  ;;  %v6527_v61 = vpop.f32.mrf.mxu1 }
 0x218   :  { %7192 = vst [vmem:[#allocation36_spill] sm:$0xff] %v6525_v32  ;;  %v3379_v42 = vsel %vm3363_vm0, 0.0, %v6525_v32  ;;  %v6532_v59 = vadd.f32 %v1822_v53, %v1646_v19 }
 0x219   :  { %3395 = vst [vmem:[#allocation5 + $0x78] sm:$0xff] %v3379_v42  ;;  %v6534_v14 = vpop.f32.mrf.mxu0 }
 0x21a   :  { %7193 = vst [vmem:[#allocation37_spill] sm:$0xff] %v6532_v59  ;;  %v3378_v23 = vsel %vm3363_vm0, 0.0, %v6532_v59  ;;  %v6539_v63 = vpop.f32.mrf.mxu1 }
 0x21b   :  { %3394 = vst [vmem:[#allocation5 + $0x70] sm:$0xff] %v3378_v23  ;;  %v6541_v16 = vpop.f32.mrf.mxu0 }
 0x21c   :  { %v6543_v3 = vpop.f32.mrf.mxu1 }
 0x21f   :  { %v6545_v26 = vpop.f32.mrf.mxu0 }
 0x220   :  { %v6547_v40 = vpop.f32.mrf.mxu1 }
 0x221   :  { %v6549_v27 = vpop.f32.mrf.mxu0 }
 0x222   :  { %v6551_v8 = vpop.f32.mrf.mxu1 }
 0x225   :  { %v6553_v21 = vpop.f32.mrf.mxu0 }
 0x226   :  { %v6555_v12 = vpop.f32.mrf.mxu1 }
 0x227   :  { %v6557_v25 = vpop.f32.mrf.mxu0 }
 0x228   :  { %v6559_v45 = vpop.f32.mrf.mxu1 }
 0x22b   :  { %v6561_v41 = vpop.f32.mrf.mxu0 }
 0x22c   :  { %v6563_v5 = vpop.f32.mrf.mxu1 }
 0x22d   :  { %v6565_v55 = vpop.f32.mrf.mxu0 }
 0x22e   :  { %v6567_v48 = vpop.f32.mrf.mxu1 }
 0x231   :  { %v6569_v57 = vpop.f32.mrf.mxu0 }
 0x232   :  { %v6571_v47 = vpop.f32.mrf.mxu1 }
 0x233   :  { %v6573_v53 = vpop.f32.mrf.mxu0 }
 0x234   :  { %v6575_v58 = vpop.f32.mrf.mxu1 }
 0x237   :  { %v6577_v24 = vpop.f32.mrf.mxu0 }
 0x238   :  { %v6579_v22 = vpop.f32.mrf.mxu1 }
 0x239   :  { %v6581_v54 = vpop.f32.mrf.mxu0 }
 0x23a   :  { %v6583_v2 = vpop.f32.mrf.mxu1 }
 0x23b   :  { %7194 = vst [vmem:[#allocation38_spill] sm:$0xff] %v6583_v2 }
 0x23d   :  { %v6585_v62 = vpop.f32.mrf.mxu0 }
 0x23e   :  { %v4392_v46 = vpop.f32.mrf.mxu1 }
 0x23f   :  { %v6587_v56 = vpop.f32.mrf.mxu0 }
 0x240   :  { %v6589_v44 = vpop.f32.mrf.mxu1 }
 0x243   :  { %v6591_v28 = vpop.f32.mrf.mxu0 }
 0x244   :  { %v6593_v9 = vpop.f32.mrf.mxu1 }
 0x245   :  { %v6595_v18 = vpop.f32.mrf.mxu0 }
 0x246   :  { %7195 = vst [vmem:[#allocation39_spill] sm:$0xff] %v6595_v18  ;;  %v6597_v39 = vpop.f32.mrf.mxu1 }
 0x249   :  { %v4336_v35 = vpop.f32.mrf.mxu0 }
 0x24a   :  { %v6599_v13 = vpop.f32.mrf.mxu1 }
 0x24b   :  { %v2430_v51 = vpop.f32.mrf.mxu0 }
 0x24c   :  { %v6601_v33 = vpop.f32.mrf.mxu1 }
 0x24d   :  { %7196 = vst [vmem:[#allocation40_spill] sm:$0xff] %v6601_v33 }
 0x24f   :  { %v4339_v31 = vpop.f32.mrf.mxu0 }
 0x250   :  { %v6603_v7 = vpop.f32.mrf.mxu1 }
 0x251   :  { %7197 = vst [vmem:[#allocation41_spill] sm:$0xff] %v6603_v7  ;;  %v2444_v20 = vpop.f32.mrf.mxu0 }
 0x252   :  { %v6605_v34 = vpop.f32.mrf.mxu1 }
 0x253   :  { %7198 = vst [vmem:[#allocation23_spill] sm:$0xff] %v6605_v34 }
 0x255   :  { %v4342_v19 = vpop.f32.mrf.mxu0 }
 0x256   :  { %v6607_v42 = vpop.f32.mrf.mxu1 }
 0x257   :  { %7199 = vst [vmem:[#allocation25_spill] sm:$0xff] %v6607_v42  ;;  %v6609_v23 = vpop.f32.mrf.mxu0 }
 0x258   :  { %v6611_v59 = vpop.f32.mrf.mxu1 }
 0x259   :  { %7200 = vst [vmem:[#allocation27_spill] sm:$0xff] %v6611_v59 }
 0x25b   :  { %v6613_v32 = vpop.f32.mrf.mxu0 }
 0x25c   :  { %v6615_v17 = vpop.f32.mrf.mxu1 }
 0x25d   :  { %7201 = vst [vmem:[#allocation11_spill] sm:$0xff] %v6615_v17  ;;  %v6617_v38 = vpop.f32.mrf.mxu0 }
 0x25e   :  { %7202 = vst [vmem:[#allocation12_spill] sm:$0xff] %v6617_v38  ;;  %v6619_v49 = vpop.f32.mrf.mxu1  ;;  %v6637_v38 = vpop.permute.xlu0 %3202 }
 0x25f   :  { %7203 = vst [vmem:[#allocation13_spill] sm:$0xff] %v6619_v49  ;;  %7212 = vst [vmem:[#allocation22_spill] sm:$0xff] %v6637_v38  ;;  %v6639_v49 = vpop.permute.xlu1 %3200 }
 0x260   :  { %7213 = vst [vmem:[#allocation24_spill] sm:$0xff] %v6639_v49 }
 0x261   :  { %v6621_v52 = vpop.f32.mrf.mxu0 }
 0x262   :  { %7204 = vst [vmem:[#allocation14_spill] sm:$0xff] %v6621_v52  ;;  %v6623_v7 = vpop.f32.mrf.mxu1  ;;  %v6651_v18 = vpop.permute.xlu0 %3206 }
 0x263   :  { %7205 = vst [vmem:[#allocation15_spill] sm:$0xff] %v6623_v7  ;;  %v6625_v34 = vpop.f32.mrf.mxu0  ;;  %v2243_v7 = vadd.f32 %v6504_v0, %v6534_v14  ;;  %v2255_v14 = vadd.f32 %v6522_v36, %v6545_v26 }
 0x264   :  { %7206 = vst [vmem:[#allocation16_spill] sm:$0xff] %v6625_v34  ;;  %v6627_v33 = vpop.f32.mrf.mxu1  ;;  %v6645_v34 = vstv %s3466_s2 }
 0x265   :  { %7207 = vst [vmem:[#allocation17_spill] sm:$0xff] %v6627_v33  ;;  %v6661_v0 = vadd.f32 %v6645_v34, %v6414_v29  ;;  %v6681_v36 = vadd.f32 %v6645_v34, %v6443_v30  ;;  %v2452_v26 = vadd.f32 %v4339_v31, %v2255_v14  ;;  %v2267_v30 = vadd.f32 %v6539_v63, %v6553_v21 }
 0x266   :  { %v6712_v21 = vpop.permute.xlu0 %3210 }
 0x267   :  { %v6629_v42 = vpop.f32.mrf.mxu0  ;;  %v2466_v14 = vadd.f32 %v4342_v19, %v2267_v30  ;;  %v7219_v30 = vld [vmem:[#allocation38_spill] sm:$0xff] }
 0x268   :  { %7208 = vst [vmem:[#allocation18_spill] sm:$0xff] %v6629_v42  ;;  %v6631_v59 = vpop.f32.mrf.mxu1 }
 0x269   :  { %7209 = vst [vmem:[#allocation19_spill] sm:$0xff] %v6631_v59  ;;  %v6633_v2 = vpop.f32.mrf.mxu0  ;;  %v2237_v59 = vadd.f32 %v6511_v11, %v6541_v16  ;;  %v6667_v11 = vadd.f32 %v6645_v34, %v6425_v60  ;;  %v6669_v16 = vpop.permute.xlu1 %3204  ;;  %v6689_v60 = vadd.f32 %v6645_v34, %v6459_v50  ;;  %v6705_v50 = vadd.f32 %v6645_v34, %v6480_v15 }
 0x26a   :  { %7210 = vst [vmem:[#allocation20_spill] sm:$0xff] %v6633_v2  ;;  %v6635_v17 = vpop.f32.mrf.mxu1  ;;  %v2438_v2 = vadd.f32 %v4336_v35, %v2243_v7  ;;  %v6673_v35 = vadd.f32 %v6645_v34, %v6432_v1  ;;  %v6691_v7 = vstv %s3469_s29  ;;  %v2285_v15 = vadd.f32 %v6559_v45, %v6573_v53 }
 0x26b   :  { %7211 = vst [vmem:[#allocation21_spill] sm:$0xff] %v6635_v17 }
 0x26d   :  { %v6641_v52 = vpop.f32.mrf.mxu0 }
 0x26e   :  { %7214 = vst [vmem:[#allocation26_spill] sm:$0xff] %v6641_v52  ;;  %v4504_v33 = vpop.f32.mrf.mxu1  ;;  %v6657_v52 = vadd.f32 %v6645_v34, %v6407_v4  ;;  %v2249_v4 = vadd.f32 %v6527_v61, %v6549_v27  ;;  %v6695_v61 = vadd.f32 %v6645_v34, %v6464_v10  ;;  %v2279_v10 = vadd.f32 %v6547_v40, %v6561_v41 }
 0x26f   :  { %v6647_v42 = vpop.f32.mrf.mxu0  ;;  %v6722_v40 = vadd.f32 %v6563_v5, %v6577_v24 }
 0x270   :  { %7215 = vst [vmem:[#allocation28_spill] sm:$0xff] %v6647_v42  ;;  %v3040_v17 = vpop.f32.mrf.mxu1  ;;  %v2431_v42 = vadd.f32 %v2430_v51, %v2237_v59  ;;  %v6685_v59 = vadd.f32 %v6645_v34, %v6448_v43  ;;  %v2633_v51 = vadd.f32 %v4392_v46, %v2438_v2  ;;  %v2445_v27 = vadd.f32 %v2444_v20, %v2249_v4  ;;  %v6725_v4 = vpop.permute.xlu1 %3208 }
 0x271   :  { %v6653_v38 = vpop.f32.mrf.mxu0  ;;  %v6701_v43 = vadd.f32 %v6645_v34, %v6475_v6  ;;  %v2261_v2 = vadd.f32 %v6543_v3, %v6557_v25  ;;  %v2273_v6 = vadd.f32 %v6551_v8, %v6565_v55  ;;  %v2291_v20 = vadd.f32 %v6555_v12, %v6569_v57 }
 0x272   :  { %v4507_v49 = vpop.f32.mrf.mxu1  ;;  %v2625_v63 = vadd.f32 %v6589_v44, %v2431_v42  ;;  %v2649_v42 = vadd.f32 %v6593_v9, %v2452_v26  ;;  %v6729_v8 = vadd.f32 %v6567_v48, %v6581_v54  ;;  %v6733_v12 = vadd.f32 %v6571_v47, %v6585_v62 }
 0x273   :  { %v6677_v29 = vpop.f32.mrf.mxu0  ;;  %v2459_v45 = vadd.f32 %v6609_v23, %v2261_v2  ;;  %v2641_v5 = vadd.f32 %v6597_v39, %v2445_v27  ;;  %v6742_v48 = vadd.f32 %v6575_v58, %v6587_v56  ;;  %v6746_v47 = vadd.f32 %v6579_v22, %v6591_v28  ;;  %v7217_v23 = vld [vmem:[#allocation22_spill] sm:$0xff]  ;;  %v6753_v58 = vpop.permute.xlu0 %3214  ;;  %v7218_v56 = vld [vmem:[#allocation39_spill] sm:$0xff]  ;;  %v7220_v28 = vld [vmem:[#allocation12_spill] sm:$0xff] }
 0x274   :  { %7216 = vst [vmem:[#allocation30_spill] sm:$0xff] %v6677_v29  ;;  %v3052_v1 = vpop.f32.mrf.mxu1  ;;  %v2480_v54 = vadd.f32 %v6613_v32, %v2279_v10  ;;  %v2665_v39 = vadd.f32 %v6599_v13, %v2466_v14  ;;  %v6757_v22 = vadd.f32 %v7219_v30, %v7218_v56  ;;  %v2473_v32 = vadd.f32 %v7220_v28, %v2273_v6  ;;  %v7221_v2 = vld [vmem:[#allocation40_spill] sm:$0xff] }
 0x275   :  { %v4448_v29 = vpop.f32.mrf.mxu0  ;;  %v2657_v10 = vadd.f32 %v7221_v2, %v2459_v45  ;;  %v7223_v6 = vld [vmem:[#allocation24_spill] sm:$0xff]  ;;  %v7228_v2 = vld [vmem:[#allocation25_spill] sm:$0xff] }
 0x276   :  { %v2870_v46 = vadd.f32 %v4448_v29, %v2633_v51  ;;  %v4510_v31 = vpop.f32.mrf.mxu1 }
 0x277   :  { %v2863_v3 = vpop.f32.mrf.mxu0 }
 0x278   :  { %v3047_v25 = vadd.f32 %v4504_v33, %v2870_v46  ;;  %v2864_v41 = vadd.f32 %v2863_v3, %v2625_v63  ;;  %v3064_v44 = vpop.f32.mrf.mxu1 }
 0x279   :  { %v4451_v55 = vpop.f32.mrf.mxu0 }
 0x27a   :  { %v3397_v57 = vsel %vm3363_vm0, 0.0, %v3047_v25  ;;  %v3041_v53 = vadd.f32 %v3040_v17, %v2864_v41  ;;  %v2882_v24 = vadd.f32 %v4451_v55, %v2649_v42  ;;  %v4513_v9 = vpop.f32.mrf.mxu1  ;;  %v3153_v33 = vadd.f32 %v6691_v7, %v3047_v25  ;;  %v6765_v25 = vpop.permute.xlu1 %3212  ;;  %v7222_v41 = vld [vmem:[#allocation14_spill] sm:$0xff] }
 0x27b   :  { %3413 = vst [vmem:[#allocation6 + $0x8] sm:$0xff] %v3397_v57  ;;  %v2875_v62 = vpop.f32.mrf.mxu0  ;;  %v2494_v42 = vadd.f32 %v7222_v41, %v2291_v20  ;;  %v7225_v20 = vld [vmem:[#allocation16_spill] sm:$0xff] }
 0x27c   :  { %v3396_v17 = vsel %vm3363_vm0, 0.0, %v3041_v53  ;;  %v3059_v19 = vadd.f32 %v4507_v49, %v2882_v24  ;;  %v3249_v29 = vmul.f32 %v7217_v23, %v3153_v33  ;;  %v2876_v26 = vadd.f32 %v2875_v62, %v2641_v5  ;;  %v3076_v51 = vpop.f32.mrf.mxu1 }
 0x27d   :  { %3412 = vst [vmem:[#allocation6] sm:$0xff] %v3396_v17  ;;  %v3152_v27 = vadd.f32 %v6691_v7, %v3041_v53  ;;  %v4454_v13 = vpop.f32.mrf.mxu0  ;;  %v7224_v53 = vld [vmem:[#allocation41_spill] sm:$0xff] }
 0x27e   :  { %v3399_v49 = vsel %vm3363_vm0, 0.0, %v3059_v19  ;;  %v3265_v46 = vadd.f32 %v3249_v29, %v6657_v52  ;;  %v3053_v63 = vadd.f32 %v3052_v1, %v2876_v26  ;;  %v2894_v14 = vadd.f32 %v4454_v13, %v2665_v39  ;;  %v4516_v3 = vpop.f32.mrf.mxu1 }
 0x27f   :  { %3415 = vst [vmem:[#allocation6 + $0x18] sm:$0xff] %v3399_v49  ;;  %v3248_v55 = vmul.f32 %v7223_v6, %v3152_v27  ;;  %v3155_v5 = vadd.f32 %v6691_v7, %v3059_v19  ;;  %v2887_v57 = vpop.f32.mrf.mxu0  ;;  %v2681_v45 = vadd.f32 %v7224_v53, %v2480_v54  ;;  %v2487_v39 = vadd.f32 %v7225_v20, %v2285_v15  ;;  %v7226_v54 = vld [vmem:[#allocation23_spill] sm:$0xff]  ;;  %v6782_v27 = vpop.permute.xlu0 %3218  ;;  %v7227_v15 = vld [vmem:[#allocation18_spill] sm:$0xff] }
 0x280   :  { %v3398_v24 = vsel %vm3363_vm0, 0.0, %v3053_v63  ;;  %v3071_v33 = vadd.f32 %v4510_v31, %v2894_v14  ;;  %v2888_v52 = vadd.f32 %v2887_v57, %v2657_v10  ;;  %v3088_v1 = vpop.f32.mrf.mxu1  ;;  %3298 = vrot.lane.b32.xlu0 %v3265_v46, %s4674_s11  ;;  %v3154_v62 = vadd.f32 %v6691_v7, %v3053_v63  ;;  %v3217_v63 = vpop.permute.xlu1 %3216 }
 0x281   :  { %3414 = vst [vmem:[#allocation6 + $0x10] sm:$0xff] %v3398_v24  ;;  %v3264_v17 = vadd.f32 %v3248_v55, %v6661_v0  ;;  %v3251_v19 = vmul.f32 %v6651_v18, %v3155_v5  ;;  %v4457_v23 = vpop.f32.mrf.mxu0  ;;  %v2673_v29 = vadd.f32 %v7226_v54, %v2473_v32  ;;  %v2508_v13 = vadd.f32 %v7227_v15, %v6722_v40  ;;  %v7229_v40 = vld [vmem:[#allocation20_spill] sm:$0xff]  ;;  %v7230_v55 = vld [vmem:[#allocation27_spill] sm:$0xff] }
 0x282   :  { %v3401_v31 = vsel %vm3363_vm0, 0.0, %v3071_v33  ;;  %v3065_v26 = vadd.f32 %v3064_v44, %v2888_v52  ;;  %v3250_v56 = vmul.f32 %v6669_v16, %v3154_v62  ;;  %v2906_v30 = vadd.f32 %v4457_v23, %v2681_v45  ;;  %v4519_v28 = vpop.f32.mrf.mxu1  ;;  %v7232_v52 = vld [vmem:[#allocation11_spill] sm:$0xff] }
 0x283   :  { %3417 = vst [vmem:[#allocation6 + $0x28] sm:$0xff] %v3401_v31  ;;  %v3267_v0 = vadd.f32 %v3251_v19, %v6667_v11  ;;  %3296 = vrot.lane.b32.xlu1 %v3264_v17, %s4674_s11  ;;  %v3157_v18 = vadd.f32 %v6691_v7, %v3071_v33  ;;  %v2899_v32 = vpop.f32.mrf.mxu0  ;;  %v2697_v10 = vadd.f32 %v7228_v2, %v2494_v42  ;;  %v3223_v19 = vpop.permute.xlu0 %3222  ;;  %v7234_v31 = vld [vmem:[#allocation13_spill] sm:$0xff] }
 0x284   :  { %v3400_v16 = vsel %vm3363_vm0, 0.0, %v3065_v26  ;;  %v3266_v44 = vadd.f32 %v3250_v56, %v6673_v35  ;;  %v3083_v49 = vadd.f32 %v4513_v9, %v2906_v30  ;;  %v2900_v46 = vadd.f32 %v2899_v32, %v2673_v29  ;;  %v3100_v41 = vpop.f32.mrf.mxu1  ;;  %v3221_v15 = vpop.permute.xlu1 %3220 }
 0x285   :  { %v2501_v14 = vadd.f32 %v7229_v40, %v6729_v8  ;;  %3416 = vst [vmem:[#allocation6 + $0x20] sm:$0xff] %v3400_v16  ;;  %v3253_v11 = vmul.f32 %v6712_v21, %v3157_v18  ;;  %3302 = vrot.lane.b32.xlu0 %v3267_v0, %s4674_s11  ;;  %v3156_v6 = vadd.f32 %v6691_v7, %v3065_v26  ;;  %v4460_v42 = vpop.f32.mrf.mxu0  ;;  %v7231_v8 = vld [vmem:[#allocation26_spill] sm:$0xff]  ;;  %v7235_v18 = vld [vmem:[#allocation15_spill] sm:$0xff] }
 0x286   :  { %v2689_v5 = vadd.f32 %v7230_v55, %v2487_v39  ;;  %v3403_v35 = vsel %vm3363_vm0, 0.0, %v3083_v49  ;;  %v3077_v9 = vadd.f32 %v3076_v51, %v2900_v46  ;;  %v2918_v57 = vadd.f32 %v4460_v42, %v2697_v10  ;;  %v7236_v16 = vld [vmem:[#allocation30_spill] sm:$0xff]  ;;  %v7237_v46 = vld [vmem:[#allocation17_spill] sm:$0xff] }
 0x287   :  { %v3159_v53 = vadd.f32 %v6691_v7, %v3083_v49  ;;  %v2522_v45 = vadd.f32 %v7231_v8, %v6733_v12  ;;  %3419 = vst [vmem:[#allocation6 + $0x38] sm:$0xff] %v3403_v35  ;;  %v3269_v21 = vadd.f32 %v3253_v11, %v6681_v36  ;;  %v3252_v24 = vmul.f32 %v6725_v4, %v3156_v6  ;;  %v2911_v33 = vpop.f32.mrf.mxu0  ;;  %v7233_v12 = vld [vmem:[#allocation28_spill] sm:$0xff]  ;;  %v4522_v4 = vpop.f32.mrf.mxu1 }
 0x288   :  { %3300 = vrot.lane.b32.xlu1 %v3266_v44, %s4674_s11  ;;  %v2713_v62 = vadd.f32 %v7232_v52, %v2508_v13  ;;  %v3402_v20 = vsel %vm3363_vm0, 0.0, %v3077_v9  ;;  %v3095_v51 = vadd.f32 %v4516_v3, %v2918_v57  ;;  %v2912_v17 = vadd.f32 %v2911_v33, %v2689_v5  ;;  %v3227_v5 = vpop.permute.xlu0 %3226  ;;  %v7239_v8 = vld [vmem:[#allocation32_spill] sm:$0xff]  ;;  %v7240_v33 = vld [vmem:[#allocation21_spill] sm:$0xff] }
 0x289   :  { %v3255_v39 = vmul.f32 %v6753_v58, %v3159_v53  ;;  %v2515_v23 = vadd.f32 %v7233_v12, %v6742_v48  ;;  %3418 = vst [vmem:[#allocation6 + $0x30] sm:$0xff] %v3402_v20  ;;  %v3268_v36 = vadd.f32 %v3252_v24, %v6685_v59  ;;  %3306 = vrot.lane.b32.xlu0 %v3269_v21, %s4674_s11  ;;  %v4463_v29 = vpop.f32.mrf.mxu0 }
 0x28a   :  { %v3158_v54 = vadd.f32 %v6691_v7, %v3077_v9  ;;  %v2705_v26 = vadd.f32 %v7234_v31, %v2501_v14  ;;  %v3405_v3 = vsel %vm3363_vm0, 0.0, %v3095_v51  ;;  %v3089_v56 = vadd.f32 %v3088_v1, %v2912_v17  ;;  %v7241_v17 = vld [vmem:[#allocation33_spill] sm:$0xff] }
 0x28b   :  { %v3271_v58 = vadd.f32 %v3255_v39, %v6689_v60  ;;  %v2930_v30 = vadd.f32 %v4463_v29, %v2713_v62  ;;  %v2536_v48 = vadd.f32 %v6653_v38, %v6746_v47  ;;  %3421 = vst [vmem:[#allocation6 + $0x48] sm:$0xff] %v3405_v3  ;;  %v3161_v13 = vadd.f32 %v6691_v7, %v3095_v51  ;;  %v2923_v0 = vpop.f32.mrf.mxu0  ;;  %v3112_v47 = vpop.f32.mrf.mxu1 }
 0x28c   :  { %v3254_v59 = vmul.f32 %v6765_v25, %v3158_v54  ;;  %3304 = vrot.lane.b32.xlu1 %v3268_v36, %s4674_s11  ;;  %v2729_v32 = vadd.f32 %v7235_v18, %v2522_v45  ;;  %v3404_v2 = vsel %vm3363_vm0, 0.0, %v3089_v56  ;;  %v2924_v1 = vadd.f32 %v2923_v0, %v2705_v26 }
 0x28d   :  { %v3107_v60 = vadd.f32 %v4519_v28, %v2930_v30  ;;  %v3160_v10 = vadd.f32 %v6691_v7, %v3089_v56  ;;  %v2529_v38 = vadd.f32 %v7236_v16, %v6757_v22  ;;  %3420 = vst [vmem:[#allocation6 + $0x40] sm:$0xff] %v3404_v2  ;;  %v3257_v44 = vmul.f32 %v6782_v27, %v3161_v13  ;;  %v4466_v49 = vpop.f32.mrf.mxu0  ;;  %v7238_v27 = vld [vmem:[#allocation19_spill] sm:$0xff]  ;;  %v4525_v53 = vpop.f32.mrf.mxu1 }
 0x28e   :  { %v3270_v25 = vadd.f32 %v3254_v59, %v6695_v61  ;;  %3310 = vrot.lane.b32.xlu0 %v3271_v58, %s4674_s11  ;;  %v2721_v40 = vadd.f32 %v7237_v46, %v2515_v23  ;;  %v3101_v14 = vadd.f32 %v3100_v41, %v2924_v1  ;;  %v2942_v6 = vadd.f32 %v4466_v49, %v2729_v32  ;;  %v7242_v23 = vld [vmem:[#allocation34_spill] sm:$0xff]  ;;  %v3231_v30 = vpop.permute.xlu0 %3230 }
 0x28f   :  { %v3407_v28 = vsel %vm3363_vm0, 0.0, %v3107_v60  ;;  %v3256_v11 = vmul.f32 %v3217_v63, %v3160_v10  ;;  %v3273_v22 = vadd.f32 %v3257_v44, %v6701_v43  ;;  %v3163_v61 = vadd.f32 %v6691_v7, %v3107_v60  ;;  %v2935_v42 = vpop.f32.mrf.mxu0  ;;  %v3225_v63 = vpop.permute.xlu1 %3224 }
 0x290   :  { %3423 = vst [vmem:[#allocation6 + $0x58] sm:$0xff] %v3407_v28  ;;  %3308 = vrot.lane.b32.xlu1 %v3270_v25, %s4674_s11  ;;  %v2745_v55 = vadd.f32 %v7238_v27, %v2536_v48  ;;  %v3406_v35 = vsel %vm3363_vm0, 0.0, %v3101_v14  ;;  %v3119_v57 = vadd.f32 %v4522_v4, %v2942_v6  ;;  %v2936_v41 = vadd.f32 %v2935_v42, %v2721_v40  ;;  %v3124_v3 = vpop.f32.mrf.mxu1 }
 0x291   :  { %v3272_v9 = vadd.f32 %v3256_v11, %v6705_v50  ;;  %3422 = vst [vmem:[#allocation6 + $0x50] sm:$0xff] %v3406_v35  ;;  %v3146_v43 = vadd.f32 %v6645_v34, %v7239_v8  ;;  %v3259_v45 = vmul.f32 %v3223_v19, %v3163_v61  ;;  %v3162_v21 = vadd.f32 %v6691_v7, %v3101_v14  ;;  %v4469_v24 = vpop.f32.mrf.mxu0 }
 0x292   :  { %3314 = vrot.lane.b32.xlu0 %v3273_v22, %s4674_s11  ;;  %v2737_v52 = vadd.f32 %v7240_v33, %v2529_v38  ;;  %v3409_v62 = vsel %vm3363_vm0, 0.0, %v3119_v57  ;;  %v3113_v50 = vadd.f32 %v3112_v47, %v2936_v41  ;;  %v2954_v20 = vadd.f32 %v4469_v24, %v2745_v55 }
 0x293   :  { %v3165_v51 = vadd.f32 %v6691_v7, %v3119_v57  ;;  %3425 = vst [vmem:[#allocation6 + $0x68] sm:$0xff] %v3409_v62  ;;  %v3275_v39 = vadd.f32 %v3259_v45, %v3146_v43  ;;  %v3145_v12 = vadd.f32 %v6645_v34, %v7241_v17  ;;  %v3258_v19 = vmul.f32 %v3221_v15, %v3162_v21  ;;  %v2947_v4 = vpop.f32.mrf.mxu0 }
 0x294   :  { %3312 = vrot.lane.b32.xlu1 %v3272_v9, %s4674_s11  ;;  %v3148_v36 = vadd.f32 %v6645_v34, %v7242_v23  ;;  %v3408_v54 = vsel %vm3363_vm0, 0.0, %v3113_v50  ;;  %v3131_v29 = vadd.f32 %v4525_v53, %v2954_v20  ;;  %v2948_v26 = vadd.f32 %v2947_v4, %v2737_v52 }
 0x295   :  { %v3261_v31 = vmul.f32 %v3227_v5, %v3165_v51  ;;  %3424 = vst [vmem:[#allocation6 + $0x60] sm:$0xff] %v3408_v54  ;;  %v3274_v58 = vadd.f32 %v3258_v19, %v3145_v12  ;;  %v3164_v56 = vadd.f32 %v6691_v7, %v3113_v50 }
 0x296   :  { %3318 = vrot.lane.b32.xlu0 %v3275_v39, %s4674_s11  ;;  %v3411_v15 = vsel %vm3363_vm0, 0.0, %v3131_v29  ;;  %v3125_v59 = vadd.f32 %v3124_v3, %v2948_v26  ;;  %v3167_v13 = vadd.f32 %v6691_v7, %v3131_v29 }
 0x297   :  { %v3277_v48 = vadd.f32 %v3261_v31, %v3148_v36 }
 0x298   :  { %4635 = shalt.err (!%p4632_p9)
}
 0x299   :  { %s4677_s17 = smov 128   ;;  %s4678_s0 = smov 8   ;;  %3427 = vst [vmem:[#allocation6 + $0x78] sm:$0xff] %v3411_v15  ;;  %v7243_v0 = vld [vmem:[#allocation35_spill] sm:$0xff]  ;;  %v3260_v32 = vmul.f32 %v3225_v63, %v3164_v56  ;;  %3316 = vrot.lane.b32.xlu1 %v3274_v58, %s4674_s11  ;;  %v3229_v2 = vpop.permute.xlu1 %3228  ;;  %v3410_v60 = vsel %vm3363_vm0, 0.0, %v3125_v59  ;;  %v7244_v1 = vld [vmem:[#allocation36_spill] sm:$0xff]  ;;  %v3263_v16 = vmul.f32 %v3231_v30, %v3167_v13  ;;  %v3166_v38 = vadd.f32 %v6691_v7, %v3125_v59 }
 0x29a   :  { %3439 = dma.vmem_to_hbm [thread:$0]  %s3434_s13, 2048, %s6955_s7, [#allocation3], %s4677_s17, %s4677_s17, %s4678_s0   ;;  %v3147_v18 = vadd.f32 %v6645_v34, %v7243_v0  ;;  %v3150_v10 = vadd.f32 %v6645_v34, %v7244_v1  ;;  %3426 = vst [vmem:[#allocation6 + $0x70] sm:$0xff] %v3410_v60  ;;  %v7245_v44 = vld [vmem:[#allocation37_spill] sm:$0xff] }
 0x29b   :  { %3322 = vrot.lane.b32.xlu0 %v3277_v48, %s4674_s11  ;;  %v3149_v49 = vadd.f32 %v6645_v34, %v7245_v44  ;;  %v3262_v46 = vmul.f32 %v3229_v2, %v3166_v38  ;;  %s4644_s7 = scalar_lea.vmem %s3446_s15, 2048  ;;  %p4649_p11 = scmp.lt.s32.totalorder %s3446_s15, %s3446_s15 }
 0x29c   :  { %v3276_v47 = vadd.f32 %v3260_v32, %v3147_v18  ;;  %v3279_v25 = vadd.f32 %v3263_v16, %v3150_v10  ;;  %p4645_p10 = scmp.ne.s32.totalorder %s3446_s15, %s4644_s7  ;;  %p4650_p12 = scmp.lt.s32.totalorder %s4644_s7, %s4644_s7 }
 0x29e   :  { %p4651_p13 = por %p4650_p12, %p4649_p11 }
 0x2a0   :  { %p4652_p0 = pnand %p4651_p13, %p4645_p10 }
 0x2a2   :  { %4655 = shalt.err (!%p4652_p0)
}
 0x2a3   :  { %3451 = dma.vmem_to_hbm [thread:$0]  %s3446_s15, 2048, %s6956_s8, [#allocation7], %s4677_s17, %s4677_s17, %s4678_s0   ;;  %v3278_v37 = vadd.f32 %v3262_v46, %v3149_v49  ;;  %vm3344_vm1 = vcmask 7168  }
 0x2a4   :  { %3320 = vrot.lane.b32.xlu1 %v3276_v47, %s4674_s11  ;;  %3326 = vrot.lane.b32.xlu0 %v3279_v25, %s4674_s11 }
 0x2a8   :  { %3324 = vrot.lane.b32.xlu1 %v3278_v37, %s4674_s11 }
 0x2f2   :  { %v3299_v34 = vpop.permute.xlu0 %3298 }
 0x2f3   :  { %3346 = vst.msk [vmem:[%s6957_s9 + $0x8] sm:$0xff] %vm3344_vm1, %v3299_v34 }
 0x2f5   :  { %v3297_v7 = vpop.permute.xlu1 %3296 }
 0x2f6   :  { %3345 = vst.msk [vmem:[%s6957_s9] sm:$0xff] %vm3344_vm1, %v3297_v7 }
 0x2f7   :  { %v3303_v40 = vpop.permute.xlu0 %3302 }
 0x2f8   :  { %3348 = vst.msk [vmem:[%s6957_s9 + $0x18] sm:$0xff] %vm3344_vm1, %v3303_v40 }
 0x2fa   :  { %v3301_v28 = vpop.permute.xlu1 %3300 }
 0x2fb   :  { %3347 = vst.msk [vmem:[%s6957_s9 + $0x10] sm:$0xff] %vm3344_vm1, %v3301_v28  ;;  %v3307_v14 = vpop.permute.xlu0 %3306 }
 0x2fc   :  { %3350 = vst.msk [vmem:[%s6957_s9 + $0x28] sm:$0xff] %vm3344_vm1, %v3307_v14 }
 0x2fe   :  { %v3305_v11 = vpop.permute.xlu1 %3304 }
 0x2ff   :  { %3349 = vst.msk [vmem:[%s6957_s9 + $0x20] sm:$0xff] %vm3344_vm1, %v3305_v11 }
 0x300   :  { %v3311_v6 = vpop.permute.xlu0 %3310 }
 0x301   :  { %3352 = vst.msk [vmem:[%s6957_s9 + $0x38] sm:$0xff] %vm3344_vm1, %v3311_v6 }
 0x302   :  { %v3309_v22 = vpop.permute.xlu1 %3308 }
 0x303   :  { %3351 = vst.msk [vmem:[%s6957_s9 + $0x30] sm:$0xff] %vm3344_vm1, %v3309_v22 }
 0x304   :  { %v3315_v61 = vpop.permute.xlu0 %3314 }
 0x305   :  { %3354 = vst.msk [vmem:[%s6957_s9 + $0x48] sm:$0xff] %vm3344_vm1, %v3315_v61 }
 0x306   :  { %v3313_v42 = vpop.permute.xlu1 %3312 }
 0x307   :  { %3353 = vst.msk [vmem:[%s6957_s9 + $0x40] sm:$0xff] %vm3344_vm1, %v3313_v42 }
 0x308   :  { %v3319_v27 = vpop.permute.xlu0 %3318 }
 0x309   :  { %3356 = vst.msk [vmem:[%s6957_s9 + $0x58] sm:$0xff] %vm3344_vm1, %v3319_v27 }
 0x30b   :  { %v3317_v55 = vpop.permute.xlu1 %3316 }
 0x30c   :  { %3355 = vst.msk [vmem:[%s6957_s9 + $0x50] sm:$0xff] %vm3344_vm1, %v3317_v55 }
 0x30d   :  { %v3323_v5 = vpop.permute.xlu0 %3322 }
 0x30e   :  { %3358 = vst.msk [vmem:[%s6957_s9 + $0x68] sm:$0xff] %vm3344_vm1, %v3323_v5 }
 0x316   :  { %v3321_v35 = vpop.permute.xlu1 %3320  ;;  %v3327_v9 = vpop.permute.xlu0 %3326 }
 0x317   :  { %3357 = vst.msk [vmem:[%s6957_s9 + $0x60] sm:$0xff] %vm3344_vm1, %v3321_v35  ;;  %3360 = vst.msk [vmem:[%s6957_s9 + $0x78] sm:$0xff] %vm3344_vm1, %v3327_v9 }
 0x31a   :  { %v3325_v57 = vpop.permute.xlu1 %3324 }
 0x31b   :  { %3359 = vst.msk [vmem:[%s6957_s9 + $0x70] sm:$0xff] %vm3344_vm1, %v3325_v57 }
 0x31c   :  { %4666 = dma.done.wait [#allocation3], 2048  }
 0x31d   :  { %4667 = vsyncadd [#allocation3], 4294965248 }
 0x31e   :  { %4668 = dma.done.wait [#allocation7], 2048  }
 0x31f   :  { %4669 = vsyncadd [#allocation7], 4294965248 }
 0x320   :  { %3462 = vsyncpa [#allocation3], 1 }
 0x321   :  { %3463 = vsyncpa [#allocation7], 1 }
 0x322   :  { %3464 = vsyncpa [#allocation4], 1 }

</bundles_post_ra>
